<compile_context>
chip_gen: v6e
topology: v6e:2x2x1
jax: 0.10.0
libtpu: 0.0.40
codegen_flags: <defaults>
</compile_context>

<pallas_src>
import jax
import jax.numpy as jnp
import numpy as np
from jax.experimental import pallas as pl
from jax.experimental.pallas import tpu as pltpu


def expert_kernel(x_ref, w1_ref, sb1_ref, w2_ref, sb2_ref, wsk_ref, sbsk_ref,
                  o_ref, xpad_s, hpad_s, p1_s, p2_s):
    """One image per grid step.

    x_ref   : (H, W, Cin)        unpadded input block (batch dim squeezed)
    w1_ref  : (9*Cin, Chid)      conv1 weights, im2col layout, bf16
    sb1_ref : (2, Chid)          folded BN1 [scale; bias], f32
    w2_ref  : (9*Chid, Cin)      conv2 weights, im2col layout, bf16
    sb2_ref : (2, Cin)           folded BN2 [scale; bias], f32
    wsk_ref : (Cin, Cin)         1x1 skip conv weights, bf16
    sbsk_ref: (2, Cin)           folded skip BN [scale; bias], f32
    o_ref   : (H, W, Cin)        output block
    xpad_s  : (H+2, W+2, Cin)    f32 halo scratch for x
    hpad_s  : (H+2, W+2, Chid)   f32 halo scratch for SiLU(BN1(conv1))
    p1_s    : (H*W, 9*Cin)       f32 im2col patches for conv1
    p2_s    : (H*W, 9*Chid)      f32 im2col patches for conv2
    """
    H, W, Cin = x_ref.shape
    Chid = w1_ref.shape[1]
    f32 = jnp.float32
    bf16 = jnp.bfloat16

    # Zero only the 1-pixel halo border; the interiors are fully rewritten below.
    # (Done every step so it is correct regardless of how the "parallel" grid is
    #  sharded across TensorCores.)
    xpad_s[0:1, :, :] = jnp.zeros((1, W + 2, Cin), f32)
    xpad_s[H + 1:H + 2, :, :] = jnp.zeros((1, W + 2, Cin), f32)
    xpad_s[:, 0:1, :] = jnp.zeros((H + 2, 1, Cin), f32)
    xpad_s[:, W + 1:W + 2, :] = jnp.zeros((H + 2, 1, Cin), f32)
    hpad_s[0:1, :, :] = jnp.zeros((1, W + 2, Chid), f32)
    hpad_s[H + 1:H + 2, :, :] = jnp.zeros((1, W + 2, Chid), f32)
    hpad_s[:, 0:1, :] = jnp.zeros((H + 2, 1, Chid), f32)
    hpad_s[:, W + 1:W + 2, :] = jnp.zeros((H + 2, 1, Chid), f32)

    # Stage this image into the padded scratch (interior only).
    xpad_s[1:H + 1, 1:W + 1, :] = x_ref[...].astype(f32)

    # ---- conv1 as a single im2col matmul (K = 9*Cin) + folded BN1 + SiLU ----
    x_center = None
    for t in range(9):
        dy, dx = t // 3, t % 3
        tap = xpad_s[dy:dy + H, dx:dx + W, :].reshape(H * W, Cin)
        p1_s[:, t * Cin:(t + 1) * Cin] = tap
        if t == 4:                        # (dy, dx) == (1, 1): the unshifted image
            x_center = tap                # reused by the 1x1 skip conv
    a1 = jnp.dot(p1_s[...].astype(bf16), w1_ref[...],
                 preferred_element_type=f32)
    a1 = a1 * sb1_ref[0:1, :] + sb1_ref[1:2, :]
    h1 = a1 * jax.nn.sigmoid(a1)          # SiLU in f32 (VPU/EUP)

    # ---- conv2 as a single im2col matmul (K = 9*Chid) + folded BN2 ----
    hpad_s[1:H + 1, 1:W + 1, :] = h1.reshape(H, W, Chid)
    for t in range(9):
        dy, dx = t // 3, t % 3
        p2_s[:, t * Chid:(t + 1) * Chid] = (
            hpad_s[dy:dy + H, dx:dx + W, :].reshape(H * W, Chid))
    a2 = jnp.dot(p2_s[...].astype(bf16), w2_ref[...],
                 preferred_element_type=f32)
    main = a2 * sb2_ref[0:1, :] + sb2_ref[1:2, :]

    # ---- skip path: 1x1 conv + folded BN (reuses the center tap) ----
    ident = jnp.dot(x_center.astype(bf16), wsk_ref[...],
                    preferred_element_type=f32)
    ident = ident * sbsk_ref[0:1, :] + sbsk_ref[1:2, :]

    # ---- residual add + SiLU ----
    y = main + ident
    y = y * jax.nn.sigmoid(y)
    o_ref[...] = y.reshape(H, W, Cin).astype(o_ref.dtype)


def expert_forward(x, p):
    """x: (N, H, W, Cin) NHWC, unpadded. Returns (N, H, W, Cin)."""
    N, H, W, Cin = x.shape
    Chid = p["sb1"].shape[1]
    vmem = pl.BlockSpec(memory_space=pltpu.MemorySpace.VMEM)   # whole small array in VMEM
    return pl.pallas_call(
        expert_kernel,
        out_shape=jax.ShapeDtypeStruct((N, H, W, Cin), x.dtype),
        grid=(N,),
        in_specs=[
            pl.BlockSpec((None, H, W, Cin), lambda n: (n, 0, 0, 0)),   # x (per image)
            vmem,   # w1
            vmem,   # sb1
            vmem,   # w2
            vmem,   # sb2
            vmem,   # wsk
            vmem,   # sbsk
        ],
        out_specs=pl.BlockSpec((None, H, W, Cin), lambda n: (n, 0, 0, 0)),
        scratch_shapes=[
            pltpu.VMEM((H + 2, W + 2, Cin), jnp.float32),    # xpad
            pltpu.VMEM((H + 2, W + 2, Chid), jnp.float32),   # hpad
            pltpu.VMEM((H * W, 9 * Cin), jnp.float32),       # conv1 im2col patches
            pltpu.VMEM((H * W, 9 * Chid), jnp.float32),      # conv2 im2col patches
        ],
        compiler_params=pltpu.CompilerParams(
            dimension_semantics=("parallel",),
            vmem_limit_bytes=32 * 1024 * 1024,
        ),
    )(x, p["w1"], p["sb1"], p["w2"], p["sb2"], p["wsk"], p["sbsk"])


# ------------------------- parameter construction -------------------------

def fold_bn(conv_bias, gamma, beta, mean, var, eps=1e-5):
    scale = gamma / jnp.sqrt(var + eps)
    bias = (conv_bias - mean) * scale + beta
    return jnp.stack([scale, bias], axis=0).astype(jnp.float32)   # (2, C)


def init_params(key, in_dim, hidden_dim):
    ks = jax.random.split(key, 16)
    raw = dict(
        w1=jax.random.normal(ks[0], (3, 3, in_dim, hidden_dim), jnp.float32) * 0.1,
        b1=jax.random.normal(ks[1], (hidden_dim,), jnp.float32) * 0.1,
        g1=jax.random.uniform(ks[2], (hidden_dim,), jnp.float32, 0.5, 1.5),
        beta1=jax.random.normal(ks[3], (hidden_dim,), jnp.float32) * 0.1,
        m1=jax.random.normal(ks[4], (hidden_dim,), jnp.float32) * 0.1,
        v1=jax.random.uniform(ks[5], (hidden_dim,), jnp.float32, 0.5, 1.5),
        w2=jax.random.normal(ks[6], (3, 3, hidden_dim, in_dim), jnp.float32) * 0.1,
        b2=jax.random.normal(ks[7], (in_dim,), jnp.float32) * 0.1,
        g2=jax.random.uniform(ks[8], (in_dim,), jnp.float32, 0.5, 1.5),
        beta2=jax.random.normal(ks[9], (in_dim,), jnp.float32) * 0.1,
        m2=jax.random.normal(ks[10], (in_dim,), jnp.float32) * 0.1,
        v2=jax.random.uniform(ks[11], (in_dim,), jnp.float32, 0.5, 1.5),
        wsk=jax.random.normal(ks[12], (1, 1, in_dim, in_dim), jnp.float32) * 0.1,
        bsk=jax.random.normal(ks[13], (in_dim,), jnp.float32) * 0.1,
        gsk=jax.random.uniform(ks[14], (in_dim,), jnp.float32, 0.5, 1.5),
        betask=jax.random.normal(ks[15], (in_dim,), jnp.float32) * 0.1,
        msk=jnp.zeros((in_dim,), jnp.float32),
        vsk=jnp.ones((in_dim,), jnp.float32),
    )
    kernel_params = dict(
        # (3,3,Cin,Chid) -> (9*Cin, Chid): row index = (dy*3+dx)*Cin + c, matching
        # the in-kernel im2col column ordering.
        w1=raw["w1"].reshape(9 * in_dim, hidden_dim).astype(jnp.bfloat16),
        sb1=fold_bn(raw["b1"], raw["g1"], raw["beta1"], raw["m1"], raw["v1"]),
        w2=raw["w2"].reshape(9 * hidden_dim, in_dim).astype(jnp.bfloat16),
        sb2=fold_bn(raw["b2"], raw["g2"], raw["beta2"], raw["m2"], raw["v2"]),
        wsk=raw["wsk"][0, 0].astype(jnp.bfloat16),                # (Cin, Cin)
        sbsk=fold_bn(raw["bsk"], raw["gsk"], raw["betask"], raw["msk"], raw["vsk"]),
    )
    return raw, kernel_params


# ------------------------- pure-JAX reference -------------------------

def expert_reference(x, raw, eps=1e-5):
    def conv(x, w, b):
        y = jax.lax.conv_general_dilated(
            x, w, window_strides=(1, 1), padding="SAME",
            dimension_numbers=("NHWC", "HWIO", "NHWC"))
        return y + b

    def bn(x, g, beta, m, v):
        return (x - m) / jnp.sqrt(v + eps) * g + beta

    ident = bn(conv(x, raw["wsk"], raw["bsk"]), raw["gsk"], raw["betask"],
               raw["msk"], raw["vsk"])
    h = jax.nn.silu(bn(conv(x, raw["w1"], raw["b1"]), raw["g1"], raw["beta1"],
                       raw["m1"], raw["v1"]))
    out = bn(conv(h, raw["w2"], raw["b2"]), raw["g2"], raw["beta2"],
             raw["m2"], raw["v2"])
    return jax.nn.silu(out + ident)


if __name__ == "__main__":
    N, Cin, Chid, H, W = 2, 4, 8, 16, 16     # PyTorch NCHW would be (2, 4, 16, 16)
    key = jax.random.PRNGKey(0)
    kx, kp = jax.random.split(key)
    x = jax.random.normal(kx, (N, H, W, Cin), jnp.float32)
    raw, params = init_params(kp, Cin, Chid)

    out = jax.block_until_ready(expert_forward(x, params))
    ref = jax.block_until_ready(expert_reference(x, raw))

    # bf16 MXU operands with f32 accumulation -> slightly looser tolerance than
    # a pure-f32 comparison would need.
    np.testing.assert_allclose(np.asarray(out), np.asarray(ref),
                               rtol=2e-2, atol=2e-2)
    print("KERNEL_OK")
</pallas_src>

<mosaic_0001>
module attributes {stable_mosaic.version = 11 : i64} {
  func.func @expert_kernel(%arg0: i32, %arg1: memref<1x16x16x4xf32, #tpu.memory_space<vmem>>, %arg2: memref<36x8xbf16, #tpu.memory_space<vmem>>, %arg3: memref<2x8xf32, #tpu.memory_space<vmem>>, %arg4: memref<72x4xbf16, #tpu.memory_space<vmem>>, %arg5: memref<2x4xf32, #tpu.memory_space<vmem>>, %arg6: memref<4x4xbf16, #tpu.memory_space<vmem>>, %arg7: memref<2x4xf32, #tpu.memory_space<vmem>>, %arg8: memref<1x16x16x4xf32, #tpu.memory_space<vmem>>, %arg9: memref<18x18x4xf32, #tpu.memory_space<vmem>>, %arg10: memref<18x18x8xf32, #tpu.memory_space<vmem>>, %arg11: memref<256x36xf32, #tpu.memory_space<vmem>>, %arg12: memref<256x72xf32, #tpu.memory_space<vmem>>) attributes {dimension_semantics = [#tpu.dimension_semantics<parallel>], iteration_bounds = array<i64: 2>, scalar_prefetch = 0 : i64, scratch_operands = 4 : i64, tpu.core_type = #tpu.core_type<tc>, window_params = [{transform_indices = @transform_0, window_bounds = array<i64: 1, 16, 16, 4>}, {pipeline_mode = #tpu.pipeline_mode<synchronous>, transform_indices = @transform_1, window_bounds = array<i64: 36, 8>}, {pipeline_mode = #tpu.pipeline_mode<synchronous>, transform_indices = @transform_2, window_bounds = array<i64: 2, 8>}, {pipeline_mode = #tpu.pipeline_mode<synchronous>, transform_indices = @transform_3, window_bounds = array<i64: 72, 4>}, {pipeline_mode = #tpu.pipeline_mode<synchronous>, transform_indices = @transform_4, window_bounds = array<i64: 2, 4>}, {pipeline_mode = #tpu.pipeline_mode<synchronous>, transform_indices = @transform_5, window_bounds = array<i64: 4, 4>}, {pipeline_mode = #tpu.pipeline_mode<synchronous>, transform_indices = @transform_6, window_bounds = array<i64: 2, 4>}, {transform_indices = @transform_7, window_bounds = array<i64: 1, 16, 16, 4>}]} {
    %cst = arith.constant 0.000000e+00 : f32
    %0 = vector.broadcast %cst : f32 to vector<1x18x4xf32>
    %c0 = arith.constant 0 : index
    %c0_0 = arith.constant 0 : index
    %c0_1 = arith.constant 0 : index
    %1 = vector.load %arg9[%c0, %c0_0, %c0_1] : memref<18x18x4xf32, #tpu.memory_space<vmem>>, vector<1x18x4xf32>
    tpu.vector_store %arg9[%c0, %c0_0, %c0_1], %0 {strides = array<i32>} : memref<18x18x4xf32, #tpu.memory_space<vmem>>, vector<1x18x4xf32>,
    %cst_2 = arith.constant 0.000000e+00 : f32
    %2 = vector.broadcast %cst_2 : f32 to vector<1x18x4xf32>
    %c17 = arith.constant 17 : index
    %c0_3 = arith.constant 0 : index
    %c0_4 = arith.constant 0 : index
    %3 = vector.load %arg9[%c17, %c0_3, %c0_4] : memref<18x18x4xf32, #tpu.memory_space<vmem>>, vector<1x18x4xf32>
    tpu.vector_store %arg9[%c17, %c0_3, %c0_4], %2 {strides = array<i32>} : memref<18x18x4xf32, #tpu.memory_space<vmem>>, vector<1x18x4xf32>,
    %cst_5 = arith.constant 0.000000e+00 : f32
    %4 = vector.broadcast %cst_5 : f32 to vector<18x1x4xf32>
    %c0_6 = arith.constant 0 : index
    %c0_7 = arith.constant 0 : index
    %c0_8 = arith.constant 0 : index
    %5 = vector.load %arg9[%c0_6, %c0_7, %c0_8] : memref<18x18x4xf32, #tpu.memory_space<vmem>>, vector<18x1x4xf32>
    tpu.vector_store %arg9[%c0_6, %c0_7, %c0_8], %4 {strides = array<i32>} : memref<18x18x4xf32, #tpu.memory_space<vmem>>, vector<18x1x4xf32>,
    %cst_9 = arith.constant 0.000000e+00 : f32
    %6 = vector.broadcast %cst_9 : f32 to vector<18x1x4xf32>
    %c0_10 = arith.constant 0 : index
    %c17_11 = arith.constant 17 : index
    %c0_12 = arith.constant 0 : index
    %7 = vector.load %arg9[%c0_10, %c17_11, %c0_12] : memref<18x18x4xf32, #tpu.memory_space<vmem>>, vector<18x1x4xf32>
    tpu.vector_store %arg9[%c0_10, %c17_11, %c0_12], %6 {strides = array<i32>} : memref<18x18x4xf32, #tpu.memory_space<vmem>>, vector<18x1x4xf32>,
    %cst_13 = arith.constant 0.000000e+00 : f32
    %8 = vector.broadcast %cst_13 : f32 to vector<1x18x8xf32>
    %c0_14 = arith.constant 0 : index
    %c0_15 = arith.constant 0 : index
    %c0_16 = arith.constant 0 : index
    %9 = vector.load %arg10[%c0_14, %c0_15, %c0_16] : memref<18x18x8xf32, #tpu.memory_space<vmem>>, vector<1x18x8xf32>
    tpu.vector_store %arg10[%c0_14, %c0_15, %c0_16], %8 {strides = array<i32>} : memref<18x18x8xf32, #tpu.memory_space<vmem>>, vector<1x18x8xf32>,
    %cst_17 = arith.constant 0.000000e+00 : f32
    %10 = vector.broadcast %cst_17 : f32 to vector<1x18x8xf32>
    %c17_18 = arith.constant 17 : index
    %c0_19 = arith.constant 0 : index
    %c0_20 = arith.constant 0 : index
    %11 = vector.load %arg10[%c17_18, %c0_19, %c0_20] : memref<18x18x8xf32, #tpu.memory_space<vmem>>, vector<1x18x8xf32>
    tpu.vector_store %arg10[%c17_18, %c0_19, %c0_20], %10 {strides = array<i32>} : memref<18x18x8xf32, #tpu.memory_space<vmem>>, vector<1x18x8xf32>,
    %cst_21 = arith.constant 0.000000e+00 : f32
    %12 = vector.broadcast %cst_21 : f32 to vector<18x1x8xf32>
    %c0_22 = arith.constant 0 : index
    %c0_23 = arith.constant 0 : index
    %c0_24 = arith.constant 0 : index
    %13 = vector.load %arg10[%c0_22, %c0_23, %c0_24] : memref<18x18x8xf32, #tpu.memory_space<vmem>>, vector<18x1x8xf32>
    tpu.vector_store %arg10[%c0_22, %c0_23, %c0_24], %12 {strides = array<i32>} : memref<18x18x8xf32, #tpu.memory_space<vmem>>, vector<18x1x8xf32>,
    %cst_25 = arith.constant 0.000000e+00 : f32
    %14 = vector.broadcast %cst_25 : f32 to vector<18x1x8xf32>
    %c0_26 = arith.constant 0 : index
    %c17_27 = arith.constant 17 : index
    %c0_28 = arith.constant 0 : index
    %15 = vector.load %arg10[%c0_26, %c17_27, %c0_28] : memref<18x18x8xf32, #tpu.memory_space<vmem>>, vector<18x1x8xf32>
    tpu.vector_store %arg10[%c0_26, %c17_27, %c0_28], %14 {strides = array<i32>} : memref<18x18x8xf32, #tpu.memory_space<vmem>>, vector<18x1x8xf32>,
    %c0_29 = arith.constant 0 : index
    %c0_30 = arith.constant 0 : index
    %c0_31 = arith.constant 0 : index
    %c0_32 = arith.constant 0 : index
    %16 = vector.load %arg1[%c0_29, %c0_30, %c0_31, %c0_32] : memref<1x16x16x4xf32, #tpu.memory_space<vmem>>, vector<1x16x16x4xf32>
    %17 = vector.shape_cast %16 : vector<1x16x16x4xf32> to vector<16x16x4xf32>
    %c1 = arith.constant 1 : index
    %c1_33 = arith.constant 1 : index
    %c0_34 = arith.constant 0 : index
    %18 = vector.load %arg9[%c1, %c1_33, %c0_34] : memref<18x18x4xf32, #tpu.memory_space<vmem>>, vector<16x16x4xf32>
    tpu.vector_store %arg9[%c1, %c1_33, %c0_34], %17 {strides = array<i32>} : memref<18x18x4xf32, #tpu.memory_space<vmem>>, vector<16x16x4xf32>,
    %c0_35 = arith.constant 0 : index
    %c0_36 = arith.constant 0 : index
    %c0_37 = arith.constant 0 : index
    %19 = vector.load %arg9[%c0_35, %c0_36, %c0_37] : memref<18x18x4xf32, #tpu.memory_space<vmem>>, vector<16x16x4xf32>
    %20 = vector.shape_cast %19 : vector<16x16x4xf32> to vector<256x4xf32>
    %c0_38 = arith.constant 0 : index
    %c0_39 = arith.constant 0 : index
    %21 = vector.load %arg11[%c0_38, %c0_39] : memref<256x36xf32, #tpu.memory_space<vmem>>, vector<256x4xf32>
    tpu.vector_store %arg11[%c0_38, %c0_39], %20 {strides = array<i32>} : memref<256x36xf32, #tpu.memory_space<vmem>>, vector<256x4xf32>,
    %c0_40 = arith.constant 0 : index
    %c1_41 = arith.constant 1 : index
    %c0_42 = arith.constant 0 : index
    %22 = vector.load %arg9[%c0_40, %c1_41, %c0_42] : memref<18x18x4xf32, #tpu.memory_space<vmem>>, vector<16x16x4xf32>
    %23 = vector.shape_cast %22 : vector<16x16x4xf32> to vector<256x4xf32>
    %c0_43 = arith.constant 0 : index
    %c4 = arith.constant 4 : index
    %24 = vector.load %arg11[%c0_43, %c4] : memref<256x36xf32, #tpu.memory_space<vmem>>, vector<256x4xf32>
    tpu.vector_store %arg11[%c0_43, %c4], %23 {strides = array<i32>} : memref<256x36xf32, #tpu.memory_space<vmem>>, vector<256x4xf32>,
    %c0_44 = arith.constant 0 : index
    %c2 = arith.constant 2 : index
    %c0_45 = arith.constant 0 : index
    %25 = vector.load %arg9[%c0_44, %c2, %c0_45] : memref<18x18x4xf32, #tpu.memory_space<vmem>>, vector<16x16x4xf32>
    %26 = vector.shape_cast %25 : vector<16x16x4xf32> to vector<256x4xf32>
    %c0_46 = arith.constant 0 : index
    %c8 = arith.constant 8 : index
    %27 = vector.load %arg11[%c0_46, %c8] : memref<256x36xf32, #tpu.memory_space<vmem>>, vector<256x4xf32>
    tpu.vector_store %arg11[%c0_46, %c8], %26 {strides = array<i32>} : memref<256x36xf32, #tpu.memory_space<vmem>>, vector<256x4xf32>,
    %c1_47 = arith.constant 1 : index
    %c0_48 = arith.constant 0 : index
    %c0_49 = arith.constant 0 : index
    %28 = vector.load %arg9[%c1_47, %c0_48, %c0_49] : memref<18x18x4xf32, #tpu.memory_space<vmem>>, vector<16x16x4xf32>
    %29 = vector.shape_cast %28 : vector<16x16x4xf32> to vector<256x4xf32>
    %c0_50 = arith.constant 0 : index
    %c12 = arith.constant 12 : index
    %30 = vector.load %arg11[%c0_50, %c12] : memref<256x36xf32, #tpu.memory_space<vmem>>, vector<256x4xf32>
    tpu.vector_store %arg11[%c0_50, %c12], %29 {strides = array<i32>} : memref<256x36xf32, #tpu.memory_space<vmem>>, vector<256x4xf32>,
    %c1_51 = arith.constant 1 : index
    %c1_52 = arith.constant 1 : index
    %c0_53 = arith.constant 0 : index
    %31 = vector.load %arg9[%c1_51, %c1_52, %c0_53] : memref<18x18x4xf32, #tpu.memory_space<vmem>>, vector<16x16x4xf32>
    %32 = vector.shape_cast %31 : vector<16x16x4xf32> to vector<256x4xf32>
    %c0_54 = arith.constant 0 : index
    %c16 = arith.constant 16 : index
    %33 = vector.load %arg11[%c0_54, %c16] : memref<256x36xf32, #tpu.memory_space<vmem>>, vector<256x4xf32>
    tpu.vector_store %arg11[%c0_54, %c16], %32 {strides = array<i32>} : memref<256x36xf32, #tpu.memory_space<vmem>>, vector<256x4xf32>,
    %c1_55 = arith.constant 1 : index
    %c2_56 = arith.constant 2 : index
    %c0_57 = arith.constant 0 : index
    %34 = vector.load %arg9[%c1_55, %c2_56, %c0_57] : memref<18x18x4xf32, #tpu.memory_space<vmem>>, vector<16x16x4xf32>
    %35 = vector.shape_cast %34 : vector<16x16x4xf32> to vector<256x4xf32>
    %c0_58 = arith.constant 0 : index
    %c20 = arith.constant 20 : index
    %36 = vector.load %arg11[%c0_58, %c20] : memref<256x36xf32, #tpu.memory_space<vmem>>, vector<256x4xf32>
    tpu.vector_store %arg11[%c0_58, %c20], %35 {strides = array<i32>} : memref<256x36xf32, #tpu.memory_space<vmem>>, vector<256x4xf32>,
    %c2_59 = arith.constant 2 : index
    %c0_60 = arith.constant 0 : index
    %c0_61 = arith.constant 0 : index
    %37 = vector.load %arg9[%c2_59, %c0_60, %c0_61] : memref<18x18x4xf32, #tpu.memory_space<vmem>>, vector<16x16x4xf32>
    %38 = vector.shape_cast %37 : vector<16x16x4xf32> to vector<256x4xf32>
    %c0_62 = arith.constant 0 : index
    %c24 = arith.constant 24 : index
    %39 = vector.load %arg11[%c0_62, %c24] : memref<256x36xf32, #tpu.memory_space<vmem>>, vector<256x4xf32>
    tpu.vector_store %arg11[%c0_62, %c24], %38 {strides = array<i32>} : memref<256x36xf32, #tpu.memory_space<vmem>>, vector<256x4xf32>,
    %c2_63 = arith.constant 2 : index
    %c1_64 = arith.constant 1 : index
    %c0_65 = arith.constant 0 : index
    %40 = vector.load %arg9[%c2_63, %c1_64, %c0_65] : memref<18x18x4xf32, #tpu.memory_space<vmem>>, vector<16x16x4xf32>
    %41 = vector.shape_cast %40 : vector<16x16x4xf32> to vector<256x4xf32>
    %c0_66 = arith.constant 0 : index
    %c28 = arith.constant 28 : index
    %42 = vector.load %arg11[%c0_66, %c28] : memref<256x36xf32, #tpu.memory_space<vmem>>, vector<256x4xf32>
    tpu.vector_store %arg11[%c0_66, %c28], %41 {strides = array<i32>} : memref<256x36xf32, #tpu.memory_space<vmem>>, vector<256x4xf32>,
    %c2_67 = arith.constant 2 : index
    %c2_68 = arith.constant 2 : index
    %c0_69 = arith.constant 0 : index
    %43 = vector.load %arg9[%c2_67, %c2_68, %c0_69] : memref<18x18x4xf32, #tpu.memory_space<vmem>>, vector<16x16x4xf32>
    %44 = vector.shape_cast %43 : vector<16x16x4xf32> to vector<256x4xf32>
    %c0_70 = arith.constant 0 : index
    %c32 = arith.constant 32 : index
    %45 = vector.load %arg11[%c0_70, %c32] : memref<256x36xf32, #tpu.memory_space<vmem>>, vector<256x4xf32>
    tpu.vector_store %arg11[%c0_70, %c32], %44 {strides = array<i32>} : memref<256x36xf32, #tpu.memory_space<vmem>>, vector<256x4xf32>,
    %c0_71 = arith.constant 0 : index
    %c0_72 = arith.constant 0 : index
    %46 = vector.load %arg11[%c0_71, %c0_72] : memref<256x36xf32, #tpu.memory_space<vmem>>, vector<256x36xf32>
    %47 = arith.truncf %46 : vector<256x36xf32> to vector<256x36xbf16>
    %c0_73 = arith.constant 0 : index
    %c0_74 = arith.constant 0 : index
    %48 = vector.load %arg2[%c0_73, %c0_74] : memref<36x8xbf16, #tpu.memory_space<vmem>>, vector<36x8xbf16>
    %cst_75 = arith.constant dense<0.000000e+00> : vector<256x8xf32>
    %49 = tpu.matmul %47, %48, %cst_75 {dimension_numbers = #tpu.dot_dimension_numbers<[1], [0], [0], [1], [0, 0, 1, 1], [], []>} : vector<256x36xbf16>, vector<36x8xbf16>, vector<256x8xf32> -> vector<256x8xf32>
    %c0_76 = arith.constant 0 : index
    %c0_77 = arith.constant 0 : index
    %50 = vector.load %arg3[%c0_76, %c0_77] : memref<2x8xf32, #tpu.memory_space<vmem>>, vector<1x8xf32>
    %51 = vector.broadcast %50 : vector<1x8xf32> to vector<256x8xf32>
    %52 = arith.mulf %49, %51 : vector<256x8xf32>
    %c1_78 = arith.constant 1 : index
    %c0_79 = arith.constant 0 : index
    %53 = vector.load %arg3[%c1_78, %c0_79] : memref<2x8xf32, #tpu.memory_space<vmem>>, vector<1x8xf32>
    %54 = vector.broadcast %53 : vector<1x8xf32> to vector<256x8xf32>
    %55 = arith.addf %52, %54 : vector<256x8xf32>
    %56 = arith.negf %55 : vector<256x8xf32>
    %57 = math.exp %56 : vector<256x8xf32>
    %cst_80 = arith.constant 1.000000e+00 : f32
    %58 = vector.broadcast %cst_80 : f32 to vector<256x8xf32>
    %59 = arith.addf %58, %57 : vector<256x8xf32>
    %60 = arith.divf %58, %59 : vector<256x8xf32>
    %61 = arith.mulf %55, %60 : vector<256x8xf32>
    %62 = vector.shape_cast %61 : vector<256x8xf32> to vector<16x16x8xf32>
    %c1_81 = arith.constant 1 : index
    %c1_82 = arith.constant 1 : index
    %c0_83 = arith.constant 0 : index
    %63 = vector.load %arg10[%c1_81, %c1_82, %c0_83] : memref<18x18x8xf32, #tpu.memory_space<vmem>>, vector<16x16x8xf32>
    tpu.vector_store %arg10[%c1_81, %c1_82, %c0_83], %62 {strides = array<i32>} : memref<18x18x8xf32, #tpu.memory_space<vmem>>, vector<16x16x8xf32>,
    %c0_84 = arith.constant 0 : index
    %c0_85 = arith.constant 0 : index
    %c0_86 = arith.constant 0 : index
    %64 = vector.load %arg10[%c0_84, %c0_85, %c0_86] : memref<18x18x8xf32, #tpu.memory_space<vmem>>, vector<16x16x8xf32>
    %65 = vector.shape_cast %64 : vector<16x16x8xf32> to vector<256x8xf32>
    %c0_87 = arith.constant 0 : index
    %c0_88 = arith.constant 0 : index
    %66 = vector.load %arg12[%c0_87, %c0_88] : memref<256x72xf32, #tpu.memory_space<vmem>>, vector<256x8xf32>
    tpu.vector_store %arg12[%c0_87, %c0_88], %65 {strides = array<i32>} : memref<256x72xf32, #tpu.memory_space<vmem>>, vector<256x8xf32>,
    %c0_89 = arith.constant 0 : index
    %c1_90 = arith.constant 1 : index
    %c0_91 = arith.constant 0 : index
    %67 = vector.load %arg10[%c0_89, %c1_90, %c0_91] : memref<18x18x8xf32, #tpu.memory_space<vmem>>, vector<16x16x8xf32>
    %68 = vector.shape_cast %67 : vector<16x16x8xf32> to vector<256x8xf32>
    %c0_92 = arith.constant 0 : index
    %c8_93 = arith.constant 8 : index
    %69 = vector.load %arg12[%c0_92, %c8_93] : memref<256x72xf32, #tpu.memory_space<vmem>>, vector<256x8xf32>
    tpu.vector_store %arg12[%c0_92, %c8_93], %68 {strides = array<i32>} : memref<256x72xf32, #tpu.memory_space<vmem>>, vector<256x8xf32>,
    %c0_94 = arith.constant 0 : index
    %c2_95 = arith.constant 2 : index
    %c0_96 = arith.constant 0 : index
    %70 = vector.load %arg10[%c0_94, %c2_95, %c0_96] : memref<18x18x8xf32, #tpu.memory_space<vmem>>, vector<16x16x8xf32>
    %71 = vector.shape_cast %70 : vector<16x16x8xf32> to vector<256x8xf32>
    %c0_97 = arith.constant 0 : index
    %c16_98 = arith.constant 16 : index
    %72 = vector.load %arg12[%c0_97, %c16_98] : memref<256x72xf32, #tpu.memory_space<vmem>>, vector<256x8xf32>
    tpu.vector_store %arg12[%c0_97, %c16_98], %71 {strides = array<i32>} : memref<256x72xf32, #tpu.memory_space<vmem>>, vector<256x8xf32>,
    %c1_99 = arith.constant 1 : index
    %c0_100 = arith.constant 0 : index
    %c0_101 = arith.constant 0 : index
    %73 = vector.load %arg10[%c1_99, %c0_100, %c0_101] : memref<18x18x8xf32, #tpu.memory_space<vmem>>, vector<16x16x8xf32>
    %74 = vector.shape_cast %73 : vector<16x16x8xf32> to vector<256x8xf32>
    %c0_102 = arith.constant 0 : index
    %c24_103 = arith.constant 24 : index
    %75 = vector.load %arg12[%c0_102, %c24_103] : memref<256x72xf32, #tpu.memory_space<vmem>>, vector<256x8xf32>
    tpu.vector_store %arg12[%c0_102, %c24_103], %74 {strides = array<i32>} : memref<256x72xf32, #tpu.memory_space<vmem>>, vector<256x8xf32>,
    %c1_104 = arith.constant 1 : index
    %c1_105 = arith.constant 1 : index
    %c0_106 = arith.constant 0 : index
    %76 = vector.load %arg10[%c1_104, %c1_105, %c0_106] : memref<18x18x8xf32, #tpu.memory_space<vmem>>, vector<16x16x8xf32>
    %77 = vector.shape_cast %76 : vector<16x16x8xf32> to vector<256x8xf32>
    %c0_107 = arith.constant 0 : index
    %c32_108 = arith.constant 32 : index
    %78 = vector.load %arg12[%c0_107, %c32_108] : memref<256x72xf32, #tpu.memory_space<vmem>>, vector<256x8xf32>
    tpu.vector_store %arg12[%c0_107, %c32_108], %77 {strides = array<i32>} : memref<256x72xf32, #tpu.memory_space<vmem>>, vector<256x8xf32>,
    %c1_109 = arith.constant 1 : index
    %c2_110 = arith.constant 2 : index
    %c0_111 = arith.constant 0 : index
    %79 = vector.load %arg10[%c1_109, %c2_110, %c0_111] : memref<18x18x8xf32, #tpu.memory_space<vmem>>, vector<16x16x8xf32>
    %80 = vector.shape_cast %79 : vector<16x16x8xf32> to vector<256x8xf32>
    %c0_112 = arith.constant 0 : index
    %c40 = arith.constant 40 : index
    %81 = vector.load %arg12[%c0_112, %c40] : memref<256x72xf32, #tpu.memory_space<vmem>>, vector<256x8xf32>
    tpu.vector_store %arg12[%c0_112, %c40], %80 {strides = array<i32>} : memref<256x72xf32, #tpu.memory_space<vmem>>, vector<256x8xf32>,
    %c2_113 = arith.constant 2 : index
    %c0_114 = arith.constant 0 : index
    %c0_115 = arith.constant 0 : index
    %82 = vector.load %arg10[%c2_113, %c0_114, %c0_115] : memref<18x18x8xf32, #tpu.memory_space<vmem>>, vector<16x16x8xf32>
    %83 = vector.shape_cast %82 : vector<16x16x8xf32> to vector<256x8xf32>
    %c0_116 = arith.constant 0 : index
    %c48 = arith.constant 48 : index
    %84 = vector.load %arg12[%c0_116, %c48] : memref<256x72xf32, #tpu.memory_space<vmem>>, vector<256x8xf32>
    tpu.vector_store %arg12[%c0_116, %c48], %83 {strides = array<i32>} : memref<256x72xf32, #tpu.memory_space<vmem>>, vector<256x8xf32>,
    %c2_117 = arith.constant 2 : index
    %c1_118 = arith.constant 1 : index
    %c0_119 = arith.constant 0 : index
    %85 = vector.load %arg10[%c2_117, %c1_118, %c0_119] : memref<18x18x8xf32, #tpu.memory_space<vmem>>, vector<16x16x8xf32>
    %86 = vector.shape_cast %85 : vector<16x16x8xf32> to vector<256x8xf32>
    %c0_120 = arith.constant 0 : index
    %c56 = arith.constant 56 : index
    %87 = vector.load %arg12[%c0_120, %c56] : memref<256x72xf32, #tpu.memory_space<vmem>>, vector<256x8xf32>
    tpu.vector_store %arg12[%c0_120, %c56], %86 {strides = array<i32>} : memref<256x72xf32, #tpu.memory_space<vmem>>, vector<256x8xf32>,
    %c2_121 = arith.constant 2 : index
    %c2_122 = arith.constant 2 : index
    %c0_123 = arith.constant 0 : index
    %88 = vector.load %arg10[%c2_121, %c2_122, %c0_123] : memref<18x18x8xf32, #tpu.memory_space<vmem>>, vector<16x16x8xf32>
    %89 = vector.shape_cast %88 : vector<16x16x8xf32> to vector<256x8xf32>
    %c0_124 = arith.constant 0 : index
    %c64 = arith.constant 64 : index
    %90 = vector.load %arg12[%c0_124, %c64] : memref<256x72xf32, #tpu.memory_space<vmem>>, vector<256x8xf32>
    tpu.vector_store %arg12[%c0_124, %c64], %89 {strides = array<i32>} : memref<256x72xf32, #tpu.memory_space<vmem>>, vector<256x8xf32>,
    %c0_125 = arith.constant 0 : index
    %c0_126 = arith.constant 0 : index
    %91 = vector.load %arg12[%c0_125, %c0_126] : memref<256x72xf32, #tpu.memory_space<vmem>>, vector<256x72xf32>
    %92 = arith.truncf %91 : vector<256x72xf32> to vector<256x72xbf16>
    %c0_127 = arith.constant 0 : index
    %c0_128 = arith.constant 0 : index
    %93 = vector.load %arg4[%c0_127, %c0_128] : memref<72x4xbf16, #tpu.memory_space<vmem>>, vector<72x4xbf16>
    %cst_129 = arith.constant dense<0.000000e+00> : vector<256x4xf32>
    %94 = tpu.matmul %92, %93, %cst_129 {dimension_numbers = #tpu.dot_dimension_numbers<[1], [0], [0], [1], [0, 0, 1, 1], [], []>} : vector<256x72xbf16>, vector<72x4xbf16>, vector<256x4xf32> -> vector<256x4xf32>
    %c0_130 = arith.constant 0 : index
    %c0_131 = arith.constant 0 : index
    %95 = vector.load %arg5[%c0_130, %c0_131] : memref<2x4xf32, #tpu.memory_space<vmem>>, vector<1x4xf32>
    %96 = vector.broadcast %95 : vector<1x4xf32> to vector<256x4xf32>
    %97 = arith.mulf %94, %96 : vector<256x4xf32>
    %c1_132 = arith.constant 1 : index
    %c0_133 = arith.constant 0 : index
    %98 = vector.load %arg5[%c1_132, %c0_133] : memref<2x4xf32, #tpu.memory_space<vmem>>, vector<1x4xf32>
    %99 = vector.broadcast %98 : vector<1x4xf32> to vector<256x4xf32>
    %100 = arith.addf %97, %99 : vector<256x4xf32>
    %101 = arith.truncf %32 : vector<256x4xf32> to vector<256x4xbf16>
    %c0_134 = arith.constant 0 : index
    %c0_135 = arith.constant 0 : index
    %102 = vector.load %arg6[%c0_134, %c0_135] : memref<4x4xbf16, #tpu.memory_space<vmem>>, vector<4x4xbf16>
    %cst_136 = arith.constant dense<0.000000e+00> : vector<256x4xf32>
    %103 = tpu.matmul %101, %102, %cst_136 {dimension_numbers = #tpu.dot_dimension_numbers<[1], [0], [0], [1], [0, 0, 1, 1], [], []>} : vector<256x4xbf16>, vector<4x4xbf16>, vector<256x4xf32> -> vector<256x4xf32>
    %c0_137 = arith.constant 0 : index
    %c0_138 = arith.constant 0 : index
    %104 = vector.load %arg7[%c0_137, %c0_138] : memref<2x4xf32, #tpu.memory_space<vmem>>, vector<1x4xf32>
    %105 = vector.broadcast %104 : vector<1x4xf32> to vector<256x4xf32>
    %106 = arith.mulf %103, %105 : vector<256x4xf32>
    %c1_139 = arith.constant 1 : index
    %c0_140 = arith.constant 0 : index
    %107 = vector.load %arg7[%c1_139, %c0_140] : memref<2x4xf32, #tpu.memory_space<vmem>>, vector<1x4xf32>
    %108 = vector.broadcast %107 : vector<1x4xf32> to vector<256x4xf32>
    %109 = arith.addf %106, %108 : vector<256x4xf32>
    %110 = arith.addf %100, %109 : vector<256x4xf32>
    %111 = arith.negf %110 : vector<256x4xf32>
    %112 = math.exp %111 : vector<256x4xf32>
    %cst_141 = arith.constant 1.000000e+00 : f32
    %113 = vector.broadcast %cst_141 : f32 to vector<256x4xf32>
    %114 = arith.addf %113, %112 : vector<256x4xf32>
    %115 = arith.divf %113, %114 : vector<256x4xf32>
    %116 = arith.mulf %110, %115 : vector<256x4xf32>
    %117 = vector.shape_cast %116 : vector<256x4xf32> to vector<16x16x4xf32>
    %c0_142 = arith.constant 0 : index
    %c0_143 = arith.constant 0 : index
    %c0_144 = arith.constant 0 : index
    %c0_145 = arith.constant 0 : index
    %118 = vector.load %arg8[%c0_142, %c0_143, %c0_144, %c0_145] : memref<1x16x16x4xf32, #tpu.memory_space<vmem>>, vector<1x16x16x4xf32>
    %119 = vector.shape_cast %118 : vector<1x16x16x4xf32> to vector<16x16x4xf32>
    %120 = vector.shape_cast %117 : vector<16x16x4xf32> to vector<1x16x16x4xf32>
    tpu.vector_store %arg8[%c0_142, %c0_143, %c0_144, %c0_145], %120 {strides = array<i32>} : memref<1x16x16x4xf32, #tpu.memory_space<vmem>>, vector<1x16x16x4xf32>,
    return
  }
  func.func @transform_0(%arg0: i32) -> (i32, i32, i32, i32) {
    %c0_i32 = arith.constant 0 : i32
    %c0_i32_0 = arith.constant 0 : i32
    %c0_i32_1 = arith.constant 0 : i32
    %c0_i32_2 = arith.constant 0 : i32
    return %arg0, %c0_i32, %c0_i32_0, %c0_i32_1 : i32, i32, i32, i32
  }
  func.func @transform_1(%arg0: i32) -> (i32, i32) {
    %c0_i32 = arith.constant 0 : i32
    %c0_i32_0 = arith.constant 0 : i32
    %c0_i32_1 = arith.constant 0 : i32
    return %c0_i32, %c0_i32_0 : i32, i32
  }
  func.func @transform_2(%arg0: i32) -> (i32, i32) {
    %c0_i32 = arith.constant 0 : i32
    %c0_i32_0 = arith.constant 0 : i32
    %c0_i32_1 = arith.constant 0 : i32
    return %c0_i32, %c0_i32_0 : i32, i32
  }
  func.func @transform_3(%arg0: i32) -> (i32, i32) {
    %c0_i32 = arith.constant 0 : i32
    %c0_i32_0 = arith.constant 0 : i32
    %c0_i32_1 = arith.constant 0 : i32
    return %c0_i32, %c0_i32_0 : i32, i32
  }
  func.func @transform_4(%arg0: i32) -> (i32, i32) {
    %c0_i32 = arith.constant 0 : i32
    %c0_i32_0 = arith.constant 0 : i32
    %c0_i32_1 = arith.constant 0 : i32
    return %c0_i32, %c0_i32_0 : i32, i32
  }
  func.func @transform_5(%arg0: i32) -> (i32, i32) {
    %c0_i32 = arith.constant 0 : i32
    %c0_i32_0 = arith.constant 0 : i32
    %c0_i32_1 = arith.constant 0 : i32
    return %c0_i32, %c0_i32_0 : i32, i32
  }
  func.func @transform_6(%arg0: i32) -> (i32, i32) {
    %c0_i32 = arith.constant 0 : i32
    %c0_i32_0 = arith.constant 0 : i32
    %c0_i32_1 = arith.constant 0 : i32
    return %c0_i32, %c0_i32_0 : i32, i32
  }
  func.func @transform_7(%arg0: i32) -> (i32, i32, i32, i32) {
    %c0_i32 = arith.constant 0 : i32
    %c0_i32_0 = arith.constant 0 : i32
    %c0_i32_1 = arith.constant 0 : i32
    %c0_i32_2 = arith.constant 0 : i32
    return %arg0, %c0_i32, %c0_i32_0, %c0_i32_1 : i32, i32, i32, i32
  }
}

</mosaic_0001>

<bundles_post_ra>
// kernel: tpu_custom_call.1
= control target key start
LH: loop header
LB: loop body
LE: loop exit
PB: predicated region body
PF: predicated region fallthrough
CT: control target
= control target key end

     0   :  { %s5993_s24 = smov 0   ;;  %s8525_s0 = inlined_call_operand.vmem [shape: f32[2,16,16,4], index: 0, kind: input, shape index: {}]   ;;  %s8526_s1 = inlined_call_operand.vmem [shape: bf16[36,8], index: 1, kind: input, shape index: {}]   ;;  %s8527_s2 = inlined_call_operand.vmem [shape: f32[2,8], index: 2, kind: input, shape index: {}]   ;;  %s8528_s3 = inlined_call_operand.vmem [shape: bf16[72,4], index: 3, kind: input, shape index: {}]   ;;  %s8529_s4 = inlined_call_operand.vmem [shape: f32[2,4], index: 4, kind: input, shape index: {}]   ;;  %s8530_s5 = inlined_call_operand.vmem [shape: bf16[4,4], index: 5, kind: input, shape index: {}]   ;;  %s8531_s6 = inlined_call_operand.vmem [shape: f32[2,4], index: 6, kind: input, shape index: {}]   ;;  %s8532_s7 = inlined_call_operand.vmem [shape: f32[2,16,16,4], index: 7, kind: output, shape index: {}]  }
   0x1 LB: > { %s5286_s25 = sadd.s32 4294967295, %s5938_s24   ;;  %p5290_p0 = scmp.ge.s32.totalorder %s5938_s24, 1  ;;  %s5938_s24 = sphi %s5993_s24, %s17_s24  }
   0x2   : > { %p237_p1 = scmp.lt.s32.totalorder %s5938_s24, 3 }
   0x4   : > { %p238_p2 = pnand %p5290_p0, %p237_p1 }
   0x6   : > { %241 = sbr.rel (%p238_p2) target bundleno = 1733 (0x6c5), region = 48 }
   0xb   : > { %vm280_vm0 = vcmask 31744   ;;  %vm289_vm1 = vcmask 24576   ;;  %p6003_p3 = scmp.lt.s32.totalorder %s5286_s25, 1  ;;  %vm283_vm2 = vcmask 25600   ;;  %v8533_v0 = vmov 0.0   ;;  %s5941_s8 = smov 4  }
   0xc   : > { %281 = vst.msk [vmem:[#allocation2] sm:$0xff] %vm280_vm0, %v8533_v0  ;;  %282 = vst.msk [vmem:[#allocation2 + $0x8] sm:$0xff] %vm280_vm0, %v8533_v0  ;;  %s5942_s9 = smov 8   ;;  %vm661_vm3 = vcmask 64544   ;;  %s5943_s10 = smov 12   ;;  %vm854_vm4 = vcmask 97344  }
   0xd   : > { %286 = vst.msk [vmem:[#allocation2 + $0x198] sm:$0xff] %vm280_vm0, %v8533_v0  ;;  %287 = vst.msk [vmem:[#allocation2 + $0x1a0] sm:$0xff] %vm280_vm0, %v8533_v0  ;;  %s8628_s25 = smov (!%p6003_p3, %s5286_s25), 1  ;;  %s5944_s11 = smov 16   ;;  %vm1047_vm5 = vcmask 130144   ;;  %vm1240_vm6 = vcmask 162944  }
   0xe   : > { %291 = vst.msk [vmem:[#allocation2 + $0x18] sm:$0x1] %vm289_vm1, %v8533_v0  ;;  %292 = vst.msk [vmem:[#allocation2 + $0x30] sm:$0x1] %vm289_vm1, %v8533_v0  ;;  %s5423_s27 = sshll.u32 %s8628_s25, 8  ;;  %s5945_s12 = smov 20  }
   0xf   : > { %293 = vst.msk [vmem:[#allocation2 + $0x48] sm:$0x1] %vm289_vm1, %v8533_v0  ;;  %294 = vst.msk [vmem:[#allocation2 + $0x60] sm:$0x1] %vm289_vm1, %v8533_v0  ;;  %s6103_s30 = scalar_lea.vmem %s8525_s0, %s5423_s27  ;;  %s5946_s13 = smov 24   ;;  %vm2163_vm7 = vcmask 1041408  }
  0x10   : > { %295 = vst.msk [vmem:[#allocation2 + $0x78] sm:$0x1] %vm289_vm1, %v8533_v0  ;;  %296 = vst.msk [vmem:[#allocation2 + $0x90] sm:$0x1] %vm289_vm1, %v8533_v0  ;;  %v372_v1 = vld [vmem:[%s6103_s30] sm:$0xff]  ;;  %v373_v2 = vld [vmem:[%s6103_s30 + $0x8] sm:$0xff] }
  0x11   : > { %297 = vst.msk [vmem:[#allocation2 + $0xa8] sm:$0x1] %vm289_vm1, %v8533_v0  ;;  %298 = vst.msk [vmem:[#allocation2 + $0xc0] sm:$0x1] %vm289_vm1, %v8533_v0  ;;  %v374_v3 = vld [vmem:[%s6103_s30 + $0x10] sm:$0xff]  ;;  %v375_v4 = vld [vmem:[%s6103_s30 + $0x18] sm:$0xff] }
  0x12   : > { %299 = vst.msk [vmem:[#allocation2 + $0xd8] sm:$0x1] %vm289_vm1, %v8533_v0  ;;  %300 = vst.msk [vmem:[#allocation2 + $0xf0] sm:$0x1] %vm289_vm1, %v8533_v0  ;;  %v376_v5 = vld [vmem:[%s6103_s30 + $0x20] sm:$0xff]  ;;  %v377_v6 = vld [vmem:[%s6103_s30 + $0x28] sm:$0xff] }
  0x13   : > { %301 = vst.msk [vmem:[#allocation2 + $0x108] sm:$0x1] %vm289_vm1, %v8533_v0  ;;  %302 = vst.msk [vmem:[#allocation2 + $0x120] sm:$0x1] %vm289_vm1, %v8533_v0  ;;  %v501_v7 = vld [vmem:[#allocation2 + $0x1] sm:$0xff]  ;;  %v378_v9 = vld [vmem:[%s6103_s30 + $0x30] sm:$0xff] }
  0x14   : > { %303 = vst.msk [vmem:[#allocation2 + $0x138] sm:$0x1] %vm289_vm1, %v8533_v0  ;;  %304 = vst.msk [vmem:[#allocation2 + $0x150] sm:$0x1] %vm289_vm1, %v8533_v0  ;;  %565 = vrot.lane.b32.xlu0 %v501_v7, %s5941_s8  ;;  %v379_v10 = vld [vmem:[%s6103_s30 + $0x38] sm:$0xff]  ;;  %v380_v11 = vld [vmem:[%s6103_s30 + $0x40] sm:$0xff] }
  0x15   : > { %305 = vst.msk [vmem:[#allocation2 + $0x168] sm:$0x1] %vm289_vm1, %v8533_v0  ;;  %306 = vst.msk [vmem:[#allocation2 + $0x180] sm:$0x1] %vm289_vm1, %v8533_v0  ;;  %v381_v12 = vld [vmem:[%s6103_s30 + $0x48] sm:$0xff]  ;;  %v382_v13 = vld [vmem:[%s6103_s30 + $0x50] sm:$0xff] }
  0x16   : > { %309 = vst.msk [vmem:[#allocation2 + $0x29] sm:$0x1] %vm289_vm1, %v8533_v0  ;;  %310 = vst.msk [vmem:[#allocation2 + $0x41] sm:$0x1] %vm289_vm1, %v8533_v0  ;;  %v383_v14 = vld [vmem:[%s6103_s30 + $0x58] sm:$0xff]  ;;  %v384_v15 = vld [vmem:[%s6103_s30 + $0x60] sm:$0xff] }
  0x17   : > { %311 = vst.msk [vmem:[#allocation2 + $0x59] sm:$0x1] %vm289_vm1, %v8533_v0  ;;  %312 = vst.msk [vmem:[#allocation2 + $0x71] sm:$0x1] %vm289_vm1, %v8533_v0  ;;  %v385_v16 = vld [vmem:[%s6103_s30 + $0x68] sm:$0xff]  ;;  %v386_v17 = vld [vmem:[%s6103_s30 + $0x70] sm:$0xff] }
  0x18   : > { %313 = vst.msk [vmem:[#allocation2 + $0x89] sm:$0x1] %vm289_vm1, %v8533_v0  ;;  %314 = vst.msk [vmem:[#allocation2 + $0xa1] sm:$0x1] %vm289_vm1, %v8533_v0  ;;  %v387_v18 = vld [vmem:[%s6103_s30 + $0x78] sm:$0xff]  ;;  %v388_v19 = vld [vmem:[%s6103_s30 + $0x80] sm:$0xff] }
  0x19   : > { %315 = vst.msk [vmem:[#allocation2 + $0xb9] sm:$0x1] %vm289_vm1, %v8533_v0  ;;  %316 = vst.msk [vmem:[#allocation2 + $0xd1] sm:$0x1] %vm289_vm1, %v8533_v0  ;;  %v389_v20 = vld [vmem:[%s6103_s30 + $0x88] sm:$0xff]  ;;  %v390_v21 = vld [vmem:[%s6103_s30 + $0x90] sm:$0xff] }
  0x1a   : > { %317 = vst.msk [vmem:[#allocation2 + $0xe9] sm:$0x1] %vm289_vm1, %v8533_v0  ;;  %318 = vst.msk [vmem:[#allocation2 + $0x101] sm:$0x1] %vm289_vm1, %v8533_v0  ;;  %v391_v22 = vld [vmem:[%s6103_s30 + $0x98] sm:$0xff]  ;;  %v392_v23 = vld [vmem:[%s6103_s30 + $0xa0] sm:$0xff] }
  0x1b   : > { %319 = vst.msk [vmem:[#allocation2 + $0x119] sm:$0x1] %vm289_vm1, %v8533_v0  ;;  %320 = vst.msk [vmem:[#allocation2 + $0x131] sm:$0x1] %vm289_vm1, %v8533_v0  ;;  %v393_v24 = vld [vmem:[%s6103_s30 + $0xa8] sm:$0xff]  ;;  %v394_v28 = vld [vmem:[%s6103_s30 + $0xb0] sm:$0xff] }
  0x1c   : > { %321 = vst.msk [vmem:[#allocation2 + $0x149] sm:$0x1] %vm289_vm1, %v8533_v0  ;;  %322 = vst.msk [vmem:[#allocation2 + $0x161] sm:$0x1] %vm289_vm1, %v8533_v0  ;;  %v395_v29 = vld [vmem:[%s6103_s30 + $0xb8] sm:$0xff]  ;;  %v396_v33 = vld [vmem:[%s6103_s30 + $0xc0] sm:$0xff] }
  0x1d   : > { %323 = vst.msk [vmem:[#allocation2 + $0x179] sm:$0x1] %vm289_vm1, %v8533_v0  ;;  %324 = vst.msk [vmem:[#allocation2 + $0x191] sm:$0x1] %vm289_vm1, %v8533_v0  ;;  %v397_v34 = vld [vmem:[%s6103_s30 + $0xc8] sm:$0xff]  ;;  %v398_v35 = vld [vmem:[%s6103_s30 + $0xd0] sm:$0xff] }
  0x1e   : > { %284 = vst.msk [vmem:[#allocation2 + $0x10] sm:$0x3] %vm283_vm2, %v8533_v0  ;;  %288 = vst.msk [vmem:[#allocation2 + $0x1a8] sm:$0x3] %vm283_vm2, %v8533_v0  ;;  %v399_v36 = vld [vmem:[%s6103_s30 + $0xd8] sm:$0xff]  ;;  %v400_v37 = vld [vmem:[%s6103_s30 + $0xe0] sm:$0xff] }
  0x1f   : > { %290 = vst.msk [vmem:[#allocation2] sm:$0x1] %vm289_vm1, %v8533_v0  ;;  %307 = vst.msk [vmem:[#allocation2 + $0x198] sm:$0x1] %vm289_vm1, %v8533_v0  ;;  %v401_v38 = vld [vmem:[%s6103_s30 + $0xe8] sm:$0xff]  ;;  %s5947_s14 = smov 28  }
  0x20   : > { %308 = vst.msk [vmem:[#allocation2 + $0x11] sm:$0x1] %vm289_vm1, %v8533_v0  ;;  %325 = vst.msk [vmem:[#allocation2 + $0x1a9] sm:$0x1] %vm289_vm1, %v8533_v0  ;;  %v438_v48 = vld [vmem:[#allocation2 + $0x8] sm:$0xff]  ;;  %s5948_s19 = smov 32  }
  0x21   : > { %405 = vst.msk [vmem:[#allocation2 + $0x19] sm:$0xff] %vm280_vm0, %v372_v1  ;;  %406 = vst.msk [vmem:[#allocation2 + $0x21] sm:$0xff] %vm280_vm0, %v373_v2  ;;  %vm1433_vm8 = vcmask 195744   ;;  %vm1627_vm9 = vcmask 228544   ;;  %vm1820_vm10 = vcmask 261344   ;;  %vm2013_vm11 = vcmask 294144  }
  0x22   : > { %407 = vst.msk [vmem:[#allocation2 + $0x31] sm:$0xff] %vm280_vm0, %v374_v3  ;;  %408 = vst.msk [vmem:[#allocation2 + $0x39] sm:$0xff] %vm280_vm0, %v375_v4  ;;  %vm2114_vm12 = vcmask 293888   ;;  %vm326_vm13 = vcmask 64512   ;;  %vm335_vm14 = vcmask 57344   ;;  %vm329_vm15 = vcmask 58368  }
  0x23   : > { %409 = vst.msk [vmem:[#allocation2 + $0x49] sm:$0xff] %vm280_vm0, %v376_v5  ;;  %410 = vst.msk [vmem:[#allocation2 + $0x51] sm:$0xff] %vm280_vm0, %v377_v6  ;;  %vm2883_vm1 = vcmask 130112   ;;  %s5949_s29 = smov 40   ;;  %vm4401_vm2 = vcmask 1043456   ;;  %s5952_s18 = smov 64  }
  0x24   : > { %411 = vst.msk [vmem:[#allocation2 + $0x61] sm:$0xff] %vm280_vm0, %v378_v9  ;;  %412 = vst.msk [vmem:[#allocation2 + $0x69] sm:$0xff] %vm280_vm0, %v379_v10 }
  0x25   : > { %v502_v8 = vld [vmem:[#allocation2 + $0x9] sm:$0xff]  ;;  %413 = vst.msk [vmem:[#allocation2 + $0x79] sm:$0xff] %vm280_vm0, %v380_v11  ;;  %414 = vst.msk [vmem:[#allocation2 + $0x81] sm:$0xff] %vm280_vm0, %v381_v12 }
  0x26   : > { %415 = vst.msk [vmem:[#allocation2 + $0x91] sm:$0xff] %vm280_vm0, %v382_v13  ;;  %416 = vst.msk [vmem:[#allocation2 + $0x99] sm:$0xff] %vm280_vm0, %v383_v14  ;;  %567 = vrot.lane.b32.xlu0 %v502_v8, %s5941_s8  ;;  %v437_v45 = vld [vmem:[#allocation2] sm:$0xff] }
  0x27   : > { %417 = vst.msk [vmem:[#allocation2 + $0xa9] sm:$0xff] %vm280_vm0, %v384_v15  ;;  %418 = vst.msk [vmem:[#allocation2 + $0xb1] sm:$0xff] %vm280_vm0, %v385_v16 }
  0x28   : > { %419 = vst.msk [vmem:[#allocation2 + $0xc1] sm:$0xff] %vm280_vm0, %v386_v17  ;;  %420 = vst.msk [vmem:[#allocation2 + $0xc9] sm:$0xff] %vm280_vm0, %v387_v18  ;;  %v6148_v25 = vld [vmem:[#allocation2 + $0x19] sm:$0xff]  ;;  %v6157_v27 = vld [vmem:[#allocation2 + $0x21] sm:$0xff] }
  0x29   : > { %421 = vst.msk [vmem:[#allocation2 + $0xd9] sm:$0xff] %vm280_vm0, %v388_v19  ;;  %422 = vst.msk [vmem:[#allocation2 + $0xe1] sm:$0xff] %vm280_vm0, %v389_v20  ;;  %v6150_v26 = vld [vmem:[#allocation2 + $0x31] sm:$0xff]  ;;  %569 = vrot.lane.b32.xlu1 %v6148_v25, %s5941_s8  ;;  %v6169_v31 = vld [vmem:[#allocation2 + $0x39] sm:$0xff] }
  0x2a   : > { %423 = vst.msk [vmem:[#allocation2 + $0xf1] sm:$0xff] %vm280_vm0, %v390_v21  ;;  %424 = vst.msk [vmem:[#allocation2 + $0xf9] sm:$0xff] %vm280_vm0, %v391_v22  ;;  %573 = vrot.lane.b32.xlu0 %v6150_v26, %s5941_s8  ;;  %v6165_v30 = vld [vmem:[#allocation2 + $0x49] sm:$0xff]  ;;  %v6186_v39 = vld [vmem:[#allocation2 + $0x51] sm:$0xff] }
  0x2b   : > { %425 = vst.msk [vmem:[#allocation2 + $0x109] sm:$0xff] %vm280_vm0, %v392_v23  ;;  %426 = vst.msk [vmem:[#allocation2 + $0x111] sm:$0xff] %vm280_vm0, %v393_v24  ;;  %v6173_v32 = vld [vmem:[#allocation2 + $0x61] sm:$0xff]  ;;  %v6197_v41 = vld [vmem:[#allocation2 + $0x69] sm:$0xff] }
  0x2c   : > { %427 = vst.msk [vmem:[#allocation2 + $0x121] sm:$0xff] %vm280_vm0, %v394_v28  ;;  %428 = vst.msk [vmem:[#allocation2 + $0x129] sm:$0xff] %vm280_vm0, %v395_v29  ;;  %v6193_v40 = vld [vmem:[#allocation2 + $0x79] sm:$0xff]  ;;  %v6205_v43 = vld [vmem:[#allocation2 + $0x81] sm:$0xff] }
  0x2d   : > { %571 = vrot.lane.b32.xlu1 %v6157_v27, %s5941_s8  ;;  %429 = vst.msk [vmem:[#allocation2 + $0x139] sm:$0xff] %vm280_vm0, %v396_v33  ;;  %430 = vst.msk [vmem:[#allocation2 + $0x141] sm:$0xff] %vm280_vm0, %v397_v34  ;;  %v6201_v42 = vld [vmem:[#allocation2 + $0x91] sm:$0xff]  ;;  %v6215_v47 = vld [vmem:[#allocation2 + $0x99] sm:$0xff] }
  0x2e   : > { %577 = vrot.lane.b32.xlu0 %v6165_v30, %s5941_s8  ;;  %431 = vst.msk [vmem:[#allocation2 + $0x151] sm:$0xff] %vm280_vm0, %v398_v35  ;;  %432 = vst.msk [vmem:[#allocation2 + $0x159] sm:$0xff] %vm280_vm0, %v399_v36  ;;  %v6209_v44 = vld [vmem:[#allocation2 + $0xa9] sm:$0xff]  ;;  %v6213_v46 = vld [vmem:[#allocation2 + $0x18] sm:$0xff] }
  0x2f   : > { %433 = vst.msk [vmem:[#allocation2 + $0x169] sm:$0xff] %vm280_vm0, %v400_v37  ;;  %434 = vst.msk [vmem:[#allocation2 + $0x171] sm:$0xff] %vm280_vm0, %v401_v38  ;;  %v6223_v49 = vld [vmem:[#allocation2 + $0x20] sm:$0xff]  ;;  %v6229_v51 = vld [vmem:[#allocation2 + $0x30] sm:$0xff] }
  0x30   : > { %469 = vst.msk [vmem:[#allocation4] sm:$0xff] %vm280_vm0, %v437_v45  ;;  %471 = vst.msk [vmem:[#allocation4 + $0x10] sm:$0xff] %vm280_vm0, %v6213_v46  ;;  %v6225_v50 = vld [vmem:[#allocation2 + $0xc1] sm:$0xff]  ;;  %v6231_v52 = vld [vmem:[#allocation2 + $0x38] sm:$0xff] }
  0x31   : > { %575 = vrot.lane.b32.xlu1 %v6169_v31, %s5941_s8  ;;  %470 = vst.msk [vmem:[#allocation4 + $0x8] sm:$0xff] %vm280_vm0, %v438_v48  ;;  %472 = vst.msk [vmem:[#allocation4 + $0x18] sm:$0xff] %vm280_vm0, %v6223_v49  ;;  %v6235_v53 = vld [vmem:[#allocation2 + $0xb1] sm:$0xff]  ;;  %v6241_v54 = vld [vmem:[#allocation2 + $0x48] sm:$0xff] }
  0x32   : > { %581 = vrot.lane.b32.xlu0 %v6173_v32, %s5941_s8  ;;  %473 = vst.msk [vmem:[#allocation4 + $0x20] sm:$0xff] %vm280_vm0, %v6229_v51  ;;  %474 = vst.msk [vmem:[#allocation4 + $0x28] sm:$0xff] %vm280_vm0, %v6231_v52  ;;  %v6243_v55 = vld [vmem:[#allocation2 + $0x50] sm:$0xff]  ;;  %v6245_v56 = vld [vmem:[#allocation2 + $0xd9] sm:$0xff] }
  0x33   : > { %475 = vst.msk [vmem:[#allocation4 + $0x30] sm:$0xff] %vm280_vm0, %v6241_v54  ;;  %476 = vst.msk [vmem:[#allocation4 + $0x38] sm:$0xff] %vm280_vm0, %v6243_v55  ;;  %v6251_v57 = vld [vmem:[#allocation2 + $0x60] sm:$0xff]  ;;  %v6253_v58 = vld [vmem:[#allocation2 + $0x68] sm:$0xff] }
  0x34   : > { %v6255_v59 = vld [vmem:[#allocation2 + $0x78] sm:$0xff]  ;;  %477 = vst.msk [vmem:[#allocation4 + $0x40] sm:$0xff] %vm280_vm0, %v6251_v57  ;;  %478 = vst.msk [vmem:[#allocation4 + $0x48] sm:$0xff] %vm280_vm0, %v6253_v58  ;;  %v6265_v60 = vld [vmem:[#allocation2 + $0x80] sm:$0xff] }
  0x35   : > { %579 = vrot.lane.b32.xlu1 %v6186_v39, %s5941_s8  ;;  %479 = vst.msk [vmem:[#allocation4 + $0x50] sm:$0xff] %vm280_vm0, %v6255_v59  ;;  %v6267_v61 = vld [vmem:[#allocation2 + $0x90] sm:$0xff]  ;;  %v6269_v62 = vld [vmem:[#allocation2 + $0x98] sm:$0xff]  ;;  %480 = vst.msk [vmem:[#allocation4 + $0x58] sm:$0xff] %vm280_vm0, %v6265_v60 }
  0x36   : > { %585 = vrot.lane.b32.xlu0 %v6193_v40, %s5941_s8  ;;  %v6271_v63 = vld [vmem:[#allocation2 + $0xc9] sm:$0xff]  ;;  %481 = vst.msk [vmem:[#allocation4 + $0x60] sm:$0xff] %vm280_vm0, %v6267_v61  ;;  %482 = vst.msk [vmem:[#allocation4 + $0x68] sm:$0xff] %vm280_vm0, %v6269_v62  ;;  %v6283_v3 = vld [vmem:[#allocation2 + $0xc0] sm:$0xff] }
  0x37   : > { %v6279_v1 = vld [vmem:[#allocation2 + $0xa8] sm:$0xff]  ;;  %v6281_v2 = vld [vmem:[#allocation2 + $0xb0] sm:$0xff]  ;;  %485 = vst.msk [vmem:[#allocation4 + $0x80] sm:$0xff] %vm280_vm0, %v6283_v3  ;;  %v6295_v5 = vld [vmem:[#allocation2 + $0xd8] sm:$0xff] }
  0x38   : > { %483 = vst.msk [vmem:[#allocation4 + $0x70] sm:$0xff] %vm280_vm0, %v6279_v1  ;;  %484 = vst.msk [vmem:[#allocation4 + $0x78] sm:$0xff] %vm280_vm0, %v6281_v2  ;;  %v6293_v4 = vld [vmem:[#allocation2 + $0xc8] sm:$0xff]  ;;  %v6297_v6 = vld [vmem:[#allocation2 + $0xe0] sm:$0xff] }
  0x39   : > { %583 = vrot.lane.b32.xlu1 %v6197_v41, %s5941_s8  ;;  %486 = vst.msk [vmem:[#allocation4 + $0x88] sm:$0xff] %vm280_vm0, %v6293_v4  ;;  %487 = vst.msk [vmem:[#allocation4 + $0x90] sm:$0xff] %vm280_vm0, %v6295_v5  ;;  %v6305_v7 = vld [vmem:[#allocation2 + $0xf0] sm:$0xff]  ;;  %v6307_v8 = vld [vmem:[#allocation2 + $0xf8] sm:$0xff] }
  0x3a   : > { %589 = vrot.lane.b32.xlu0 %v6201_v42, %s5941_s8  ;;  %488 = vst.msk [vmem:[#allocation4 + $0x98] sm:$0xff] %vm280_vm0, %v6297_v6  ;;  %v6309_v9 = vld [vmem:[#allocation2 + $0x108] sm:$0xff]  ;;  %489 = vst.msk [vmem:[#allocation4 + $0xa0] sm:$0xff] %vm280_vm0, %v6305_v7  ;;  %v6319_v10 = vld [vmem:[#allocation2 + $0x110] sm:$0xff] }
  0x3b   : > { %490 = vst.msk [vmem:[#allocation4 + $0xa8] sm:$0xff] %vm280_vm0, %v6307_v8  ;;  %491 = vst.msk [vmem:[#allocation4 + $0xb0] sm:$0xff] %vm280_vm0, %v6309_v9  ;;  %v6321_v11 = vld [vmem:[#allocation2 + $0xf1] sm:$0xff]  ;;  %v6327_v12 = vld [vmem:[#allocation2 + $0x120] sm:$0xff] }
  0x3c   : > { %492 = vst.msk [vmem:[#allocation4 + $0xb8] sm:$0xff] %vm280_vm0, %v6319_v10  ;;  %v6329_v13 = vld [vmem:[#allocation2 + $0x128] sm:$0xff]  ;;  %493 = vst.msk [vmem:[#allocation4 + $0xc0] sm:$0xff] %vm280_vm0, %v6327_v12  ;;  %v6343_v16 = vld [vmem:[#allocation2 + $0x138] sm:$0xff] }
  0x3d   : > { %587 = vrot.lane.b32.xlu1 %v6205_v43, %s5941_s8  ;;  %v6331_v14 = vld [vmem:[#allocation2 + $0xe1] sm:$0xff]  ;;  %494 = vst.msk [vmem:[#allocation4 + $0xc8] sm:$0xff] %vm280_vm0, %v6329_v13  ;;  %v6339_v15 = vld [vmem:[#allocation2 + $0x109] sm:$0xff]  ;;  %v6347_v18 = vld [vmem:[#allocation2 + $0xf9] sm:$0xff] }
  0x3e   : > { %593 = vrot.lane.b32.xlu0 %v6209_v44, %s5941_s8  ;;  %v6345_v17 = vld [vmem:[#allocation2 + $0x140] sm:$0xff]  ;;  %495 = vst.msk [vmem:[#allocation4 + $0xd0] sm:$0xff] %vm280_vm0, %v6343_v16  ;;  %v6359_v20 = vld [vmem:[#allocation2 + $0x150] sm:$0xff]  ;;  %v6361_v21 = vld [vmem:[#allocation2 + $0x158] sm:$0xff] }
  0x3f   : > { %496 = vst.msk [vmem:[#allocation4 + $0xd8] sm:$0xff] %vm280_vm0, %v6345_v17  ;;  %v6355_v19 = vld [vmem:[#allocation2 + $0x121] sm:$0xff]  ;;  %v6363_v22 = vld [vmem:[#allocation2 + $0x111] sm:$0xff]  ;;  %497 = vst.msk [vmem:[#allocation4 + $0xe0] sm:$0xff] %vm280_vm0, %v6359_v20 }
  0x40   : > { %498 = vst.msk [vmem:[#allocation4 + $0xe8] sm:$0xff] %vm280_vm0, %v6361_v21  ;;  %v6371_v23 = vld [vmem:[#allocation2 + $0x139] sm:$0xff]  ;;  %v6375_v24 = vld [vmem:[#allocation2 + $0x168] sm:$0xff]  ;;  %v6377_v28 = vld [vmem:[#allocation2 + $0x170] sm:$0xff] }
  0x41   : > { %591 = vrot.lane.b32.xlu1 %v6215_v47, %s5941_s8  ;;  %v6379_v29 = vld [vmem:[#allocation2 + $0x129] sm:$0xff]  ;;  %499 = vst.msk [vmem:[#allocation4 + $0xf0] sm:$0xff] %vm280_vm0, %v6375_v24  ;;  %500 = vst.msk [vmem:[#allocation4 + $0xf8] sm:$0xff] %vm280_vm0, %v6377_v28  ;;  %v6387_v33 = vld [vmem:[#allocation2 + $0x151] sm:$0xff] }
  0x42   : > { %597 = vrot.lane.b32.xlu0 %v6225_v50, %s5941_s8  ;;  %v6391_v34 = vld [vmem:[#allocation2 + $0x141] sm:$0xff]  ;;  %v6395_v35 = vld [vmem:[#allocation2 + $0x169] sm:$0xff]  ;;  %v403_v37 = vld [vmem:[%s6103_s30 + $0xf8] sm:$0xff] }
  0x43   : > { %8566 = vst [vmem:[#allocation6_spill] sm:$0xff] %v6391_v34  ;;  %8567 = vst [vmem:[#allocation7_spill] sm:$0xff] %v6395_v35  ;;  %v402_v36 = vld [vmem:[%s6103_s30 + $0xf0] sm:$0xff]  ;;  %v6403_v38 = vld [vmem:[#allocation2 + $0x159] sm:$0xff]  ;;  %s5950_s30 = smov 48  }
  0x44   : > { %435 = vst.msk [vmem:[#allocation2 + $0x181] sm:$0xff] %vm280_vm0, %v402_v36  ;;  %436 = vst.msk [vmem:[#allocation2 + $0x189] sm:$0xff] %vm280_vm0, %v403_v37  ;;  %v694_v45 = vld [vmem:[#allocation2 + $0x2] sm:$0xff]  ;;  %v6409_v48 = vld [vmem:[#allocation2 + $0x171] sm:$0xff] }
  0x45   : > { %595 = vrot.lane.b32.xlu1 %v6235_v53, %s5941_s8  ;;  %8568 = vst [vmem:[#allocation8_spill] sm:$0xff] %v6403_v38  ;;  %8569 = vst [vmem:[#allocation9_spill] sm:$0xff] %v6409_v48  ;;  %v6412_v0 = vld [vmem:[#allocation2 + $0x1a] sm:$0xff]  ;;  %v695_v36 = vld [vmem:[#allocation2 + $0xa] sm:$0xff] }
  0x46   : > { %601 = vrot.lane.b32.xlu0 %v6245_v56, %s5941_s8  ;;  %8570 = vst [vmem:[#allocation10_spill] sm:$0xff] %v6412_v0  ;;  %v6418_v37 = vld [vmem:[#allocation2 + $0x32] sm:$0xff] }
  0x47   : > { %8571 = vst [vmem:[#allocation11_spill] sm:$0xff] %v6418_v37 }
  0x49   : > { %599 = vrot.lane.b32.xlu1 %v6271_v63, %s5941_s8 }
  0x4a   : > { %605 = vrot.lane.b32.xlu0 %v6321_v11, %s5941_s8 }
  0x4d   : > { %603 = vrot.lane.b32.xlu1 %v6331_v14, %s5941_s8 }
  0x4e   : > { %609 = vrot.lane.b32.xlu0 %v6339_v15, %s5941_s8 }
  0x51   : > { %607 = vrot.lane.b32.xlu1 %v6347_v18, %s5941_s8 }
  0x52   : > { %613 = vrot.lane.b32.xlu0 %v6355_v19, %s5941_s8 }
  0x55   : > { %611 = vrot.lane.b32.xlu1 %v6363_v22, %s5941_s8 }
  0x56   : > { %617 = vrot.lane.b32.xlu0 %v6371_v23, %s5941_s8 }
  0x59   : > { %615 = vrot.lane.b32.xlu1 %v6379_v29, %s5941_s8 }
  0x5a   : > { %621 = vrot.lane.b32.xlu0 %v6387_v33, %s5941_s8 }
  0x5d   : > { %619 = vrot.lane.b32.xlu1 %v6391_v34, %s5941_s8 }
  0x5e   : > { %625 = vrot.lane.b32.xlu0 %v6395_v35, %s5941_s8  ;;  %v6421_v35 = vld [vmem:[#allocation2 + $0x22] sm:$0xff] }
  0x5f   : > { %8572 = vst [vmem:[#allocation12_spill] sm:$0xff] %v6421_v35 }
  0x61   : > { %623 = vrot.lane.b32.xlu1 %v6403_v38, %s5941_s8  ;;  %v6425_v38 = vld [vmem:[#allocation2 + $0x4a] sm:$0xff] }
  0x62   : > { %758 = vrot.lane.b32.xlu0 %v694_v45, %s5942_s9  ;;  %8573 = vst [vmem:[#allocation13_spill] sm:$0xff] %v6425_v38  ;;  %v6429_v45 = vld [vmem:[#allocation2 + $0x3a] sm:$0xff] }
  0x63   : > { %8574 = vst [vmem:[#allocation14_spill] sm:$0xff] %v6429_v45 }
  0x65   : > { %627 = vrot.lane.b32.xlu1 %v6409_v48, %s5941_s8  ;;  %v6509_v48 = vld [vmem:[#allocation2 + $0x12a] sm:$0xff] }
  0x66   : > { %762 = vrot.lane.b32.xlu0 %v6412_v0, %s5942_s9  ;;  %v6433_v0 = vld [vmem:[#allocation2 + $0x62] sm:$0xff]  ;;  %8594 = vst [vmem:[#allocation34_spill] sm:$0xff] %v6509_v48 }
  0x67   : > { %8575 = vst [vmem:[#allocation15_spill] sm:$0xff] %v6433_v0 }
  0x69   : > { %760 = vrot.lane.b32.xlu1 %v695_v36, %s5942_s9  ;;  %v6437_v36 = vld [vmem:[#allocation2 + $0x52] sm:$0xff] }
  0x6a   : > { %766 = vrot.lane.b32.xlu0 %v6418_v37, %s5942_s9  ;;  %8576 = vst [vmem:[#allocation16_spill] sm:$0xff] %v6437_v36  ;;  %v6441_v37 = vld [vmem:[#allocation2 + $0x7a] sm:$0xff] }
  0x6b   : > { %8577 = vst [vmem:[#allocation17_spill] sm:$0xff] %v6441_v37 }
  0x6d   : > { %764 = vrot.lane.b32.xlu1 %v6421_v35, %s5942_s9  ;;  %v6445_v35 = vld [vmem:[#allocation2 + $0x6a] sm:$0xff] }
  0x6e   : > { %770 = vrot.lane.b32.xlu0 %v6425_v38, %s5942_s9  ;;  %8578 = vst [vmem:[#allocation18_spill] sm:$0xff] %v6445_v35  ;;  %v6449_v38 = vld [vmem:[#allocation2 + $0x92] sm:$0xff] }
  0x6f   : > { %8579 = vst [vmem:[#allocation19_spill] sm:$0xff] %v6449_v38 }
  0x71   : > { %768 = vrot.lane.b32.xlu1 %v6429_v45, %s5942_s9  ;;  %v6453_v45 = vld [vmem:[#allocation2 + $0x82] sm:$0xff] }
  0x72   : > { %774 = vrot.lane.b32.xlu0 %v6433_v0, %s5942_s9  ;;  %8580 = vst [vmem:[#allocation20_spill] sm:$0xff] %v6453_v45  ;;  %v6457_v0 = vld [vmem:[#allocation2 + $0xaa] sm:$0xff] }
  0x73   : > { %8581 = vst [vmem:[#allocation21_spill] sm:$0xff] %v6457_v0 }
  0x75   : > { %772 = vrot.lane.b32.xlu1 %v6437_v36, %s5942_s9  ;;  %v6461_v36 = vld [vmem:[#allocation2 + $0x9a] sm:$0xff] }
  0x76   : > { %778 = vrot.lane.b32.xlu0 %v6441_v37, %s5942_s9  ;;  %8582 = vst [vmem:[#allocation22_spill] sm:$0xff] %v6461_v36  ;;  %v6465_v37 = vld [vmem:[#allocation2 + $0xc2] sm:$0xff] }
  0x77   : > { %8583 = vst [vmem:[#allocation23_spill] sm:$0xff] %v6465_v37 }
  0x79   : > { %776 = vrot.lane.b32.xlu1 %v6445_v35, %s5942_s9  ;;  %v6469_v35 = vld [vmem:[#allocation2 + $0xb2] sm:$0xff] }
  0x7a   : > { %782 = vrot.lane.b32.xlu0 %v6449_v38, %s5942_s9  ;;  %8584 = vst [vmem:[#allocation24_spill] sm:$0xff] %v6469_v35  ;;  %v6473_v38 = vld [vmem:[#allocation2 + $0xda] sm:$0xff] }
  0x7b   : > { %8585 = vst [vmem:[#allocation25_spill] sm:$0xff] %v6473_v38 }
  0x7d   : > { %780 = vrot.lane.b32.xlu1 %v6453_v45, %s5942_s9  ;;  %v6477_v45 = vld [vmem:[#allocation2 + $0xca] sm:$0xff] }
  0x7e   : > { %786 = vrot.lane.b32.xlu0 %v6457_v0, %s5942_s9  ;;  %8586 = vst [vmem:[#allocation26_spill] sm:$0xff] %v6477_v45  ;;  %v6481_v0 = vld [vmem:[#allocation2 + $0xf2] sm:$0xff] }
  0x7f   : > { %8587 = vst [vmem:[#allocation27_spill] sm:$0xff] %v6481_v0 }
  0x81   : > { %784 = vrot.lane.b32.xlu1 %v6461_v36, %s5942_s9  ;;  %v6485_v36 = vld [vmem:[#allocation2 + $0xe2] sm:$0xff] }
  0x82   : > { %790 = vrot.lane.b32.xlu0 %v6465_v37, %s5942_s9  ;;  %8588 = vst [vmem:[#allocation28_spill] sm:$0xff] %v6485_v36  ;;  %v6489_v37 = vld [vmem:[#allocation2 + $0x10a] sm:$0xff] }
  0x83   : > { %8589 = vst [vmem:[#allocation29_spill] sm:$0xff] %v6489_v37 }
  0x85   : > { %788 = vrot.lane.b32.xlu1 %v6469_v35, %s5942_s9  ;;  %v6493_v35 = vld [vmem:[#allocation2 + $0xfa] sm:$0xff] }
  0x86   : > { %794 = vrot.lane.b32.xlu0 %v6473_v38, %s5942_s9  ;;  %8590 = vst [vmem:[#allocation30_spill] sm:$0xff] %v6493_v35  ;;  %v6497_v38 = vld [vmem:[#allocation2 + $0x122] sm:$0xff] }
  0x87   : > { %8591 = vst [vmem:[#allocation31_spill] sm:$0xff] %v6497_v38 }
  0x89   : > { %792 = vrot.lane.b32.xlu1 %v6477_v45, %s5942_s9  ;;  %v6501_v45 = vld [vmem:[#allocation2 + $0x112] sm:$0xff] }
  0x8a   : > { %798 = vrot.lane.b32.xlu0 %v6481_v0, %s5942_s9  ;;  %8592 = vst [vmem:[#allocation32_spill] sm:$0xff] %v6501_v45  ;;  %v6505_v0 = vld [vmem:[#allocation2 + $0x13a] sm:$0xff] }
  0x8b   : > { %8593 = vst [vmem:[#allocation33_spill] sm:$0xff] %v6505_v0 }
  0x8d   : > { %796 = vrot.lane.b32.xlu1 %v6485_v36, %s5942_s9  ;;  %v566_v36 = vpop.permute.xlu0 %565 }
  0x8e   : > { %802 = vrot.lane.b32.xlu0 %v6489_v37, %s5942_s9  ;;  %662 = vst.msk [vmem:[#allocation4] sm:$0xff] %vm661_vm3, %v566_v36  ;;  %v6518_v37 = vld [vmem:[#allocation2 + $0x142] sm:$0xff]  ;;  %v6524_v36 = vld [vmem:[#allocation2 + $0x16a] sm:$0xff] }
  0x8f   : > { %8595 = vst [vmem:[#allocation35_spill] sm:$0xff] %v6518_v37 }
  0x91   : > { %800 = vrot.lane.b32.xlu1 %v6493_v35, %s5942_s9  ;;  %v6514_v35 = vld [vmem:[#allocation2 + $0x152] sm:$0xff] }
  0x92   : > { %806 = vrot.lane.b32.xlu0 %v6497_v38, %s5942_s9 }
  0x95   : > { %804 = vrot.lane.b32.xlu1 %v6501_v45, %s5942_s9  ;;  %v6528_v45 = vld [vmem:[#allocation2 + $0x15a] sm:$0xff] }
  0x96   : > { %810 = vrot.lane.b32.xlu0 %v6505_v0, %s5942_s9 }
  0x98   : > { %v568_v38 = vpop.permute.xlu0 %567 }
  0x99   : > { %808 = vrot.lane.b32.xlu1 %v6509_v48, %s5942_s9  ;;  %663 = vst.msk [vmem:[#allocation4 + $0x8] sm:$0xff] %vm661_vm3, %v568_v38  ;;  %v6536_v38 = vld [vmem:[#allocation2 + $0x172] sm:$0xff] }
  0x9a   : > { %814 = vrot.lane.b32.xlu0 %v6514_v35, %s5942_s9 }
  0x9b   : > { %v570_v34 = vpop.permute.xlu1 %569 }
  0x9c   : > { %664 = vst.msk [vmem:[#allocation4 + $0x10] sm:$0xff] %vm661_vm3, %v570_v34  ;;  %v574_v0 = vpop.permute.xlu0 %573 }
  0x9d   : > { %812 = vrot.lane.b32.xlu1 %v6518_v37, %s5942_s9  ;;  %666 = vst.msk [vmem:[#allocation4 + $0x20] sm:$0xff] %vm661_vm3, %v574_v0 }
  0x9e   : > { %818 = vrot.lane.b32.xlu0 %v6524_v36, %s5942_s9 }
  0x9f   : > { %v572_v48 = vpop.permute.xlu1 %571 }
  0xa0   : > { %665 = vst.msk [vmem:[#allocation4 + $0x18] sm:$0xff] %vm661_vm3, %v572_v48  ;;  %v578_v34 = vpop.permute.xlu0 %577 }
  0xa1   : > { %816 = vrot.lane.b32.xlu1 %v6528_v45, %s5942_s9  ;;  %668 = vst.msk [vmem:[#allocation4 + $0x30] sm:$0xff] %vm661_vm3, %v578_v34 }
  0xa2   : > { %951 = vrot.lane.b32.xlu0 %v6213_v46, %s5943_s10 }
  0xa3   : > { %v576_v37 = vpop.permute.xlu1 %575 }
  0xa4   : > { %667 = vst.msk [vmem:[#allocation4 + $0x28] sm:$0xff] %vm661_vm3, %v576_v37  ;;  %v582_v0 = vpop.permute.xlu0 %581 }
  0xa5   : > { %820 = vrot.lane.b32.xlu1 %v6536_v38, %s5942_s9  ;;  %670 = vst.msk [vmem:[#allocation4 + $0x40] sm:$0xff] %vm661_vm3, %v582_v0 }
  0xa6   : > { %955 = vrot.lane.b32.xlu0 %v6229_v51, %s5943_s10 }
  0xa7   : > { %v580_v48 = vpop.permute.xlu1 %579 }
  0xa8   : > { %669 = vst.msk [vmem:[#allocation4 + $0x38] sm:$0xff] %vm661_vm3, %v580_v48  ;;  %v586_v34 = vpop.permute.xlu0 %585 }
  0xa9   : > { %953 = vrot.lane.b32.xlu1 %v6223_v49, %s5943_s10  ;;  %672 = vst.msk [vmem:[#allocation4 + $0x50] sm:$0xff] %vm661_vm3, %v586_v34 }
  0xaa   : > { %959 = vrot.lane.b32.xlu0 %v6241_v54, %s5943_s10 }
  0xab   : > { %v584_v46 = vpop.permute.xlu1 %583 }
  0xac   : > { %671 = vst.msk [vmem:[#allocation4 + $0x48] sm:$0xff] %vm661_vm3, %v584_v46  ;;  %v590_v37 = vpop.permute.xlu0 %589 }
  0xad   : > { %957 = vrot.lane.b32.xlu1 %v6231_v52, %s5943_s10  ;;  %674 = vst.msk [vmem:[#allocation4 + $0x60] sm:$0xff] %vm661_vm3, %v590_v37 }
  0xae   : > { %963 = vrot.lane.b32.xlu0 %v6251_v57, %s5943_s10 }
  0xaf   : > { %v588_v0 = vpop.permute.xlu1 %587 }
  0xb0   : > { %673 = vst.msk [vmem:[#allocation4 + $0x58] sm:$0xff] %vm661_vm3, %v588_v0  ;;  %v594_v49 = vpop.permute.xlu0 %593 }
  0xb1   : > { %961 = vrot.lane.b32.xlu1 %v6243_v55, %s5943_s10  ;;  %676 = vst.msk [vmem:[#allocation4 + $0x70] sm:$0xff] %vm661_vm3, %v594_v49 }
  0xb2   : > { %967 = vrot.lane.b32.xlu0 %v6255_v59, %s5943_s10 }
  0xb3   : > { %v592_v48 = vpop.permute.xlu1 %591 }
  0xb4   : > { %675 = vst.msk [vmem:[#allocation4 + $0x68] sm:$0xff] %vm661_vm3, %v592_v48  ;;  %v598_v34 = vpop.permute.xlu0 %597 }
  0xb5   : > { %965 = vrot.lane.b32.xlu1 %v6253_v58, %s5943_s10  ;;  %678 = vst.msk [vmem:[#allocation4 + $0x80] sm:$0xff] %vm661_vm3, %v598_v34 }
  0xb6   : > { %971 = vrot.lane.b32.xlu0 %v6267_v61, %s5943_s10 }
  0xb7   : > { %v596_v46 = vpop.permute.xlu1 %595 }
  0xb8   : > { %677 = vst.msk [vmem:[#allocation4 + $0x78] sm:$0xff] %vm661_vm3, %v596_v46  ;;  %v602_v37 = vpop.permute.xlu0 %601  ;;  %v918_v46 = vld [vmem:[#allocation2 + $0x188] sm:$0xff] }
  0xb9   : > { %969 = vrot.lane.b32.xlu1 %v6265_v60, %s5943_s10  ;;  %680 = vst.msk [vmem:[#allocation4 + $0x90] sm:$0xff] %vm661_vm3, %v602_v37 }
  0xba   : > { %975 = vrot.lane.b32.xlu0 %v6279_v1, %s5943_s10 }
  0xbb   : > { %v600_v0 = vpop.permute.xlu1 %599 }
  0xbc   : > { %679 = vst.msk [vmem:[#allocation4 + $0x88] sm:$0xff] %vm661_vm3, %v600_v0  ;;  %v606_v49 = vpop.permute.xlu0 %605 }
  0xbd   : > { %973 = vrot.lane.b32.xlu1 %v6269_v62, %s5943_s10  ;;  %682 = vst.msk [vmem:[#allocation4 + $0xa0] sm:$0xff] %vm661_vm3, %v606_v49 }
  0xbe   : > { %979 = vrot.lane.b32.xlu0 %v6283_v3, %s5943_s10 }
  0xbf   : > { %v604_v61 = vpop.permute.xlu1 %603 }
  0xc0   : > { %681 = vst.msk [vmem:[#allocation4 + $0x98] sm:$0xff] %vm661_vm3, %v604_v61  ;;  %v610_v48 = vpop.permute.xlu0 %609  ;;  %v8597_v61 = vld [vmem:[#allocation7_spill] sm:$0xff] }
  0xc1   : > { %977 = vrot.lane.b32.xlu1 %v6281_v2, %s5943_s10  ;;  %684 = vst.msk [vmem:[#allocation4 + $0xb0] sm:$0xff] %vm661_vm3, %v610_v48  ;;  %v8598_v48 = vld [vmem:[#allocation8_spill] sm:$0xff] }
  0xc2   : > { %983 = vrot.lane.b32.xlu0 %v6295_v5, %s5943_s10 }
  0xc3   : > { %v608_v1 = vpop.permute.xlu1 %607 }
  0xc4   : > { %683 = vst.msk [vmem:[#allocation4 + $0xa8] sm:$0xff] %vm661_vm3, %v608_v1  ;;  %v614_v62 = vpop.permute.xlu0 %613 }
  0xc5   : > { %981 = vrot.lane.b32.xlu1 %v6293_v4, %s5943_s10  ;;  %686 = vst.msk [vmem:[#allocation4 + $0xc0] sm:$0xff] %vm661_vm3, %v614_v62  ;;  %v8599_v62 = vld [vmem:[#allocation9_spill] sm:$0xff] }
  0xc6   : > { %987 = vrot.lane.b32.xlu0 %v6305_v7, %s5943_s10 }
  0xc7   : > { %v612_v3 = vpop.permute.xlu1 %611 }
  0xc8   : > { %685 = vst.msk [vmem:[#allocation4 + $0xb8] sm:$0xff] %vm661_vm3, %v612_v3  ;;  %v618_v2 = vpop.permute.xlu0 %617 }
  0xc9   : > { %985 = vrot.lane.b32.xlu1 %v6297_v6, %s5943_s10  ;;  %688 = vst.msk [vmem:[#allocation4 + $0xd0] sm:$0xff] %vm661_vm3, %v618_v2  ;;  %v1111_v2 = vld [vmem:[#allocation2 + $0x189] sm:$0xff] }
  0xca   : > { %991 = vrot.lane.b32.xlu0 %v6309_v9, %s5943_s10 }
  0xcb   : > { %v616_v5 = vpop.permute.xlu1 %615 }
  0xcc   : > { %687 = vst.msk [vmem:[#allocation4 + $0xc8] sm:$0xff] %vm661_vm3, %v616_v5  ;;  %v622_v4 = vpop.permute.xlu0 %621 }
  0xcd   : > { %989 = vrot.lane.b32.xlu1 %v6307_v8, %s5943_s10  ;;  %690 = vst.msk [vmem:[#allocation4 + $0xe0] sm:$0xff] %vm661_vm3, %v622_v4  ;;  %v8600_v4 = vld [vmem:[#allocation10_spill] sm:$0xff] }
  0xce   : > { %995 = vrot.lane.b32.xlu0 %v6327_v12, %s5943_s10 }
  0xcf   : > { %v620_v7 = vpop.permute.xlu1 %619 }
  0xd0   : > { %689 = vst.msk [vmem:[#allocation4 + $0xd8] sm:$0xff] %vm661_vm3, %v620_v7  ;;  %v626_v6 = vpop.permute.xlu0 %625 }
  0xd1   : > { %993 = vrot.lane.b32.xlu1 %v6319_v10, %s5943_s10  ;;  %692 = vst.msk [vmem:[#allocation4 + $0xf0] sm:$0xff] %vm661_vm3, %v626_v6 }
  0xd2   : > { %999 = vrot.lane.b32.xlu0 %v6343_v16, %s5943_s10 }
  0xd3   : > { %v624_v9 = vpop.permute.xlu1 %623 }
  0xd4   : > { %691 = vst.msk [vmem:[#allocation4 + $0xe8] sm:$0xff] %vm661_vm3, %v624_v9  ;;  %v759_v8 = vpop.permute.xlu0 %758  ;;  %v8601_v9 = vld [vmem:[#allocation11_spill] sm:$0xff] }
  0xd5   : > { %997 = vrot.lane.b32.xlu1 %v6329_v13, %s5943_s10  ;;  %855 = vst.msk [vmem:[#allocation4] sm:$0xff] %vm854_vm4, %v759_v8  ;;  %v917_v13 = vld [vmem:[#allocation2 + $0x180] sm:$0xff]  ;;  %v8602_v8 = vld [vmem:[#allocation12_spill] sm:$0xff] }
  0xd6   : > { %1003 = vrot.lane.b32.xlu0 %v6359_v20, %s5943_s10 }
  0xd7   : > { %v628_v12 = vpop.permute.xlu1 %627 }
  0xd8   : > { %693 = vst.msk [vmem:[#allocation4 + $0xf8] sm:$0xff] %vm661_vm3, %v628_v12  ;;  %v763_v10 = vpop.permute.xlu0 %762  ;;  %vm3076_vm3 = vcmask 195712  }
  0xd9   : > { %1001 = vrot.lane.b32.xlu1 %v6345_v17, %s5943_s10  ;;  %857 = vst.msk [vmem:[#allocation4 + $0x10] sm:$0xff] %vm854_vm4, %v763_v10 }
  0xda   : > { %1007 = vrot.lane.b32.xlu0 %v6375_v24, %s5943_s10 }
  0xdb   : > { %v761_v16 = vpop.permute.xlu1 %760 }
  0xdc   : > { %856 = vst.msk [vmem:[#allocation4 + $0x8] sm:$0xff] %vm854_vm4, %v761_v16  ;;  %v767_v34 = vpop.permute.xlu0 %766  ;;  %v8603_v16 = vld [vmem:[#allocation13_spill] sm:$0xff] }
  0xdd   : > { %1005 = vrot.lane.b32.xlu1 %v6361_v21, %s5943_s10  ;;  %859 = vst.msk [vmem:[#allocation4 + $0x20] sm:$0xff] %vm854_vm4, %v767_v34 }
  0xde   : > { %1011 = vrot.lane.b32.xlu0 %v917_v13, %s5943_s10  ;;  %v8604_v13 = vld [vmem:[#allocation14_spill] sm:$0xff] }
  0xdf   : > { %v765_v20 = vpop.permute.xlu1 %764 }
  0xe0   : > { %858 = vst.msk [vmem:[#allocation4 + $0x18] sm:$0xff] %vm854_vm4, %v765_v20  ;;  %v771_v17 = vpop.permute.xlu0 %770 }
  0xe1   : > { %1009 = vrot.lane.b32.xlu1 %v6377_v28, %s5943_s10  ;;  %861 = vst.msk [vmem:[#allocation4 + $0x30] sm:$0xff] %vm854_vm4, %v771_v17  ;;  %v8605_v17 = vld [vmem:[#allocation15_spill] sm:$0xff] }
  0xe2   : > { %1144 = vrot.lane.b32.xlu0 %v6148_v25, %s5944_s11 }
  0xe3   : > { %v769_v24 = vpop.permute.xlu1 %768 }
  0xe4   : > { %860 = vst.msk [vmem:[#allocation4 + $0x28] sm:$0xff] %vm854_vm4, %v769_v24  ;;  %v775_v21 = vpop.permute.xlu0 %774 }
  0xe5   : > { %1013 = vrot.lane.b32.xlu1 %v918_v46, %s5943_s10  ;;  %863 = vst.msk [vmem:[#allocation4 + $0x40] sm:$0xff] %vm854_vm4, %v775_v21  ;;  %v8606_v46 = vld [vmem:[#allocation16_spill] sm:$0xff] }
  0xe6   : > { %1148 = vrot.lane.b32.xlu0 %v6150_v26, %s5944_s11 }
  0xe7   : > { %v773_v37 = vpop.permute.xlu1 %772 }
  0xe8   : > { %862 = vst.msk [vmem:[#allocation4 + $0x38] sm:$0xff] %vm854_vm4, %v773_v37  ;;  %v779_v28 = vpop.permute.xlu0 %778  ;;  %v8607_v37 = vld [vmem:[#allocation17_spill] sm:$0xff] }
  0xe9   : > { %1146 = vrot.lane.b32.xlu1 %v6157_v27, %s5944_s11  ;;  %865 = vst.msk [vmem:[#allocation4 + $0x50] sm:$0xff] %vm854_vm4, %v779_v28  ;;  %v8608_v28 = vld [vmem:[#allocation18_spill] sm:$0xff] }
  0xea   : > { %1152 = vrot.lane.b32.xlu0 %v6165_v30, %s5944_s11 }
  0xeb   : > { %v777_v25 = vpop.permute.xlu1 %776 }
  0xec   : > { %864 = vst.msk [vmem:[#allocation4 + $0x48] sm:$0xff] %vm854_vm4, %v777_v25  ;;  %v783_v0 = vpop.permute.xlu0 %782 }
  0xed   : > { %1150 = vrot.lane.b32.xlu1 %v6169_v31, %s5944_s11  ;;  %867 = vst.msk [vmem:[#allocation4 + $0x60] sm:$0xff] %vm854_vm4, %v783_v0 }
  0xee   : > { %1156 = vrot.lane.b32.xlu0 %v6173_v32, %s5944_s11 }
  0xef   : > { %v781_v26 = vpop.permute.xlu1 %780 }
  0xf0   : > { %866 = vst.msk [vmem:[#allocation4 + $0x58] sm:$0xff] %vm854_vm4, %v781_v26  ;;  %v787_v27 = vpop.permute.xlu0 %786  ;;  %v8609_v26 = vld [vmem:[#allocation19_spill] sm:$0xff] }
  0xf1   : > { %1154 = vrot.lane.b32.xlu1 %v6186_v39, %s5944_s11  ;;  %869 = vst.msk [vmem:[#allocation4 + $0x70] sm:$0xff] %vm854_vm4, %v787_v27  ;;  %v8610_v27 = vld [vmem:[#allocation20_spill] sm:$0xff] }
  0xf2   : > { %1160 = vrot.lane.b32.xlu0 %v6193_v40, %s5944_s11 }
  0xf3   : > { %v785_v30 = vpop.permute.xlu1 %784 }
  0xf4   : > { %868 = vst.msk [vmem:[#allocation4 + $0x68] sm:$0xff] %vm854_vm4, %v785_v30  ;;  %v791_v31 = vpop.permute.xlu0 %790 }
  0xf5   : > { %1158 = vrot.lane.b32.xlu1 %v6197_v41, %s5944_s11  ;;  %871 = vst.msk [vmem:[#allocation4 + $0x80] sm:$0xff] %vm854_vm4, %v791_v31 }
  0xf6   : > { %1164 = vrot.lane.b32.xlu0 %v6201_v42, %s5944_s11 }
  0xf7   : > { %v789_v32 = vpop.permute.xlu1 %788 }
  0xf8   : > { %870 = vst.msk [vmem:[#allocation4 + $0x78] sm:$0xff] %vm854_vm4, %v789_v32  ;;  %v795_v39 = vpop.permute.xlu0 %794  ;;  %v8611_v32 = vld [vmem:[#allocation21_spill] sm:$0xff] }
  0xf9   : > { %1162 = vrot.lane.b32.xlu1 %v6205_v43, %s5944_s11  ;;  %873 = vst.msk [vmem:[#allocation4 + $0x90] sm:$0xff] %vm854_vm4, %v795_v39  ;;  %v8612_v39 = vld [vmem:[#allocation22_spill] sm:$0xff] }
  0xfa   : > { %1168 = vrot.lane.b32.xlu0 %v6209_v44, %s5944_s11 }
  0xfb   : > { %v793_v40 = vpop.permute.xlu1 %792 }
  0xfc   : > { %872 = vst.msk [vmem:[#allocation4 + $0x88] sm:$0xff] %vm854_vm4, %v793_v40  ;;  %v799_v41 = vpop.permute.xlu0 %798 }
  0xfd   : > { %1166 = vrot.lane.b32.xlu1 %v6215_v47, %s5944_s11  ;;  %875 = vst.msk [vmem:[#allocation4 + $0xa0] sm:$0xff] %vm854_vm4, %v799_v41 }
  0xfe   : > { %1172 = vrot.lane.b32.xlu0 %v6225_v50, %s5944_s11 }
  0xff   : > { %v797_v42 = vpop.permute.xlu1 %796 }
 0x100   : > { %874 = vst.msk [vmem:[#allocation4 + $0x98] sm:$0xff] %vm854_vm4, %v797_v42  ;;  %v803_v43 = vpop.permute.xlu0 %802  ;;  %v8613_v42 = vld [vmem:[#allocation23_spill] sm:$0xff] }
 0x101   : > { %1170 = vrot.lane.b32.xlu1 %v6235_v53, %s5944_s11  ;;  %877 = vst.msk [vmem:[#allocation4 + $0xb0] sm:$0xff] %vm854_vm4, %v803_v43  ;;  %v8614_v43 = vld [vmem:[#allocation24_spill] sm:$0xff] }
 0x102   : > { %1176 = vrot.lane.b32.xlu0 %v6245_v56, %s5944_s11 }
 0x103   : > { %v801_v44 = vpop.permute.xlu1 %800 }
 0x104   : > { %876 = vst.msk [vmem:[#allocation4 + $0xa8] sm:$0xff] %vm854_vm4, %v801_v44  ;;  %v807_v47 = vpop.permute.xlu0 %806 }
 0x105   : > { %1174 = vrot.lane.b32.xlu1 %v6271_v63, %s5944_s11  ;;  %879 = vst.msk [vmem:[#allocation4 + $0xc0] sm:$0xff] %vm854_vm4, %v807_v47 }
 0x106   : > { %1180 = vrot.lane.b32.xlu0 %v6321_v11, %s5944_s11 }
 0x107   : > { %v805_v50 = vpop.permute.xlu1 %804 }
 0x108   : > { %878 = vst.msk [vmem:[#allocation4 + $0xb8] sm:$0xff] %vm854_vm4, %v805_v50  ;;  %v811_v53 = vpop.permute.xlu0 %810  ;;  %v8615_v50 = vld [vmem:[#allocation25_spill] sm:$0xff] }
 0x109   : > { %1178 = vrot.lane.b32.xlu1 %v6331_v14, %s5944_s11  ;;  %881 = vst.msk [vmem:[#allocation4 + $0xd0] sm:$0xff] %vm854_vm4, %v811_v53  ;;  %v8616_v53 = vld [vmem:[#allocation26_spill] sm:$0xff] }
 0x10a   : > { %1184 = vrot.lane.b32.xlu0 %v6339_v15, %s5944_s11 }
 0x10b   : > { %v809_v56 = vpop.permute.xlu1 %808 }
 0x10c   : > { %880 = vst.msk [vmem:[#allocation4 + $0xc8] sm:$0xff] %vm854_vm4, %v809_v56  ;;  %v815_v63 = vpop.permute.xlu0 %814 }
 0x10d   : > { %1182 = vrot.lane.b32.xlu1 %v6347_v18, %s5944_s11  ;;  %883 = vst.msk [vmem:[#allocation4 + $0xe0] sm:$0xff] %vm854_vm4, %v815_v63 }
 0x10e   : > { %1188 = vrot.lane.b32.xlu0 %v6355_v19, %s5944_s11 }
 0x10f   : > { %v813_v11 = vpop.permute.xlu1 %812 }
 0x110   : > { %882 = vst.msk [vmem:[#allocation4 + $0xd8] sm:$0xff] %vm854_vm4, %v813_v11  ;;  %v819_v14 = vpop.permute.xlu0 %818  ;;  %v8617_v11 = vld [vmem:[#allocation27_spill] sm:$0xff] }
 0x111   : > { %1186 = vrot.lane.b32.xlu1 %v6363_v22, %s5944_s11  ;;  %885 = vst.msk [vmem:[#allocation4 + $0xf0] sm:$0xff] %vm854_vm4, %v819_v14  ;;  %v8596_v22 = vld [vmem:[#allocation6_spill] sm:$0xff]  ;;  %v8618_v14 = vld [vmem:[#allocation28_spill] sm:$0xff] }
 0x112   : > { %1192 = vrot.lane.b32.xlu0 %v6371_v23, %s5944_s11 }
 0x113   : > { %v817_v15 = vpop.permute.xlu1 %816 }
 0x114   : > { %884 = vst.msk [vmem:[#allocation4 + $0xe8] sm:$0xff] %vm854_vm4, %v817_v15  ;;  %v952_v18 = vpop.permute.xlu0 %951 }
 0x115   : > { %1190 = vrot.lane.b32.xlu1 %v6379_v29, %s5944_s11  ;;  %1048 = vst.msk [vmem:[#allocation4] sm:$0xff] %vm1047_vm5, %v952_v18  ;;  %v1110_v29 = vld [vmem:[#allocation2 + $0x181] sm:$0xff] }
 0x116   : > { %1196 = vrot.lane.b32.xlu0 %v6387_v33, %s5944_s11 }
 0x117   : > { %v821_v19 = vpop.permute.xlu1 %820 }
 0x118   : > { %886 = vst.msk [vmem:[#allocation4 + $0xf8] sm:$0xff] %vm854_vm4, %v821_v19  ;;  %v956_v49 = vpop.permute.xlu0 %955  ;;  %v8619_v19 = vld [vmem:[#allocation29_spill] sm:$0xff]  ;;  %vm3269_vm4 = vcmask 261312  }
 0x119   : > { %1194 = vrot.lane.b32.xlu1 %v8596_v22, %s5944_s11  ;;  %1050 = vst.msk [vmem:[#allocation4 + $0x10] sm:$0xff] %vm1047_vm5, %v956_v49  ;;  %v8620_v22 = vld [vmem:[#allocation30_spill] sm:$0xff] }
 0x11a   : > { %1200 = vrot.lane.b32.xlu0 %v8597_v61, %s5944_s11  ;;  %v8621_v61 = vld [vmem:[#allocation31_spill] sm:$0xff] }
 0x11b   : > { %v954_v23 = vpop.permute.xlu1 %953 }
 0x11c   : > { %1049 = vst.msk [vmem:[#allocation4 + $0x8] sm:$0xff] %vm1047_vm5, %v954_v23  ;;  %v960_v1 = vpop.permute.xlu0 %959 }
 0x11d   : > { %1198 = vrot.lane.b32.xlu1 %v8598_v48, %s5944_s11  ;;  %1052 = vst.msk [vmem:[#allocation4 + $0x20] sm:$0xff] %vm1047_vm5, %v960_v1 }
 0x11e   : > { %1204 = vrot.lane.b32.xlu0 %v1110_v29, %s5944_s11  ;;  %v8622_v29 = vld [vmem:[#allocation32_spill] sm:$0xff] }
 0x11f   : > { %v958_v33 = vpop.permute.xlu1 %957 }
 0x120   : > { %1051 = vst.msk [vmem:[#allocation4 + $0x18] sm:$0xff] %vm1047_vm5, %v958_v33  ;;  %v964_v3 = vpop.permute.xlu0 %963  ;;  %v8623_v33 = vld [vmem:[#allocation33_spill] sm:$0xff] }
 0x121   : > { %1202 = vrot.lane.b32.xlu1 %v8599_v62, %s5944_s11  ;;  %1054 = vst.msk [vmem:[#allocation4 + $0x30] sm:$0xff] %vm1047_vm5, %v964_v3  ;;  %v8624_v62 = vld [vmem:[#allocation34_spill] sm:$0xff] }
 0x122   : > { %1337 = vrot.lane.b32.xlu0 %v8600_v4, %s5945_s12 }
 0x123   : > { %v962_v5 = vpop.permute.xlu1 %961 }
 0x124   : > { %1053 = vst.msk [vmem:[#allocation4 + $0x28] sm:$0xff] %vm1047_vm5, %v962_v5  ;;  %v968_v7 = vpop.permute.xlu0 %967  ;;  %v8625_v5 = vld [vmem:[#allocation35_spill] sm:$0xff] }
 0x125   : > { %1206 = vrot.lane.b32.xlu1 %v1111_v2, %s5944_s11  ;;  %1056 = vst.msk [vmem:[#allocation4 + $0x40] sm:$0xff] %vm1047_vm5, %v968_v7 }
 0x126   : > { %1341 = vrot.lane.b32.xlu0 %v8601_v9, %s5945_s12 }
 0x127   : > { %v966_v6 = vpop.permute.xlu1 %965 }
 0x128   : > { %1055 = vst.msk [vmem:[#allocation4 + $0x38] sm:$0xff] %vm1047_vm5, %v966_v6  ;;  %v972_v12 = vpop.permute.xlu0 %971  ;;  %v6814_v6 = vld [vmem:[#allocation2 + $0x182] sm:$0xff] }
 0x129   : > { %1339 = vrot.lane.b32.xlu1 %v8602_v8, %s5945_s12  ;;  %1058 = vst.msk [vmem:[#allocation4 + $0x50] sm:$0xff] %vm1047_vm5, %v972_v12  ;;  %v6824_v8 = vld [vmem:[#allocation2 + $0x18a] sm:$0xff] }
 0x12a   : > { %1345 = vrot.lane.b32.xlu0 %v8603_v16, %s5945_s12 }
 0x12b   : > { %v970_v10 = vpop.permute.xlu1 %969 }
 0x12c   : > { %1057 = vst.msk [vmem:[#allocation4 + $0x48] sm:$0xff] %vm1047_vm5, %v970_v10  ;;  %v976_v34 = vpop.permute.xlu0 %975 }
 0x12d   : > { %1343 = vrot.lane.b32.xlu1 %v8604_v13, %s5945_s12  ;;  %1060 = vst.msk [vmem:[#allocation4 + $0x60] sm:$0xff] %vm1047_vm5, %v976_v34 }
 0x12e   : > { %1349 = vrot.lane.b32.xlu0 %v8605_v17, %s5945_s12 }
 0x12f   : > { %v974_v20 = vpop.permute.xlu1 %973 }
 0x130   : > { %1059 = vst.msk [vmem:[#allocation4 + $0x58] sm:$0xff] %vm1047_vm5, %v974_v20  ;;  %v980_v24 = vpop.permute.xlu0 %979 }
 0x131   : > { %1347 = vrot.lane.b32.xlu1 %v8606_v46, %s5945_s12  ;;  %1062 = vst.msk [vmem:[#allocation4 + $0x70] sm:$0xff] %vm1047_vm5, %v980_v24  ;;  %v1853_v46 = vld [vmem:[#allocation2 + $0x32] sm:$0xff] }
 0x132   : > { %1353 = vrot.lane.b32.xlu0 %v8607_v37, %s5945_s12 }
 0x133   : > { %v978_v21 = vpop.permute.xlu1 %977 }
 0x134   : > { %1061 = vst.msk [vmem:[#allocation4 + $0x68] sm:$0xff] %vm1047_vm5, %v978_v21  ;;  %v984_v25 = vpop.permute.xlu0 %983  ;;  %v1663_v21 = vld [vmem:[#allocation2 + $0x51] sm:$0xff] }
 0x135   : > { %1351 = vrot.lane.b32.xlu1 %v8608_v28, %s5945_s12  ;;  %1064 = vst.msk [vmem:[#allocation4 + $0x80] sm:$0xff] %vm1047_vm5, %v984_v25  ;;  %v1855_v28 = vld [vmem:[#allocation2 + $0x4a] sm:$0xff]  ;;  %v5629_v25 = vld [vmem:[%s8526_s1] sm:$0xff]  }
 0x136   : > { %1357 = vrot.lane.b32.xlu0 %v8609_v26, %s5945_s12  ;;  %v1854_v26 = vld [vmem:[#allocation2 + $0x3a] sm:$0xff] }
 0x137   : > { %v982_v0 = vpop.permute.xlu1 %981 }
 0x138   : > { %1063 = vst.msk [vmem:[#allocation4 + $0x78] sm:$0xff] %vm1047_vm5, %v982_v0  ;;  %v988_v30 = vpop.permute.xlu0 %987 }
 0x139   : > { %1355 = vrot.lane.b32.xlu1 %v8610_v27, %s5945_s12  ;;  %1066 = vst.msk [vmem:[#allocation4 + $0x90] sm:$0xff] %vm1047_vm5, %v988_v30  ;;  %v1664_v30 = vld [vmem:[#allocation2 + $0x61] sm:$0xff] }
 0x13a   : > { %1361 = vrot.lane.b32.xlu0 %v8611_v32, %s5945_s12  ;;  %v1856_v32 = vld [vmem:[#allocation2 + $0x52] sm:$0xff] }
 0x13b   : > { %v986_v31 = vpop.permute.xlu1 %985 }
 0x13c   : > { %1065 = vst.msk [vmem:[#allocation4 + $0x88] sm:$0xff] %vm1047_vm5, %v986_v31  ;;  %v992_v40 = vpop.permute.xlu0 %991 }
 0x13d   : > { %1359 = vrot.lane.b32.xlu1 %v8612_v39, %s5945_s12  ;;  %1068 = vst.msk [vmem:[#allocation4 + $0xa0] sm:$0xff] %vm1047_vm5, %v992_v40  ;;  %v1666_v40 = vld [vmem:[#allocation2 + $0x79] sm:$0xff] }
 0x13e   : > { %1365 = vrot.lane.b32.xlu0 %v8613_v42, %s5945_s12  ;;  %v1665_v42 = vld [vmem:[#allocation2 + $0x69] sm:$0xff] }
 0x13f   : > { %v990_v41 = vpop.permute.xlu1 %989 }
 0x140   : > { %1067 = vst.msk [vmem:[#allocation4 + $0x98] sm:$0xff] %vm1047_vm5, %v990_v41  ;;  %v996_v44 = vpop.permute.xlu0 %995 }
 0x141   : > { %1363 = vrot.lane.b32.xlu1 %v8614_v43, %s5945_s12  ;;  %1070 = vst.msk [vmem:[#allocation4 + $0xb0] sm:$0xff] %vm1047_vm5, %v996_v44  ;;  %v1857_v44 = vld [vmem:[#allocation2 + $0x62] sm:$0xff] }
 0x142   : > { %1369 = vrot.lane.b32.xlu0 %v8615_v50, %s5945_s12  ;;  %v1667_v50 = vld [vmem:[#allocation2 + $0x81] sm:$0xff] }
 0x143   : > { %v994_v47 = vpop.permute.xlu1 %993 }
 0x144   : > { %1069 = vst.msk [vmem:[#allocation4 + $0xa8] sm:$0xff] %vm1047_vm5, %v994_v47  ;;  %v1000_v56 = vpop.permute.xlu0 %999 }
 0x145   : > { %1367 = vrot.lane.b32.xlu1 %v8616_v53, %s5945_s12  ;;  %1072 = vst.msk [vmem:[#allocation4 + $0xc0] sm:$0xff] %vm1047_vm5, %v1000_v56  ;;  %v1859_v56 = vld [vmem:[#allocation2 + $0x7a] sm:$0xff] }
 0x146   : > { %1373 = vrot.lane.b32.xlu0 %v8617_v11, %s5945_s12  ;;  %v1858_v11 = vld [vmem:[#allocation2 + $0x6a] sm:$0xff] }
 0x147   : > { %v998_v63 = vpop.permute.xlu1 %997 }
 0x148   : > { %1071 = vst.msk [vmem:[#allocation4 + $0xb8] sm:$0xff] %vm1047_vm5, %v998_v63  ;;  %v1004_v15 = vpop.permute.xlu0 %1003 }
 0x149   : > { %1371 = vrot.lane.b32.xlu1 %v8618_v14, %s5945_s12  ;;  %1074 = vst.msk [vmem:[#allocation4 + $0xd0] sm:$0xff] %vm1047_vm5, %v1004_v15  ;;  %v1475_v15 = vld [vmem:[#allocation2 + $0x90] sm:$0xff] }
 0x14a   : > { %1377 = vrot.lane.b32.xlu0 %v8619_v19, %s5945_s12  ;;  %v1860_v19 = vld [vmem:[#allocation2 + $0x82] sm:$0xff] }
 0x14b   : > { %v1002_v18 = vpop.permute.xlu1 %1001 }
 0x14c   : > { %1073 = vst.msk [vmem:[#allocation4 + $0xc8] sm:$0xff] %vm1047_vm5, %v1002_v18  ;;  %v1008_v49 = vpop.permute.xlu0 %1007 }
 0x14d   : > { %1375 = vrot.lane.b32.xlu1 %v8620_v22, %s5945_s12  ;;  %1076 = vst.msk [vmem:[#allocation4 + $0xe0] sm:$0xff] %vm1047_vm5, %v1008_v49  ;;  %v1477_v49 = vld [vmem:[#allocation2 + $0xa8] sm:$0xff] }
 0x14e   : > { %1381 = vrot.lane.b32.xlu0 %v8621_v61, %s5945_s12  ;;  %v1476_v61 = vld [vmem:[#allocation2 + $0x98] sm:$0xff] }
 0x14f   : > { %v1006_v23 = vpop.permute.xlu1 %1005 }
 0x150   : > { %1075 = vst.msk [vmem:[#allocation4 + $0xd8] sm:$0xff] %vm1047_vm5, %v1006_v23  ;;  %v1012_v48 = vpop.permute.xlu0 %1011 }
 0x151   : > { %1379 = vrot.lane.b32.xlu1 %v8622_v29, %s5945_s12  ;;  %1078 = vst.msk [vmem:[#allocation4 + $0xf0] sm:$0xff] %vm1047_vm5, %v1012_v48  ;;  %v1668_v48 = vld [vmem:[#allocation2 + $0x91] sm:$0xff] }
 0x152   : > { %1385 = vrot.lane.b32.xlu0 %v8623_v33, %s5945_s12  ;;  %v1478_v33 = vld [vmem:[#allocation2 + $0xb0] sm:$0xff] }
 0x153   : > { %v1010_v1 = vpop.permute.xlu1 %1009 }
 0x154   : > { %1077 = vst.msk [vmem:[#allocation4 + $0xe8] sm:$0xff] %vm1047_vm5, %v1010_v1  ;;  %v1145_v3 = vpop.permute.xlu0 %1144 }
 0x155   : > { %1383 = vrot.lane.b32.xlu1 %v8624_v62, %s5945_s12  ;;  %1241 = vst.msk [vmem:[#allocation4] sm:$0xff] %vm1240_vm6, %v1145_v3  ;;  %v1670_v3 = vld [vmem:[#allocation2 + $0xa9] sm:$0xff] }
 0x156   : > { %1389 = vrot.lane.b32.xlu0 %v6514_v35, %s5945_s12 }
 0x157   : > { %v1014_v2 = vpop.permute.xlu1 %1013 }
 0x158   : > { %1079 = vst.msk [vmem:[#allocation4 + $0xf8] sm:$0xff] %vm1047_vm5, %v1014_v2  ;;  %v1149_v4 = vpop.permute.xlu0 %1148  ;;  %vm3462_vm5 = vcmask 326912  }
 0x159   : > { %1387 = vrot.lane.b32.xlu1 %v8625_v5, %s5945_s12  ;;  %1243 = vst.msk [vmem:[#allocation4 + $0x10] sm:$0xff] %vm1240_vm6, %v1149_v4  ;;  %v1669_v5 = vld [vmem:[#allocation2 + $0x99] sm:$0xff] }
 0x15a   : > { %1393 = vrot.lane.b32.xlu0 %v6524_v36, %s5945_s12 }
 0x15b   : > { %v1147_v7 = vpop.permute.xlu1 %1146 }
 0x15c   : > { %1242 = vst.msk [vmem:[#allocation4 + $0x8] sm:$0xff] %vm1240_vm6, %v1147_v7  ;;  %v1153_v35 = vpop.permute.xlu0 %1152  ;;  %v1861_v7 = vld [vmem:[#allocation2 + $0x92] sm:$0xff] }
 0x15d   : > { %1391 = vrot.lane.b32.xlu1 %v6528_v45, %s5945_s12  ;;  %1245 = vst.msk [vmem:[#allocation4 + $0x20] sm:$0xff] %vm1240_vm6, %v1153_v35 }
 0x15e   : > { %1397 = vrot.lane.b32.xlu0 %v6814_v6, %s5945_s12 }
 0x15f   : > { %v1151_v9 = vpop.permute.xlu1 %1150 }
 0x160   : > { %1244 = vst.msk [vmem:[#allocation4 + $0x18] sm:$0xff] %vm1240_vm6, %v1151_v9  ;;  %v1157_v36 = vpop.permute.xlu0 %1156  ;;  %v1671_v9 = vld [vmem:[#allocation2 + $0xb1] sm:$0xff] }
 0x161   : > { %1395 = vrot.lane.b32.xlu1 %v6536_v38, %s5945_s12  ;;  %1247 = vst.msk [vmem:[#allocation4 + $0x30] sm:$0xff] %vm1240_vm6, %v1157_v36 }
 0x162   : > { %1531 = vrot.lane.b32.xlu0 %v6229_v51, %s5946_s13 }
 0x163   : > { %v1155_v12 = vpop.permute.xlu1 %1154 }
 0x164   : > { %1246 = vst.msk [vmem:[#allocation4 + $0x28] sm:$0xff] %vm1240_vm6, %v1155_v12  ;;  %v1161_v45 = vpop.permute.xlu0 %1160  ;;  %v1863_v12 = vld [vmem:[#allocation2 + $0xaa] sm:$0xff] }
 0x165   : > { %1399 = vrot.lane.b32.xlu1 %v6824_v8, %s5945_s12  ;;  %1249 = vst.msk [vmem:[#allocation4 + $0x40] sm:$0xff] %vm1240_vm6, %v1161_v45  ;;  %s5951_s12 = smov 56  }
 0x166   : > { %1535 = vrot.lane.b32.xlu0 %v6241_v54, %s5946_s13 }
 0x167   : > { %v1159_v10 = vpop.permute.xlu1 %1158 }
 0x168   : > { %1248 = vst.msk [vmem:[#allocation4 + $0x38] sm:$0xff] %vm1240_vm6, %v1159_v10  ;;  %v1165_v38 = vpop.permute.xlu0 %1164  ;;  %v1862_v10 = vld [vmem:[#allocation2 + $0x9a] sm:$0xff] }
 0x169   : > { %1533 = vrot.lane.b32.xlu1 %v6231_v52, %s5946_s13  ;;  %1251 = vst.msk [vmem:[#allocation4 + $0x50] sm:$0xff] %vm1240_vm6, %v1165_v38  ;;  %v1660_v52 = vld [vmem:[#allocation2 + $0x31] sm:$0xff] }
 0x16a   : > { %1539 = vrot.lane.b32.xlu0 %v6251_v57, %s5946_s13 }
 0x16b   : > { %v1163_v51 = vpop.permute.xlu1 %1162 }
 0x16c   : > { %1250 = vst.msk [vmem:[#allocation4 + $0x48] sm:$0xff] %vm1240_vm6, %v1163_v51  ;;  %v1169_v16 = vpop.permute.xlu0 %1168  ;;  %v1479_v51 = vld [vmem:[#allocation2 + $0xc0] sm:$0xff] }
 0x16d   : > { %1537 = vrot.lane.b32.xlu1 %v6243_v55, %s5946_s13  ;;  %1253 = vst.msk [vmem:[#allocation4 + $0x60] sm:$0xff] %vm1240_vm6, %v1169_v16  ;;  %v1662_v55 = vld [vmem:[#allocation2 + $0x49] sm:$0xff] }
 0x16e   : > { %1543 = vrot.lane.b32.xlu0 %v6255_v59, %s5946_s13  ;;  %v5627_v59 = vld [vmem:[%s8526_s1 + $0x10] ss:$0 sps:$4 sm:$0x33]  }
 0x16f   : > { %v1167_v54 = vpop.permute.xlu1 %1166  ;;  %5602 = vmatprep.subr.msk.bf16.mxu0 %vm2163_vm7, %v5627_v59  ;;  %v2165_v20 = vsel %vm2163_vm7, %v5627_v59, 0  ;;  %5603 = vmatprep.subr.msk.bf16.mxu1 %vm2163_vm7, %v5627_v59 }
 0x170   : > { %1252 = vst.msk [vmem:[#allocation4 + $0x58] sm:$0xff] %vm1240_vm6, %v1167_v54  ;;  %v1173_v13 = vpop.permute.xlu0 %1172  ;;  %5483 = vmatpush3.bf16.msra.mxu0 %v2165_v20  ;;  %5599 = vmatpush3.bf16.msra.mxu1 %v2165_v20  ;;  %v1864_v54 = vld [vmem:[#allocation2 + $0xb2] sm:$0xff]  ;;  %v1482_v20 = vld [vmem:[#allocation2 + $0xe0] sm:$0xff] }
 0x171   : > { %1541 = vrot.lane.b32.xlu1 %v6253_v58, %s5946_s13  ;;  %1255 = vst.msk [vmem:[#allocation4 + $0x70] sm:$0xff] %vm1240_vm6, %v1173_v13  ;;  %v1661_v58 = vld [vmem:[#allocation2 + $0x39] sm:$0xff] }
 0x172   : > { %1724 = vrot.lane.b32.xlu0 %v1660_v52, %s5947_s14  ;;  %v1481_v13 = vld [vmem:[#allocation2 + $0xd8] sm:$0xff] }
 0x173   : > { %v1171_v57 = vpop.permute.xlu1 %1170 }
 0x174   : > { %1254 = vst.msk [vmem:[#allocation4 + $0x68] sm:$0xff] %vm1240_vm6, %v1171_v57  ;;  %v1177_v34 = vpop.permute.xlu0 %1176 }
 0x175   : > { %1545 = vrot.lane.b32.xlu1 %v6265_v60, %s5946_s13  ;;  %1257 = vst.msk [vmem:[#allocation4 + $0x80] sm:$0xff] %vm1240_vm6, %v1177_v34  ;;  %v5628_v60 = vld [vmem:[%s8526_s1 + $0x8] sm:$0xff]  }
 0x176   : > { %1728 = vrot.lane.b32.xlu0 %v1662_v55, %s5947_s14  ;;  %5484 = vmatprep.subr.bf16.mxu0 %v5628_v60  ;;  %v1480_v55 = vld [vmem:[#allocation2 + $0xc8] sm:$0xff] }
 0x177   : > { %v1175_v17 = vpop.permute.xlu1 %1174  ;;  %5597 = vmatprep.subr.bf16.mxu1 %v5628_v60  ;;  %5485 = vmatpush3.bf16.msra.mxu0 %v5628_v60  ;;  %v1672_v34 = vld [vmem:[#allocation2 + $0xc1] sm:$0xff] }
 0x178   : > { %1256 = vst.msk [vmem:[#allocation4 + $0x78] sm:$0xff] %vm1240_vm6, %v1175_v17  ;;  %v1181_v24 = vpop.permute.xlu0 %1180  ;;  %5600 = vmatpush3.bf16.msra.mxu1 %v5628_v60  ;;  %5486 = vmatprep.subr.bf16.mxu0 %v5629_v25 }
 0x179   : > { %1726 = vrot.lane.b32.xlu1 %v1661_v58, %s5947_s14  ;;  %1259 = vst.msk [vmem:[#allocation4 + $0x90] sm:$0xff] %vm1240_vm6, %v1181_v24  ;;  %5598 = vmatprep.subr.bf16.mxu1 %v5629_v25  ;;  %v1673_v24 = vld [vmem:[#allocation2 + $0xc9] sm:$0xff] }
 0x17a   : > { %1917 = vrot.lane.b32.xlu0 %v1853_v46, %s5948_s19  ;;  %v1674_v46 = vld [vmem:[#allocation2 + $0xd9] sm:$0xff] }
 0x17b   : > { %v1179_v37 = vpop.permute.xlu1 %1178  ;;  %5487 = vmatpush3.bf16.msra.mxu0 %v5629_v25 }
 0x17c   : > { %1258 = vst.msk [vmem:[#allocation4 + $0x88] sm:$0xff] %vm1240_vm6, %v1179_v37  ;;  %v1185_v0 = vpop.permute.xlu0 %1184  ;;  %5601 = vmatpush3.bf16.msra.mxu1 %v5629_v25  ;;  %v1865_v37 = vld [vmem:[#allocation2 + $0xc2] sm:$0xff] }
 0x17d   : > { %1730 = vrot.lane.b32.xlu1 %v1663_v21, %s5947_s14  ;;  %1261 = vst.msk [vmem:[#allocation4 + $0xa0] sm:$0xff] %vm1240_vm6, %v1185_v0  ;;  %v1675_v25 = vld [vmem:[#allocation2 + $0xe1] sm:$0xff] }
 0x17e   : > { %1921 = vrot.lane.b32.xlu0 %v1855_v28, %s5948_s19 }
 0x17f   : > { %v1183_v27 = vpop.permute.xlu1 %1182 }
 0x180   : > { %1260 = vst.msk [vmem:[#allocation4 + $0x98] sm:$0xff] %vm1240_vm6, %v1183_v27  ;;  %v1189_v31 = vpop.permute.xlu0 %1188 }
 0x181   : > { %1919 = vrot.lane.b32.xlu1 %v1854_v26, %s5948_s19  ;;  %1263 = vst.msk [vmem:[#allocation4 + $0xb0] sm:$0xff] %vm1240_vm6, %v1189_v31  ;;  %v1867_v26 = vld [vmem:[#allocation2 + $0xda] sm:$0xff] }
 0x182   : > { %1732 = vrot.lane.b32.xlu0 %v1664_v30, %s5947_s14  ;;  %v1866_v30 = vld [vmem:[#allocation2 + $0xca] sm:$0xff] }
 0x183   : > { %v1187_v39 = vpop.permute.xlu1 %1186 }
 0x184   : > { %1262 = vst.msk [vmem:[#allocation4 + $0xa8] sm:$0xff] %vm1240_vm6, %v1187_v39  ;;  %v1193_v41 = vpop.permute.xlu0 %1192 }
 0x185   : > { %1923 = vrot.lane.b32.xlu1 %v1856_v32, %s5948_s19  ;;  %1265 = vst.msk [vmem:[#allocation4 + $0xc0] sm:$0xff] %vm1240_vm6, %v1193_v41  ;;  %v1483_v32 = vld [vmem:[#allocation2 + $0xf0] sm:$0xff] }
 0x186   : > { %1736 = vrot.lane.b32.xlu0 %v1666_v40, %s5947_s14  ;;  %v1868_v40 = vld [vmem:[#allocation2 + $0xe2] sm:$0xff] }
 0x187   : > { %v1191_v43 = vpop.permute.xlu1 %1190 }
 0x188   : > { %1264 = vst.msk [vmem:[#allocation4 + $0xb8] sm:$0xff] %vm1240_vm6, %v1191_v43  ;;  %v1197_v47 = vpop.permute.xlu0 %1196 }
 0x189   : > { %1734 = vrot.lane.b32.xlu1 %v1665_v42, %s5947_s14  ;;  %1267 = vst.msk [vmem:[#allocation4 + $0xd0] sm:$0xff] %vm1240_vm6, %v1197_v47  ;;  %v1485_v42 = vld [vmem:[#allocation2 + $0x108] sm:$0xff] }
 0x18a   : > { %1925 = vrot.lane.b32.xlu0 %v1857_v44, %s5948_s19  ;;  %v1484_v44 = vld [vmem:[#allocation2 + $0xf8] sm:$0xff] }
 0x18b   : > { %v1195_v53 = vpop.permute.xlu1 %1194 }
 0x18c   : > { %1266 = vst.msk [vmem:[#allocation4 + $0xc8] sm:$0xff] %vm1240_vm6, %v1195_v53  ;;  %v1201_v63 = vpop.permute.xlu0 %1200 }
 0x18d   : > { %1738 = vrot.lane.b32.xlu1 %v1667_v50, %s5947_s14  ;;  %1269 = vst.msk [vmem:[#allocation4 + $0xe0] sm:$0xff] %vm1240_vm6, %v1201_v63  ;;  %v1676_v50 = vld [vmem:[#allocation2 + $0xf1] sm:$0xff] }
 0x18e   : > { %1929 = vrot.lane.b32.xlu0 %v1859_v56, %s5948_s19  ;;  %v1486_v56 = vld [vmem:[#allocation2 + $0x110] sm:$0xff] }
 0x18f   : > { %v1199_v14 = vpop.permute.xlu1 %1198 }
 0x190   : > { %1268 = vst.msk [vmem:[#allocation4 + $0xd8] sm:$0xff] %vm1240_vm6, %v1199_v14  ;;  %v1205_v18 = vpop.permute.xlu0 %1204 }
 0x191   : > { %1927 = vrot.lane.b32.xlu1 %v1858_v11, %s5948_s19  ;;  %1271 = vst.msk [vmem:[#allocation4 + $0xf0] sm:$0xff] %vm1240_vm6, %v1205_v18  ;;  %v1678_v11 = vld [vmem:[#allocation2 + $0x109] sm:$0xff] }
 0x192   : > { %1547 = vrot.lane.b32.xlu0 %v1475_v15, %s5946_s13  ;;  %v1677_v15 = vld [vmem:[#allocation2 + $0xf9] sm:$0xff] }
 0x193   : > { %v1203_v22 = vpop.permute.xlu1 %1202 }
 0x194   : > { %1270 = vst.msk [vmem:[#allocation4 + $0xe8] sm:$0xff] %vm1240_vm6, %v1203_v22  ;;  %v1338_v23 = vpop.permute.xlu0 %1337 }
 0x195   : > { %1931 = vrot.lane.b32.xlu1 %v1860_v19, %s5948_s19  ;;  %1434 = vst.msk [vmem:[#allocation4] sm:$0xff] %vm1433_vm8, %v1338_v23  ;;  %v1869_v19 = vld [vmem:[#allocation2 + $0xf2] sm:$0xff] }
 0x196   : > { %1551 = vrot.lane.b32.xlu0 %v1477_v49, %s5946_s13  ;;  %v1679_v49 = vld [vmem:[#allocation2 + $0x111] sm:$0xff] }
 0x197   : > { %v1207_v29 = vpop.permute.xlu1 %1206 }
 0x198   : > { %1272 = vst.msk [vmem:[#allocation4 + $0xf8] sm:$0xff] %vm1240_vm6, %v1207_v29  ;;  %v1342_v1 = vpop.permute.xlu0 %1341  ;;  %vm3655_vm6 = vcmask 392512  }
 0x199   : > { %1549 = vrot.lane.b32.xlu1 %v1476_v61, %s5946_s13  ;;  %1436 = vst.msk [vmem:[#allocation4 + $0x10] sm:$0xff] %vm1433_vm8, %v1342_v1  ;;  %v1871_v61 = vld [vmem:[#allocation2 + $0x10a] sm:$0xff] }
 0x19a   : > { %1740 = vrot.lane.b32.xlu0 %v1668_v48, %s5947_s14  ;;  %v1870_v48 = vld [vmem:[#allocation2 + $0xfa] sm:$0xff] }
 0x19b   : > { %v1340_v62 = vpop.permute.xlu1 %1339 }
 0x19c   : > { %1435 = vst.msk [vmem:[#allocation4 + $0x8] sm:$0xff] %vm1433_vm8, %v1340_v62  ;;  %v1346_v2 = vpop.permute.xlu0 %1345 }
 0x19d   : > { %1553 = vrot.lane.b32.xlu1 %v1478_v33, %s5946_s13  ;;  %1438 = vst.msk [vmem:[#allocation4 + $0x20] sm:$0xff] %vm1433_vm8, %v1346_v2  ;;  %v1487_v33 = vld [vmem:[#allocation2 + $0x120] sm:$0xff] }
 0x19e   : > { %1744 = vrot.lane.b32.xlu0 %v1670_v3, %s5947_s14  ;;  %v1872_v3 = vld [vmem:[#allocation2 + $0x112] sm:$0xff] }
 0x19f   : > { %v1344_v4 = vpop.permute.xlu1 %1343 }
 0x1a0   : > { %1437 = vst.msk [vmem:[#allocation4 + $0x18] sm:$0xff] %vm1433_vm8, %v1344_v4  ;;  %v1350_v35 = vpop.permute.xlu0 %1349 }
 0x1a1   : > { %1742 = vrot.lane.b32.xlu1 %v1669_v5, %s5947_s14  ;;  %1440 = vst.msk [vmem:[#allocation4 + $0x30] sm:$0xff] %vm1433_vm8, %v1350_v35  ;;  %v1489_v5 = vld [vmem:[#allocation2 + $0x138] sm:$0xff] }
 0x1a2   : > { %1933 = vrot.lane.b32.xlu0 %v1861_v7, %s5948_s19  ;;  %v1488_v7 = vld [vmem:[#allocation2 + $0x128] sm:$0xff] }
 0x1a3   : > { %v1348_v36 = vpop.permute.xlu1 %1347 }
 0x1a4   : > { %1439 = vst.msk [vmem:[#allocation4 + $0x28] sm:$0xff] %vm1433_vm8, %v1348_v36  ;;  %v1354_v45 = vpop.permute.xlu0 %1353 }
 0x1a5   : > { %1746 = vrot.lane.b32.xlu1 %v1671_v9, %s5947_s14  ;;  %1442 = vst.msk [vmem:[#allocation4 + $0x40] sm:$0xff] %vm1433_vm8, %v1354_v45  ;;  %v1680_v9 = vld [vmem:[#allocation2 + $0x121] sm:$0xff] }
 0x1a6   : > { %1937 = vrot.lane.b32.xlu0 %v1863_v12, %s5948_s19  ;;  %v1490_v12 = vld [vmem:[#allocation2 + $0x140] sm:$0xff] }
 0x1a7   : > { %v1352_v38 = vpop.permute.xlu1 %1351 }
 0x1a8   : > { %1441 = vst.msk [vmem:[#allocation4 + $0x38] sm:$0xff] %vm1433_vm8, %v1352_v38  ;;  %v1358_v16 = vpop.permute.xlu0 %1357 }
 0x1a9   : > { %1935 = vrot.lane.b32.xlu1 %v1862_v10, %s5948_s19  ;;  %1444 = vst.msk [vmem:[#allocation4 + $0x50] sm:$0xff] %vm1433_vm8, %v1358_v16  ;;  %v1682_v10 = vld [vmem:[#allocation2 + $0x139] sm:$0xff] }
 0x1aa   : > { %1555 = vrot.lane.b32.xlu0 %v1479_v51, %s5946_s13  ;;  %v1681_v51 = vld [vmem:[#allocation2 + $0x129] sm:$0xff] }
 0x1ab   : > { %v1356_v52 = vpop.permute.xlu1 %1355 }
 0x1ac   : > { %1443 = vst.msk [vmem:[#allocation4 + $0x48] sm:$0xff] %vm1433_vm8, %v1356_v52  ;;  %v1362_v57 = vpop.permute.xlu0 %1361 }
 0x1ad   : > { %1939 = vrot.lane.b32.xlu1 %v1864_v54, %s5948_s19  ;;  %1446 = vst.msk [vmem:[#allocation4 + $0x60] sm:$0xff] %vm1433_vm8, %v1362_v57  ;;  %v1873_v54 = vld [vmem:[#allocation2 + $0x122] sm:$0xff] }
 0x1ae   : > { %1559 = vrot.lane.b32.xlu0 %v1481_v13, %s5946_s13  ;;  %v1683_v13 = vld [vmem:[#allocation2 + $0x141] sm:$0xff] }
 0x1af   : > { %v1360_v59 = vpop.permute.xlu1 %1359 }
 0x1b0   : > { %1445 = vst.msk [vmem:[#allocation4 + $0x58] sm:$0xff] %vm1433_vm8, %v1360_v59  ;;  %v1366_v58 = vpop.permute.xlu0 %1365 }
 0x1b1   : > { %1557 = vrot.lane.b32.xlu1 %v1480_v55, %s5946_s13  ;;  %1448 = vst.msk [vmem:[#allocation4 + $0x70] sm:$0xff] %vm1433_vm8, %v1366_v58  ;;  %v1875_v55 = vld [vmem:[#allocation2 + $0x13a] sm:$0xff] }
 0x1b2   : > { %1748 = vrot.lane.b32.xlu0 %v1672_v34, %s5947_s14  ;;  %v1874_v34 = vld [vmem:[#allocation2 + $0x12a] sm:$0xff] }
 0x1b3   : > { %v1364_v17 = vpop.permute.xlu1 %1363 }
 0x1b4   : > { %1447 = vst.msk [vmem:[#allocation4 + $0x68] sm:$0xff] %vm1433_vm8, %v1364_v17  ;;  %v1370_v60 = vpop.permute.xlu0 %1369 }
 0x1b5   : > { %1561 = vrot.lane.b32.xlu1 %v1482_v20, %s5946_s13  ;;  %1450 = vst.msk [vmem:[#allocation4 + $0x80] sm:$0xff] %vm1433_vm8, %v1370_v60  ;;  %v1491_v20 = vld [vmem:[#allocation2 + $0x150] sm:$0xff] }
 0x1b6   : > { %1752 = vrot.lane.b32.xlu0 %v1674_v46, %s5947_s14  ;;  %v1876_v46 = vld [vmem:[#allocation2 + $0x142] sm:$0xff] }
 0x1b7   : > { %v1368_v21 = vpop.permute.xlu1 %1367 }
 0x1b8   : > { %1449 = vst.msk [vmem:[#allocation4 + $0x78] sm:$0xff] %vm1433_vm8, %v1368_v21  ;;  %v1374_v28 = vpop.permute.xlu0 %1373 }
 0x1b9   : > { %1750 = vrot.lane.b32.xlu1 %v1673_v24, %s5947_s14  ;;  %1452 = vst.msk [vmem:[#allocation4 + $0x90] sm:$0xff] %vm1433_vm8, %v1374_v28  ;;  %v1493_v24 = vld [vmem:[#allocation2 + $0x168] sm:$0xff] }
 0x1ba   : > { %1941 = vrot.lane.b32.xlu0 %v1865_v37, %s5948_s19  ;;  %v1492_v37 = vld [vmem:[#allocation2 + $0x158] sm:$0xff] }
 0x1bb   : > { %v1372_v0 = vpop.permute.xlu1 %1371 }
 0x1bc   : > { %1451 = vst.msk [vmem:[#allocation4 + $0x88] sm:$0xff] %vm1433_vm8, %v1372_v0  ;;  %v1378_v27 = vpop.permute.xlu0 %1377 }
 0x1bd   : > { %1754 = vrot.lane.b32.xlu1 %v1675_v25, %s5947_s14  ;;  %1454 = vst.msk [vmem:[#allocation4 + $0xa0] sm:$0xff] %vm1433_vm8, %v1378_v27  ;;  %v1684_v25 = vld [vmem:[#allocation2 + $0x151] sm:$0xff] }
 0x1be   : > { %1945 = vrot.lane.b32.xlu0 %v1867_v26, %s5948_s19  ;;  %v1494_v27 = vld [vmem:[#allocation2 + $0x170] sm:$0xff] }
 0x1bf   : > { %v1376_v31 = vpop.permute.xlu1 %1375 }
 0x1c0   : > { %1453 = vst.msk [vmem:[#allocation4 + $0x98] sm:$0xff] %vm1433_vm8, %v1376_v31  ;;  %v1382_v39 = vpop.permute.xlu0 %1381 }
 0x1c1   : > { %1943 = vrot.lane.b32.xlu1 %v1866_v30, %s5948_s19  ;;  %1456 = vst.msk [vmem:[#allocation4 + $0xb0] sm:$0xff] %vm1433_vm8, %v1382_v39  ;;  %v1686_v39 = vld [vmem:[#allocation2 + $0x169] sm:$0xff] }
 0x1c2   : > { %1563 = vrot.lane.b32.xlu0 %v1483_v32, %s5946_s13 }
 0x1c3   : > { %v1380_v41 = vpop.permute.xlu1 %1379 }
 0x1c4   : > { %1455 = vst.msk [vmem:[#allocation4 + $0xa8] sm:$0xff] %vm1433_vm8, %v1380_v41  ;;  %v1386_v43 = vpop.permute.xlu0 %1385 }
 0x1c5   : > { %1947 = vrot.lane.b32.xlu1 %v1868_v40, %s5948_s19  ;;  %1458 = vst.msk [vmem:[#allocation4 + $0xc0] sm:$0xff] %vm1433_vm8, %v1386_v43 }
 0x1c6   : > { %1567 = vrot.lane.b32.xlu0 %v1485_v42, %s5946_s13  ;;  %v1685_v42 = vld [vmem:[#allocation2 + $0x159] sm:$0xff] }
 0x1c7   : > { %v1384_v47 = vpop.permute.xlu1 %1383 }
 0x1c8   : > { %1457 = vst.msk [vmem:[#allocation4 + $0xb8] sm:$0xff] %vm1433_vm8, %v1384_v47  ;;  %v1390_v53 = vpop.permute.xlu0 %1389 }
 0x1c9   : > { %1565 = vrot.lane.b32.xlu1 %v1484_v44, %s5946_s13  ;;  %1460 = vst.msk [vmem:[#allocation4 + $0xd0] sm:$0xff] %vm1433_vm8, %v1390_v53 }
 0x1ca   : > { %1756 = vrot.lane.b32.xlu0 %v1676_v50, %s5947_s14  ;;  %v1877_v50 = vld [vmem:[#allocation2 + $0x152] sm:$0xff] }
 0x1cb   : > { %v1388_v63 = vpop.permute.xlu1 %1387 }
 0x1cc   : > { %1459 = vst.msk [vmem:[#allocation4 + $0xc8] sm:$0xff] %vm1433_vm8, %v1388_v63  ;;  %v1394_v14 = vpop.permute.xlu0 %1393 }
 0x1cd   : > { %1569 = vrot.lane.b32.xlu1 %v1486_v56, %s5946_s13  ;;  %1462 = vst.msk [vmem:[#allocation4 + $0xe0] sm:$0xff] %vm1433_vm8, %v1394_v14  ;;  %v1687_v56 = vld [vmem:[#allocation2 + $0x171] sm:$0xff] }
 0x1ce   : > { %1760 = vrot.lane.b32.xlu0 %v1678_v11, %s5947_s14  ;;  %v1879_v11 = vld [vmem:[#allocation2 + $0x16a] sm:$0xff] }
 0x1cf   : > { %v1392_v18 = vpop.permute.xlu1 %1391 }
 0x1d0   : > { %1461 = vst.msk [vmem:[#allocation4 + $0xd8] sm:$0xff] %vm1433_vm8, %v1392_v18  ;;  %v1398_v22 = vpop.permute.xlu0 %1397 }
 0x1d1   : > { %1758 = vrot.lane.b32.xlu1 %v1677_v15, %s5947_s14  ;;  %1464 = vst.msk [vmem:[#allocation4 + $0xf0] sm:$0xff] %vm1433_vm8, %v1398_v22  ;;  %v1878_v15 = vld [vmem:[#allocation2 + $0x15a] sm:$0xff] }
 0x1d2   : > { %1949 = vrot.lane.b32.xlu0 %v1869_v19, %s5948_s19  ;;  %v1495_v19 = vld [vmem:[#allocation2 + $0x180] sm:$0xff] }
 0x1d3   : > { %v1396_v23 = vpop.permute.xlu1 %1395 }
 0x1d4   : > { %1463 = vst.msk [vmem:[#allocation4 + $0xe8] sm:$0xff] %vm1433_vm8, %v1396_v23  ;;  %v1532_v29 = vpop.permute.xlu0 %1531  ;;  %v1880_v23 = vld [vmem:[#allocation2 + $0x172] sm:$0xff] }
 0x1d5   : > { %1762 = vrot.lane.b32.xlu1 %v1679_v49, %s5947_s14  ;;  %1628 = vst.msk [vmem:[#allocation4] sm:$0xff] %vm1627_vm9, %v1532_v29 }
 0x1d6   : > { %1953 = vrot.lane.b32.xlu0 %v1871_v61, %s5948_s19 }
 0x1d7   : > { %v1400_v1 = vpop.permute.xlu1 %1399 }
 0x1d8   : > { %1465 = vst.msk [vmem:[#allocation4 + $0xf8] sm:$0xff] %vm1433_vm8, %v1400_v1  ;;  %v1536_v62 = vpop.permute.xlu0 %1535  ;;  %v1497_v1 = vld [vmem:[#allocation2 + $0x198] sm:$0xff]  ;;  %vm4042_vm8 = vcmask 523712  }
 0x1d9   : > { %1951 = vrot.lane.b32.xlu1 %v1870_v48, %s5948_s19  ;;  %1630 = vst.msk [vmem:[#allocation4 + $0x10] sm:$0xff] %vm1627_vm9, %v1536_v62 }
 0x1da   : > { %1571 = vrot.lane.b32.xlu0 %v1487_v33, %s5946_s13 }
 0x1db   : > { %v1534_v2 = vpop.permute.xlu1 %1533 }
 0x1dc   : > { %1629 = vst.msk [vmem:[#allocation4 + $0x8] sm:$0xff] %vm1627_vm9, %v1534_v2  ;;  %v1540_v4 = vpop.permute.xlu0 %1539 }
 0x1dd   : > { %1955 = vrot.lane.b32.xlu1 %v1872_v3, %s5948_s19  ;;  %1632 = vst.msk [vmem:[#allocation4 + $0x20] sm:$0xff] %vm1627_vm9, %v1540_v4  ;;  %v1496_v3 = vld [vmem:[#allocation2 + $0x188] sm:$0xff] }
 0x1de   : > { %1575 = vrot.lane.b32.xlu0 %v1489_v5, %s5946_s13 }
 0x1df   : > { %v1538_v35 = vpop.permute.xlu1 %1537 }
 0x1e0   : > { %1631 = vst.msk [vmem:[#allocation4 + $0x18] sm:$0xff] %vm1627_vm9, %v1538_v35  ;;  %v1544_v36 = vpop.permute.xlu0 %1543 }
 0x1e1   : > { %1573 = vrot.lane.b32.xlu1 %v1488_v7, %s5946_s13  ;;  %1634 = vst.msk [vmem:[#allocation4 + $0x30] sm:$0xff] %vm1627_vm9, %v1544_v36  ;;  %v1688_v7 = vld [vmem:[#allocation2 + $0x181] sm:$0xff] }
 0x1e2   : > { %1764 = vrot.lane.b32.xlu0 %v1680_v9, %s5947_s14  ;;  %v1498_v9 = vld [vmem:[#allocation2 + $0x1a0] sm:$0xff] }
 0x1e3   : > { %v1542_v45 = vpop.permute.xlu1 %1541 }
 0x1e4   : > { %1633 = vst.msk [vmem:[#allocation4 + $0x28] sm:$0xff] %vm1627_vm9, %v1542_v45  ;;  %v1725_v38 = vpop.permute.xlu0 %1724 }
 0x1e5   : > { %1577 = vrot.lane.b32.xlu1 %v1490_v12, %s5946_s13  ;;  %1821 = vst.msk [vmem:[#allocation4] sm:$0xff] %vm1820_vm10, %v1725_v38  ;;  %v1690_v12 = vld [vmem:[#allocation2 + $0x199] sm:$0xff] }
 0x1e6   : > { %1768 = vrot.lane.b32.xlu0 %v1682_v10, %s5947_s14  ;;  %v1689_v10 = vld [vmem:[#allocation2 + $0x189] sm:$0xff] }
 0x1e7   : > { %v1546_v16 = vpop.permute.xlu1 %1545 }
 0x1e8   : > { %1635 = vst.msk [vmem:[#allocation4 + $0x38] sm:$0xff] %vm1627_vm9, %v1546_v16  ;;  %v1729_v52 = vpop.permute.xlu0 %1728  ;;  %v1691_v16 = vld [vmem:[#allocation2 + $0x1a1] sm:$0xff] }
 0x1e9   : > { %1766 = vrot.lane.b32.xlu1 %v1681_v51, %s5947_s14  ;;  %1823 = vst.msk [vmem:[#allocation4 + $0x10] sm:$0xff] %vm1820_vm10, %v1729_v52  ;;  %v1883_v52 = vld [vmem:[#allocation2 + $0x19a] sm:$0xff] }
 0x1ea   : > { %1957 = vrot.lane.b32.xlu0 %v1873_v54, %s5948_s19 }
 0x1eb   : > { %v1727_v57 = vpop.permute.xlu1 %1726 }
 0x1ec   : > { %1822 = vst.msk [vmem:[#allocation4 + $0x8] sm:$0xff] %vm1820_vm10, %v1727_v57  ;;  %v1918_v59 = vpop.permute.xlu0 %1917 }
 0x1ed   : > { %1770 = vrot.lane.b32.xlu1 %v1683_v13, %s5947_s14  ;;  %2014 = vst.msk [vmem:[#allocation4] sm:$0xff] %vm2013_vm11, %v1918_v59 }
 0x1ee   : > { %1961 = vrot.lane.b32.xlu0 %v1875_v55, %s5948_s19 }
 0x1ef   : > { %v1731_v58 = vpop.permute.xlu1 %1730 }
 0x1f0   : > { %1824 = vst.msk [vmem:[#allocation4 + $0x18] sm:$0xff] %vm1820_vm10, %v1731_v58  ;;  %v1922_v17 = vpop.permute.xlu0 %1921 }
 0x1f1   : > { %1959 = vrot.lane.b32.xlu1 %v1874_v34, %s5948_s19  ;;  %2016 = vst.msk [vmem:[#allocation4 + $0x10] sm:$0xff] %vm2013_vm11, %v1922_v17  ;;  %v1884_v34 = vld [vmem:[#allocation2 + $0x1a2] sm:$0xff] }
 0x1f2   : > { %1579 = vrot.lane.b32.xlu0 %v1491_v20, %s5946_s13  ;;  %v8626_v20 = vmov 0.0  }
 0x1f3   : > { %v1920_v60 = vpop.permute.xlu1 %1919  ;;  %327 = vst.msk [vmem:[#allocation3] sm:$0xff] %vm326_vm13, %v8626_v20  ;;  %328 = vst.msk [vmem:[#allocation3 + $0x8] sm:$0xff] %vm326_vm13, %v8626_v20 }
 0x1f4   : > { %2015 = vst.msk [vmem:[#allocation4 + $0x8] sm:$0xff] %vm2013_vm11, %v1920_v60  ;;  %v1733_v21 = vpop.permute.xlu0 %1732  ;;  %v2046_v0 = vld [vmem:[#allocation4] sm:$0xff] }
 0x1f5   : > { %1963 = vrot.lane.b32.xlu1 %v1876_v46, %s5948_s19  ;;  %1825 = vst.msk [vmem:[#allocation4 + $0x20] sm:$0xff] %vm1820_vm10, %v1733_v21 }
 0x1f6   : > { %1583 = vrot.lane.b32.xlu0 %v1493_v24, %s5946_s13  ;;  %332 = vst.msk [vmem:[#allocation3 + $0x198] sm:$0xff] %vm326_vm13, %v8626_v20  ;;  %333 = vst.msk [vmem:[#allocation3 + $0x1a0] sm:$0xff] %vm326_vm13, %v8626_v20 }
 0x1f7   : > { %v1924_v28 = vpop.permute.xlu1 %1923  ;;  %336 = vst.msk [vmem:[#allocation3] sm:$0x1] %vm335_vm14, %v8626_v20  ;;  %337 = vst.msk [vmem:[#allocation3 + $0x18] sm:$0x1] %vm335_vm14, %v8626_v20 }
 0x1f8   : > { %2017 = vst.msk [vmem:[#allocation4 + $0x18] sm:$0xff] %vm2013_vm11, %v1924_v28  ;;  %v1737_v26 = vpop.permute.xlu0 %1736  ;;  %v2048_v40 = vld [vmem:[#allocation4 + $0x10] sm:$0xff] }
 0x1f9   : > { %1581 = vrot.lane.b32.xlu1 %v1492_v37, %s5946_s13  ;;  %1827 = vst.msk [vmem:[#allocation4 + $0x30] sm:$0xff] %vm1820_vm10, %v1737_v26 }
 0x1fa   : > { %1772 = vrot.lane.b32.xlu0 %v1684_v25, %s5947_s14  ;;  %338 = vst.msk [vmem:[#allocation3 + $0x30] sm:$0x1] %vm335_vm14, %v8626_v20  ;;  %339 = vst.msk [vmem:[#allocation3 + $0x48] sm:$0x1] %vm335_vm14, %v8626_v20 }
 0x1fb   : > { %v1735_v30 = vpop.permute.xlu1 %1734  ;;  %v2047_v31 = vld [vmem:[#allocation4 + $0x8] sm:$0xff]  ;;  %340 = vst.msk [vmem:[#allocation3 + $0x60] sm:$0x1] %vm335_vm14, %v8626_v20  ;;  %341 = vst.msk [vmem:[#allocation3 + $0x78] sm:$0x1] %vm335_vm14, %v8626_v20 }
 0x1fc   : > { %1826 = vst.msk [vmem:[#allocation4 + $0x28] sm:$0xff] %vm1820_vm10, %v1735_v30  ;;  %v2078_v32 = vpack.c.bf16 %v2047_v31, %v2046_v0  ;;  %v1926_v41 = vpop.permute.xlu0 %1925 }
 0x1fd   : > { %1585 = vrot.lane.b32.xlu1 %v1494_v27, %s5946_s13  ;;  %2018 = vst.msk [vmem:[#allocation4 + $0x20] sm:$0xff] %vm2013_vm11, %v1926_v41 }
 0x1fe   : > { %5488 = vmatprep.mubr.msk.bf16.mxu0 %vm2114_vm12, %v2078_v32  ;;  %1776 = vrot.lane.b32.xlu0 %v1686_v39, %s5947_s14  ;;  %342 = vst.msk [vmem:[#allocation3 + $0x90] sm:$0x1] %vm335_vm14, %v8626_v20  ;;  %343 = vst.msk [vmem:[#allocation3 + $0xa8] sm:$0x1] %vm335_vm14, %v8626_v20 }
 0x1ff   : > { %v1739_v43 = vpop.permute.xlu1 %1738  ;;  %v2049_v44 = vld [vmem:[#allocation4 + $0x18] sm:$0xff]  ;;  %344 = vst.msk [vmem:[#allocation3 + $0xc0] sm:$0x1] %vm335_vm14, %v8626_v20  ;;  %345 = vst.msk [vmem:[#allocation3 + $0xd8] sm:$0x1] %vm335_vm14, %v8626_v20 }
 0x200   : > { %1828 = vst.msk [vmem:[#allocation4 + $0x38] sm:$0xff] %vm1820_vm10, %v1739_v43  ;;  %v2079_v47 = vpack.c.bf16 %v2049_v44, %v2048_v40  ;;  %v1930_v53 = vpop.permute.xlu0 %1929 }
 0x201   : > { %1774 = vrot.lane.b32.xlu1 %v1685_v42, %s5947_s14  ;;  %2020 = vst.msk [vmem:[#allocation4 + $0x30] sm:$0xff] %vm2013_vm11, %v1930_v53 }
 0x202   : > { %5489 = vmatmul.mubr.msk.bf16.vlgmr.msra.gmra.mxu0 %vm2114_vm12, %v2079_v47  ;;  %1965 = vrot.lane.b32.xlu0 %v1877_v50, %s5948_s19  ;;  %v5891_v47 = vld [vmem:[#allocation2 + $0x19] sm:$0xff]  ;;  %v5892_v50 = vld [vmem:[#allocation2 + $0x21] sm:$0xff]  ;;  %346 = vst.msk [vmem:[#allocation3 + $0xf0] sm:$0x1] %vm335_vm14, %v8626_v20  ;;  %347 = vst.msk [vmem:[#allocation3 + $0x108] sm:$0x1] %vm335_vm14, %v8626_v20 }
 0x203   : > { %v1928_v63 = vpop.permute.xlu1 %1927  ;;  %v4640_v53 = vpack.c.bf16 %v5892_v50, %v5891_v47  ;;  %348 = vst.msk [vmem:[#allocation3 + $0x120] sm:$0x1] %vm335_vm14, %v8626_v20  ;;  %349 = vst.msk [vmem:[#allocation3 + $0x138] sm:$0x1] %vm335_vm14, %v8626_v20 }
 0x204   : > { %2019 = vst.msk [vmem:[#allocation4 + $0x28] sm:$0xff] %vm2013_vm11, %v1928_v63  ;;  %v1548_v14 = vpop.permute.xlu0 %1547  ;;  %v2050_v22 = vld [vmem:[#allocation4 + $0x20] sm:$0xff] }
 0x205   : > { %1778 = vrot.lane.b32.xlu1 %v1687_v56, %s5947_s14  ;;  %1636 = vst.msk [vmem:[#allocation4 + $0x40] sm:$0xff] %vm1627_vm9, %v1548_v14 }
 0x206   : > { %1969 = vrot.lane.b32.xlu0 %v1879_v11, %s5948_s19  ;;  %350 = vst.msk [vmem:[#allocation3 + $0x150] sm:$0x1] %vm335_vm14, %v8626_v20  ;;  %351 = vst.msk [vmem:[#allocation3 + $0x168] sm:$0x1] %vm335_vm14, %v8626_v20 }
 0x207   : > { %v1932_v18 = vpop.permute.xlu1 %1931  ;;  %352 = vst.msk [vmem:[#allocation3 + $0x180] sm:$0x1] %vm335_vm14, %v8626_v20  ;;  %353 = vst.msk [vmem:[#allocation3 + $0x198] sm:$0x1] %vm335_vm14, %v8626_v20 }
 0x208   : > { %2021 = vst.msk [vmem:[#allocation4 + $0x38] sm:$0xff] %vm2013_vm11, %v1932_v18  ;;  %v1552_v49 = vpop.permute.xlu0 %1551  ;;  %v2052_v33 = vld [vmem:[#allocation4 + $0x30] sm:$0xff] }
 0x209   : > { %1967 = vrot.lane.b32.xlu1 %v1878_v15, %s5948_s19  ;;  %1638 = vst.msk [vmem:[#allocation4 + $0x50] sm:$0xff] %vm1627_vm9, %v1552_v49 }
 0x20a   : > { %1587 = vrot.lane.b32.xlu0 %v1495_v19, %s5946_s13  ;;  %355 = vst.msk [vmem:[#allocation3 + $0x29] sm:$0x1] %vm335_vm14, %v8626_v20  ;;  %356 = vst.msk [vmem:[#allocation3 + $0x41] sm:$0x1] %vm335_vm14, %v8626_v20 }
 0x20b   : > { %v1550_v61 = vpop.permute.xlu1 %1549  ;;  %v2051_v29 = vld [vmem:[#allocation4 + $0x28] sm:$0xff]  ;;  %357 = vst.msk [vmem:[#allocation3 + $0x59] sm:$0x1] %vm335_vm14, %v8626_v20  ;;  %358 = vst.msk [vmem:[#allocation3 + $0x71] sm:$0x1] %vm335_vm14, %v8626_v20 }
 0x20c   : > { %1637 = vst.msk [vmem:[#allocation4 + $0x48] sm:$0xff] %vm1627_vm9, %v1550_v61  ;;  %v2080_v48 = vpack.c.bf16 %v2051_v29, %v2050_v22  ;;  %v1741_v62 = vpop.permute.xlu0 %1740 }
 0x20d   : > { %1971 = vrot.lane.b32.xlu1 %v1880_v23, %s5948_s19  ;;  %1829 = vst.msk [vmem:[#allocation4 + $0x40] sm:$0xff] %vm1820_vm10, %v1741_v62 }
 0x20e   : > { %5492 = vmatprep.mubr.msk.bf16.mxu0 %vm2114_vm12, %v2080_v48  ;;  %1591 = vrot.lane.b32.xlu0 %v1497_v1, %s5946_s13  ;;  %359 = vst.msk [vmem:[#allocation3 + $0x89] sm:$0x1] %vm335_vm14, %v8626_v20  ;;  %360 = vst.msk [vmem:[#allocation3 + $0xa1] sm:$0x1] %vm335_vm14, %v8626_v20 }
 0x20f   : > { %v1554_v2 = vpop.permute.xlu1 %1553  ;;  %v2053_v5 = vld [vmem:[#allocation4 + $0x38] sm:$0xff]  ;;  %361 = vst.msk [vmem:[#allocation3 + $0xb9] sm:$0x1] %vm335_vm14, %v8626_v20  ;;  %362 = vst.msk [vmem:[#allocation3 + $0xd1] sm:$0x1] %vm335_vm14, %v8626_v20 }
 0x210   : > { %1639 = vst.msk [vmem:[#allocation4 + $0x58] sm:$0xff] %vm1627_vm9, %v1554_v2  ;;  %v2081_v4 = vpack.c.bf16 %v2053_v5, %v2052_v33  ;;  %v1745_v35 = vpop.permute.xlu0 %1744 }
 0x211   : > { %1589 = vrot.lane.b32.xlu1 %v1496_v3, %s5946_s13  ;;  %1831 = vst.msk [vmem:[#allocation4 + $0x50] sm:$0xff] %vm1820_vm10, %v1745_v35 }
 0x212   : > { %5493 = vmatmul.mubr.msk.bf16.gmra.mxu0 %vm2114_vm12, %v2081_v4  ;;  %1780 = vrot.lane.b32.xlu0 %v1688_v7, %s5947_s14  ;;  %363 = vst.msk [vmem:[#allocation3 + $0xe9] sm:$0x1] %vm335_vm14, %v8626_v20  ;;  %364 = vst.msk [vmem:[#allocation3 + $0x101] sm:$0x1] %vm335_vm14, %v8626_v20 }
 0x213   : > { %v1743_v36 = vpop.permute.xlu1 %1742  ;;  %365 = vst.msk [vmem:[#allocation3 + $0x119] sm:$0x1] %vm335_vm14, %v8626_v20  ;;  %366 = vst.msk [vmem:[#allocation3 + $0x131] sm:$0x1] %vm335_vm14, %v8626_v20 }
 0x214   : > { %1830 = vst.msk [vmem:[#allocation4 + $0x48] sm:$0xff] %vm1820_vm10, %v1743_v36  ;;  %v1934_v45 = vpop.permute.xlu0 %1933 }
 0x215   : > { %1593 = vrot.lane.b32.xlu1 %v1498_v9, %s5946_s13  ;;  %2022 = vst.msk [vmem:[#allocation4 + $0x40] sm:$0xff] %vm2013_vm11, %v1934_v45 }
 0x216   : > { %1784 = vrot.lane.b32.xlu0 %v1690_v12, %s5947_s14  ;;  %367 = vst.msk [vmem:[#allocation3 + $0x149] sm:$0x1] %vm335_vm14, %v8626_v20  ;;  %368 = vst.msk [vmem:[#allocation3 + $0x161] sm:$0x1] %vm335_vm14, %v8626_v20 }
 0x217   : > { %v1747_v38 = vpop.permute.xlu1 %1746  ;;  %369 = vst.msk [vmem:[#allocation3 + $0x179] sm:$0x1] %vm335_vm14, %v8626_v20  ;;  %370 = vst.msk [vmem:[#allocation3 + $0x191] sm:$0x1] %vm335_vm14, %v8626_v20 }
 0x218   : > { %1832 = vst.msk [vmem:[#allocation4 + $0x58] sm:$0xff] %vm1820_vm10, %v1747_v38  ;;  %v1938_v51 = vpop.permute.xlu0 %1937 }
 0x219   : > { %1782 = vrot.lane.b32.xlu1 %v1689_v10, %s5947_s14  ;;  %2024 = vst.msk [vmem:[#allocation4 + $0x50] sm:$0xff] %vm2013_vm11, %v1938_v51 }
 0x21a   : > { %1973 = vrot.lane.b32.xlu0 %v6814_v6, %s5948_s19  ;;  %330 = vst.msk [vmem:[#allocation3 + $0x10] sm:$0x3] %vm329_vm15, %v8626_v20  ;;  %334 = vst.msk [vmem:[#allocation3 + $0x1a8] sm:$0x3] %vm329_vm15, %v8626_v20 }
 0x21b   : > { %v1936_v54 = vpop.permute.xlu1 %1935  ;;  %354 = vst.msk [vmem:[#allocation3 + $0x11] sm:$0x1] %vm335_vm14, %v8626_v20  ;;  %371 = vst.msk [vmem:[#allocation3 + $0x1a9] sm:$0x1] %vm335_vm14, %v8626_v20 }
 0x21c   : > { %2023 = vst.msk [vmem:[#allocation4 + $0x48] sm:$0xff] %vm2013_vm11, %v1936_v54  ;;  %v1556_v13 = vpop.permute.xlu0 %1555  ;;  %v2054_v55 = vld [vmem:[#allocation4 + $0x40] sm:$0xff] }
 0x21d   : > { %1786 = vrot.lane.b32.xlu1 %v1691_v16, %s5947_s14  ;;  %1640 = vst.msk [vmem:[#allocation4 + $0x60] sm:$0xff] %vm1627_vm9, %v1556_v13 }
 0x21e   : > { %1977 = vrot.lane.b32.xlu0 %v1883_v52, %s5948_s19 }
 0x21f   : > { %v1940_v57 = vpop.permute.xlu1 %1939 }
 0x220   : > { %2025 = vst.msk [vmem:[#allocation4 + $0x58] sm:$0xff] %vm2013_vm11, %v1940_v57  ;;  %v1560_v59 = vpop.permute.xlu0 %1559  ;;  %v2056_v17 = vld [vmem:[#allocation4 + $0x50] sm:$0xff] }
 0x221   : > { %1975 = vrot.lane.b32.xlu1 %v6824_v8, %s5948_s19  ;;  %1642 = vst.msk [vmem:[#allocation4 + $0x70] sm:$0xff] %vm1627_vm9, %v1560_v59 }
 0x223   : > { %v1558_v6 = vpop.permute.xlu1 %1557  ;;  %v2055_v58 = vld [vmem:[#allocation4 + $0x48] sm:$0xff] }
 0x224   : > { %1641 = vst.msk [vmem:[#allocation4 + $0x68] sm:$0xff] %vm1627_vm9, %v1558_v6  ;;  %v2082_v8 = vpack.c.bf16 %v2055_v58, %v2054_v55  ;;  %v1749_v46 = vpop.permute.xlu0 %1748  ;;  %v2723_v58 = vld [vmem:[#allocation3 + $0x1] sm:$0xff] }
 0x225   : > { %1979 = vrot.lane.b32.xlu1 %v1884_v34, %s5948_s19  ;;  %1833 = vst.msk [vmem:[#allocation4 + $0x60] sm:$0xff] %vm1820_vm10, %v1749_v46  ;;  %2787 = vrot.lane.b32.xlu0 %v2723_v58, %s5942_s9 }
 0x226   : > { %5496 = vmatprep.mubr.msk.bf16.mxu0 %vm2114_vm12, %v2082_v8 }
 0x227   : > { %v1562_v60 = vpop.permute.xlu1 %1561  ;;  %v2057_v24 = vld [vmem:[#allocation4 + $0x58] sm:$0xff] }
 0x228   : > { %1643 = vst.msk [vmem:[#allocation4 + $0x78] sm:$0xff] %vm1627_vm9, %v1562_v60  ;;  %v2083_v21 = vpack.c.bf16 %v2057_v24, %v2056_v17  ;;  %v1753_v37 = vpop.permute.xlu0 %1752  ;;  %v2724_v60 = vld [vmem:[#allocation3 + $0x9] sm:$0xff] }
 0x229   : > { %1835 = vst.msk [vmem:[#allocation4 + $0x70] sm:$0xff] %vm1820_vm10, %v1753_v37  ;;  %2789 = vrot.lane.b32.xlu1 %v2724_v60, %s5942_s9 }
 0x22a   : > { %5497 = vmatmul.mubr.msk.bf16.gmra.mxu0 %vm2114_vm12, %v2083_v21 }
 0x22b   : > { %v1751_v28 = vpop.permute.xlu1 %1750 }
 0x22c   : > { %1834 = vst.msk [vmem:[#allocation4 + $0x68] sm:$0xff] %vm1820_vm10, %v1751_v28  ;;  %v1942_v25 = vpop.permute.xlu0 %1941 }
 0x22d   : > { %2026 = vst.msk [vmem:[#allocation4 + $0x60] sm:$0xff] %vm2013_vm11, %v1942_v25 }
 0x22f   : > { %v1755_v0 = vpop.permute.xlu1 %1754 }
 0x230   : > { %1836 = vst.msk [vmem:[#allocation4 + $0x78] sm:$0xff] %vm1820_vm10, %v1755_v0  ;;  %v1946_v26 = vpop.permute.xlu0 %1945 }
 0x231   : > { %2028 = vst.msk [vmem:[#allocation4 + $0x70] sm:$0xff] %vm2013_vm11, %v1946_v26 }
 0x233   : > { %v1944_v27 = vpop.permute.xlu1 %1943 }
 0x234   : > { %2027 = vst.msk [vmem:[#allocation4 + $0x68] sm:$0xff] %vm2013_vm11, %v1944_v27  ;;  %v1564_v30 = vpop.permute.xlu0 %1563  ;;  %v2058_v32 = vld [vmem:[#allocation4 + $0x60] sm:$0xff] }
 0x235   : > { %1644 = vst.msk [vmem:[#allocation4 + $0x80] sm:$0xff] %vm1627_vm9, %v1564_v30 }
 0x237   : > { %v1948_v31 = vpop.permute.xlu1 %1947 }
 0x238   : > { %2029 = vst.msk [vmem:[#allocation4 + $0x78] sm:$0xff] %vm2013_vm11, %v1948_v31  ;;  %v1568_v39 = vpop.permute.xlu0 %1567  ;;  %v2060_v43 = vld [vmem:[#allocation4 + $0x70] sm:$0xff] }
 0x239   : > { %1646 = vst.msk [vmem:[#allocation4 + $0x90] sm:$0xff] %vm1627_vm9, %v1568_v39 }
 0x23b   : > { %v1566_v40 = vpop.permute.xlu1 %1565  ;;  %v2059_v41 = vld [vmem:[#allocation4 + $0x68] sm:$0xff] }
 0x23c   : > { %1645 = vst.msk [vmem:[#allocation4 + $0x88] sm:$0xff] %vm1627_vm9, %v1566_v40  ;;  %v2084_v42 = vpack.c.bf16 %v2059_v41, %v2058_v32  ;;  %v1757_v44 = vpop.permute.xlu0 %1756 }
 0x23d   : > { %1837 = vst.msk [vmem:[#allocation4 + $0x80] sm:$0xff] %vm1820_vm10, %v1757_v44 }
 0x23e   : > { %5500 = vmatprep.mubr.msk.bf16.mxu0 %vm2114_vm12, %v2084_v42 }
 0x23f   : > { %v1570_v56 = vpop.permute.xlu1 %1569  ;;  %v2061_v63 = vld [vmem:[#allocation4 + $0x78] sm:$0xff] }
 0x240   : > { %1647 = vst.msk [vmem:[#allocation4 + $0x98] sm:$0xff] %vm1627_vm9, %v1570_v56  ;;  %v2085_v11 = vpack.c.bf16 %v2061_v63, %v2060_v43  ;;  %v1761_v14 = vpop.permute.xlu0 %1760 }
 0x241   : > { %1839 = vst.msk [vmem:[#allocation4 + $0x90] sm:$0xff] %vm1820_vm10, %v1761_v14 }
 0x242   : > { %5501 = vmatmul.mubr.msk.bf16.gmra.mxu0 %vm2114_vm12, %v2085_v11 }
 0x243   : > { %v1759_v15 = vpop.permute.xlu1 %1758  ;;  %5564 = vmatprep.mubr.msk.bf16.mxu0 %vm280_vm0, %v4640_v53 }
 0x244   : > { %1838 = vst.msk [vmem:[#allocation4 + $0x88] sm:$0xff] %vm1820_vm10, %v1759_v15  ;;  %v1950_v18 = vpop.permute.xlu0 %1949 }
 0x245   : > { %2030 = vst.msk [vmem:[#allocation4 + $0x80] sm:$0xff] %vm2013_vm11, %v1950_v18 }
 0x247   : > { %v1763_v19 = vpop.permute.xlu1 %1762 }
 0x248   : > { %1840 = vst.msk [vmem:[#allocation4 + $0x98] sm:$0xff] %vm1820_vm10, %v1763_v19  ;;  %v1954_v22 = vpop.permute.xlu0 %1953 }
 0x249   : > { %2032 = vst.msk [vmem:[#allocation4 + $0x90] sm:$0xff] %vm2013_vm11, %v1954_v22 }
 0x24b   : > { %v1952_v49 = vpop.permute.xlu1 %1951 }
 0x24c   : > { %2031 = vst.msk [vmem:[#allocation4 + $0x88] sm:$0xff] %vm2013_vm11, %v1952_v49  ;;  %v1572_v23 = vpop.permute.xlu0 %1571  ;;  %v2062_v29 = vld [vmem:[#allocation4 + $0x80] sm:$0xff] }
 0x24d   : > { %1648 = vst.msk [vmem:[#allocation4 + $0xa0] sm:$0xff] %vm1627_vm9, %v1572_v23  ;;  %v7205_v49 = vld [vmem:[%s8527_s2] ss:$0 sm:$0xff] }
 0x24f   : > { %v1956_v61 = vpop.permute.xlu1 %1955 }
 0x250   : > { %2033 = vst.msk [vmem:[#allocation4 + $0x98] sm:$0xff] %vm2013_vm11, %v1956_v61  ;;  %v1576_v48 = vpop.permute.xlu0 %1575  ;;  %v2064_v3 = vld [vmem:[#allocation4 + $0x90] sm:$0xff]  ;;  %v7210_v61 = vld [vmem:[%s8527_s2 + $0x1] ss:$0 sm:$0xff] }
 0x251   : > { %1650 = vst.msk [vmem:[#allocation4 + $0xb0] sm:$0xff] %vm1627_vm9, %v1576_v48 }
 0x253   : > { %v1574_v1 = vpop.permute.xlu1 %1573  ;;  %v2063_v33 = vld [vmem:[#allocation4 + $0x88] sm:$0xff] }
 0x254   : > { %1649 = vst.msk [vmem:[#allocation4 + $0xa8] sm:$0xff] %vm1627_vm9, %v1574_v1  ;;  %v2086_v62 = vpack.c.bf16 %v2063_v33, %v2062_v29  ;;  %v1765_v2 = vpop.permute.xlu0 %1764 }
 0x255   : > { %1841 = vst.msk [vmem:[#allocation4 + $0xa0] sm:$0xff] %vm1820_vm10, %v1765_v2 }
 0x256   : > { %5504 = vmatprep.mubr.msk.bf16.mxu1 %vm2114_vm12, %v2086_v62 }
 0x257   : > { %v1578_v5 = vpop.permute.xlu1 %1577  ;;  %v2065_v4 = vld [vmem:[#allocation4 + $0x98] sm:$0xff] }
 0x258   : > { %1651 = vst.msk [vmem:[#allocation4 + $0xb8] sm:$0xff] %vm1627_vm9, %v1578_v5  ;;  %v2087_v7 = vpack.c.bf16 %v2065_v4, %v2064_v3  ;;  %v1769_v35 = vpop.permute.xlu0 %1768 }
 0x259   : > { %1843 = vst.msk [vmem:[#allocation4 + $0xb0] sm:$0xff] %vm1820_vm10, %v1769_v35 }
 0x25a   : > { %5505 = vmatmul.mubr.msk.bf16.vlgmr.msra.gmra.mxu1 %vm2114_vm12, %v2087_v7 }
 0x25b   : > { %v1767_v9 = vpop.permute.xlu1 %1766 }
 0x25c   : > { %1842 = vst.msk [vmem:[#allocation4 + $0xa8] sm:$0xff] %vm1820_vm10, %v1767_v9  ;;  %v1958_v36 = vpop.permute.xlu0 %1957 }
 0x25d   : > { %2034 = vst.msk [vmem:[#allocation4 + $0xa0] sm:$0xff] %vm2013_vm11, %v1958_v36 }
 0x25f   : > { %v1771_v12 = vpop.permute.xlu1 %1770 }
 0x260   : > { %1844 = vst.msk [vmem:[#allocation4 + $0xb8] sm:$0xff] %vm1820_vm10, %v1771_v12  ;;  %v1962_v45 = vpop.permute.xlu0 %1961 }
 0x261   : > { %2036 = vst.msk [vmem:[#allocation4 + $0xb0] sm:$0xff] %vm2013_vm11, %v1962_v45 }
 0x263   : > { %v1960_v10 = vpop.permute.xlu1 %1959 }
 0x264   : > { %2035 = vst.msk [vmem:[#allocation4 + $0xa8] sm:$0xff] %vm2013_vm11, %v1960_v10  ;;  %v1580_v38 = vpop.permute.xlu0 %1579  ;;  %v2066_v16 = vld [vmem:[#allocation4 + $0xa0] sm:$0xff] }
 0x265   : > { %1652 = vst.msk [vmem:[#allocation4 + $0xc0] sm:$0xff] %vm1627_vm9, %v1580_v38 }
 0x267   : > { %v1964_v51 = vpop.permute.xlu1 %1963 }
 0x268   : > { %2037 = vst.msk [vmem:[#allocation4 + $0xb8] sm:$0xff] %vm2013_vm11, %v1964_v51  ;;  %v1584_v54 = vpop.permute.xlu0 %1583  ;;  %v2068_v55 = vld [vmem:[#allocation4 + $0xb0] sm:$0xff] }
 0x269   : > { %1654 = vst.msk [vmem:[#allocation4 + $0xd0] sm:$0xff] %vm1627_vm9, %v1584_v54 }
 0x26b   : > { %v1582_v52 = vpop.permute.xlu1 %1581  ;;  %v2067_v13 = vld [vmem:[#allocation4 + $0xa8] sm:$0xff] }
 0x26c   : > { %1653 = vst.msk [vmem:[#allocation4 + $0xc8] sm:$0xff] %vm1627_vm9, %v1582_v52  ;;  %v2088_v57 = vpack.c.bf16 %v2067_v13, %v2066_v16  ;;  %v1773_v59 = vpop.permute.xlu0 %1772 }
 0x26d   : > { %1845 = vst.msk [vmem:[#allocation4 + $0xc0] sm:$0xff] %vm1820_vm10, %v1773_v59 }
 0x26e   : > { %5508 = vmatprep.mubr.msk.bf16.mxu1 %vm2114_vm12, %v2088_v57 }
 0x26f   : > { %v1586_v34 = vpop.permute.xlu1 %1585  ;;  %v2069_v6 = vld [vmem:[#allocation4 + $0xb8] sm:$0xff] }
 0x270   : > { %1655 = vst.msk [vmem:[#allocation4 + $0xd8] sm:$0xff] %vm1627_vm9, %v1586_v34  ;;  %v2089_v8 = vpack.c.bf16 %v2069_v6, %v2068_v55  ;;  %v1777_v17 = vpop.permute.xlu0 %1776 }
 0x271   : > { %1847 = vst.msk [vmem:[#allocation4 + $0xd0] sm:$0xff] %vm1820_vm10, %v1777_v17 }
 0x272   : > { %5509 = vmatmul.mubr.msk.bf16.gmra.mxu1 %vm2114_vm12, %v2089_v8 }
 0x273   : > { %v1775_v46 = vpop.permute.xlu1 %1774 }
 0x274   : > { %1846 = vst.msk [vmem:[#allocation4 + $0xc8] sm:$0xff] %vm1820_vm10, %v1775_v46  ;;  %v1966_v20 = vpop.permute.xlu0 %1965 }
 0x275   : > { %2038 = vst.msk [vmem:[#allocation4 + $0xc0] sm:$0xff] %vm2013_vm11, %v1966_v20 }
 0x277   : > { %v1779_v24 = vpop.permute.xlu1 %1778 }
 0x278   : > { %1848 = vst.msk [vmem:[#allocation4 + $0xd8] sm:$0xff] %vm1820_vm10, %v1779_v24  ;;  %v1970_v21 = vpop.permute.xlu0 %1969 }
 0x279   : > { %2040 = vst.msk [vmem:[#allocation4 + $0xd0] sm:$0xff] %vm2013_vm11, %v1970_v21 }
 0x27b   : > { %v1968_v37 = vpop.permute.xlu1 %1967 }
 0x27c   : > { %2039 = vst.msk [vmem:[#allocation4 + $0xc8] sm:$0xff] %vm2013_vm11, %v1968_v37  ;;  %v1588_v28 = vpop.permute.xlu0 %1587  ;;  %v2070_v0 = vld [vmem:[#allocation4 + $0xc0] sm:$0xff] }
 0x27d   : > { %1656 = vst.msk [vmem:[#allocation4 + $0xe0] sm:$0xff] %vm1627_vm9, %v1588_v28 }
 0x27f   : > { %v1972_v25 = vpop.permute.xlu1 %1971 }
 0x280   : > { %2041 = vst.msk [vmem:[#allocation4 + $0xd8] sm:$0xff] %vm2013_vm11, %v1972_v25  ;;  %v1592_v26 = vpop.permute.xlu0 %1591  ;;  %v2072_v32 = vld [vmem:[#allocation4 + $0xd0] sm:$0xff] }
 0x281   : > { %1658 = vst.msk [vmem:[#allocation4 + $0xf0] sm:$0xff] %vm1627_vm9, %v1592_v26 }
 0x283   : > { %v1590_v27 = vpop.permute.xlu1 %1589  ;;  %v2071_v30 = vld [vmem:[#allocation4 + $0xc8] sm:$0xff] }
 0x284   : > { %1657 = vst.msk [vmem:[#allocation4 + $0xe8] sm:$0xff] %vm1627_vm9, %v1590_v27  ;;  %v2090_v31 = vpack.c.bf16 %v2071_v30, %v2070_v0  ;;  %v1781_v39 = vpop.permute.xlu0 %1780 }
 0x285   : > { %1849 = vst.msk [vmem:[#allocation4 + $0xe0] sm:$0xff] %vm1820_vm10, %v1781_v39 }
 0x286   : > { %5512 = vmatprep.mubr.msk.bf16.mxu1 %vm2114_vm12, %v2090_v31 }
 0x287   : > { %v1594_v40 = vpop.permute.xlu1 %1593  ;;  %v2073_v41 = vld [vmem:[#allocation4 + $0xd8] sm:$0xff] }
 0x288   : > { %1659 = vst.msk [vmem:[#allocation4 + $0xf8] sm:$0xff] %vm1627_vm9, %v1594_v40  ;;  %v2091_v42 = vpack.c.bf16 %v2073_v41, %v2072_v32  ;;  %v1785_v43 = vpop.permute.xlu0 %1784  ;;  %vm4235_vm9 = vcmask 589312  }
 0x289   : > { %1851 = vst.msk [vmem:[#allocation4 + $0xf0] sm:$0xff] %vm1820_vm10, %v1785_v43 }
 0x28a   : > { %5513 = vmatmul.mubr.msk.bf16.gmra.mxu1 %vm2114_vm12, %v2091_v42 }
 0x28b   : > { %v1783_v44 = vpop.permute.xlu1 %1782 }
 0x28c   : > { %1850 = vst.msk [vmem:[#allocation4 + $0xe8] sm:$0xff] %vm1820_vm10, %v1783_v44  ;;  %v1974_v47 = vpop.permute.xlu0 %1973 }
 0x28d   : > { %2042 = vst.msk [vmem:[#allocation4 + $0xe0] sm:$0xff] %vm2013_vm11, %v1974_v47 }
 0x28f   : > { %v1787_v50 = vpop.permute.xlu1 %1786 }
 0x290   : > { %1852 = vst.msk [vmem:[#allocation4 + $0xf8] sm:$0xff] %vm1820_vm10, %v1787_v50  ;;  %v1978_v53 = vpop.permute.xlu0 %1977  ;;  %vm4352_vm10 = vcmask 588800  }
 0x291   : > { %2044 = vst.msk [vmem:[#allocation4 + $0xf0] sm:$0xff] %vm2013_vm11, %v1978_v53 }
 0x293   : > { %v1976_v56 = vpop.permute.xlu1 %1975 }
 0x294   : > { %2043 = vst.msk [vmem:[#allocation4 + $0xe8] sm:$0xff] %vm2013_vm11, %v1976_v56  ;;  %v2074_v11 = vld [vmem:[#allocation4 + $0xe0] sm:$0xff] }
 0x297   : > { %v1980_v63 = vpop.permute.xlu1 %1979 }
 0x298   : > { %2045 = vst.msk [vmem:[#allocation4 + $0xf8] sm:$0xff] %vm2013_vm11, %v1980_v63  ;;  %v2076_v18 = vld [vmem:[#allocation4 + $0xf0] sm:$0xff] }
 0x29b   : > { %v2075_v14 = vld [vmem:[#allocation4 + $0xe8] sm:$0xff] }
 0x29c   : > { %v2092_v15 = vpack.c.bf16 %v2075_v14, %v2074_v11 }
 0x29e   : > { %5516 = vmatprep.mubr.msk.bf16.mxu1 %vm2114_vm12, %v2092_v15 }
 0x29f   : > { %v2077_v19 = vld [vmem:[#allocation4 + $0xf8] sm:$0xff] }
 0x2a0   : > { %v2093_v22 = vpack.c.bf16 %v2077_v19, %v2076_v18 }
 0x2a2   : > { %5517 = vmatmul.mubr.msk.bf16.gmra.mxu1 %vm2114_vm12, %v2093_v22 }
 0x2c2   : > { %v5490_v23 = vpop.f32.mrf.mxu0 }
 0x2c3   : > { %v2335_v29 = vmul.f32 %v5490_v23, %v7205_v49 }
 0x2c4   : > { %v2201_v48 = vpop.f32.mrf.mxu0 }
 0x2c5   : > { %v2372_v1 = vadd.f32 %v7210_v61, %v2335_v29  ;;  %v2333_v33 = vmul.f32 %v7205_v49, %v2201_v48 }
 0x2c6   : > { %v5491_v62 = vpop.f32.mrf.mxu0 }
 0x2c7   : > { %v5318_v3 = vmul.f32 -1.442695, %v2372_v1  ;;  %v2370_v2 = vadd.f32 %v7210_v61, %v2333_v33  ;;  %v2336_v5 = vmul.f32 %v5491_v62, %v7205_v49 }
 0x2c8   : > { %v2204_v4 = vpop.f32.mrf.mxu0 }
 0x2c9   : > { %5635 = vpow2.f32 %v5318_v3  ;;  %v5316_v7 = vmul.f32 -1.442695, %v2370_v2  ;;  %v2373_v35 = vadd.f32 %v7210_v61, %v2336_v5  ;;  %v2334_v9 = vmul.f32 %v7205_v49, %v2204_v4 }
 0x2cb   : > { %5637 = vpow2.f32 %v5316_v7  ;;  %v5319_v36 = vmul.f32 -1.442695, %v2373_v35  ;;  %v2371_v12 = vadd.f32 %v7210_v61, %v2334_v9 }
 0x2cd   : > { %5639 = vpow2.f32 %v5319_v36  ;;  %v5317_v45 = vmul.f32 -1.442695, %v2371_v12 }
 0x2cf   : > { %5641 = vpow2.f32 %v5317_v45 }
 0x2d2   : > { %v5494_v10 = vpop.f32.mrf.mxu0 }
 0x2d3   : > { %v2339_v38 = vmul.f32 %v5494_v10, %v7205_v49 }
 0x2d4   : > { %v2217_v51 = vpop.f32.mrf.mxu0 }
 0x2d5   : > { %v7222_v16 = vadd.f32 %v7210_v61, %v2339_v38  ;;  %v2337_v54 = vmul.f32 %v7205_v49, %v2217_v51  ;;  %v2659_v51 = vld [vmem:[#allocation3] sm:$0xff] }
 0x2d6   : > { %v5636_v52 = vpop.eup %5635  ;;  %v5495_v13 = vpop.f32.mrf.mxu0  ;;  %2691 = vst.msk [vmem:[#allocation5] sm:$0xff] %vm326_vm13, %v2659_v51 }
 0x2d7   : > { %v2500_v57 = vadd.f32 1.0, %v5636_v52  ;;  %v5322_v55 = vmul.f32 -1.442695, %v7222_v16  ;;  %v7227_v59 = vadd.f32 %v7210_v61, %v2337_v54  ;;  %v2340_v34 = vmul.f32 %v5495_v13, %v7205_v49  ;;  %v2788_v52 = vpop.permute.xlu0 %2787 }
 0x2d8   : > { %v5638_v6 = vpop.eup %5637  ;;  %v2220_v58 = vpop.f32.mrf.mxu0  ;;  %2884 = vst.msk [vmem:[#allocation5] sm:$0xff] %vm2883_vm1, %v2788_v52 }
 0x2d9   : > { %5643 = vrcp.f32 %v2500_v57  ;;  %v2498_v8 = vadd.f32 1.0, %v5638_v6  ;;  %v5320_v17 = vmul.f32 -1.442695, %v7227_v59  ;;  %v7232_v46 = vadd.f32 %v7210_v61, %v2340_v34 }
 0x2da   : > { %v5640_v60 = vpop.eup %5639  ;;  %5645 = vpow2.f32 %v5322_v55  ;;  %v2338_v20 = vmul.f32 %v7205_v49, %v2220_v58 }
 0x2db   : > { %5647 = vrcp.f32 %v2498_v8  ;;  %v2501_v24 = vadd.f32 1.0, %v5640_v60  ;;  %v5323_v21 = vmul.f32 -1.442695, %v7232_v46 }
 0x2dc   : > { %v5642_v37 = vpop.eup %5641  ;;  %5649 = vpow2.f32 %v5320_v17  ;;  %v7237_v28 = vadd.f32 %v7210_v61, %v2338_v20 }
 0x2dd   : > { %5651 = vrcp.f32 %v2501_v24  ;;  %v2499_v25 = vadd.f32 1.0, %v5642_v37 }
 0x2de   : > { %5653 = vpow2.f32 %v5323_v21  ;;  %v5321_v0 = vmul.f32 -1.442695, %v7237_v28 }
 0x2df   : > { %5655 = vrcp.f32 %v2499_v25 }
 0x2e0   : > { %5657 = vpow2.f32 %v5321_v0 }
 0x2e6   : > { %v5644_v26 = vpop.eup %5643 }
 0x2e7   : > { %v5646_v27 = vpop.eup %5645  ;;  %v2596_v30 = vmul.f32 %v5644_v26, %v2372_v1 }
 0x2e8   : > { %v5648_v31 = vpop.eup %5647  ;;  %v2504_v32 = vadd.f32 1.0, %v5646_v27 }
 0x2e9   : > { %v5650_v39 = vpop.eup %5649  ;;  %2629 = vst.msk [vmem:[#allocation3 + $0x31] sm:$0xff] %vm326_vm13, %v2596_v30  ;;  %v2594_v40 = vmul.f32 %v5648_v31, %v2370_v2 }
 0x2ea   : > { %v5652_v41 = vpop.eup %5651  ;;  %5659 = vrcp.f32 %v2504_v32  ;;  %v2502_v42 = vadd.f32 1.0, %v5650_v39  ;;  %v5498_v43 = vpop.f32.mrf.mxu0 }
 0x2eb   : > { %v5654_v44 = vpop.eup %5653  ;;  %2627 = vst.msk [vmem:[#allocation3 + $0x19] sm:$0xff] %vm326_vm13, %v2594_v40  ;;  %v2597_v47 = vmul.f32 %v5652_v41, %v2373_v35  ;;  %v2343_v50 = vmul.f32 %v5498_v43, %v7205_v49 }
 0x2ec   : > { %v5656_v53 = vpop.eup %5655  ;;  %5661 = vrcp.f32 %v2502_v42  ;;  %v2505_v56 = vadd.f32 1.0, %v5654_v44  ;;  %v2233_v63 = vpop.f32.mrf.mxu0 }
 0x2ed   : > { %v5658_v11 = vpop.eup %5657  ;;  %2630 = vst.msk [vmem:[#allocation3 + $0x39] sm:$0xff] %vm326_vm13, %v2597_v47  ;;  %v2595_v14 = vmul.f32 %v5656_v53, %v2371_v12  ;;  %v7245_v15 = vadd.f32 %v7210_v61, %v2343_v50  ;;  %v2341_v18 = vmul.f32 %v7205_v49, %v2233_v63 }
 0x2ee   : > { %5663 = vrcp.f32 %v2505_v56  ;;  %v2503_v19 = vadd.f32 1.0, %v5658_v11  ;;  %v5499_v22 = vpop.f32.mrf.mxu0 }
 0x2ef   : > { %2628 = vst.msk [vmem:[#allocation3 + $0x21] sm:$0xff] %vm326_vm13, %v2595_v14  ;;  %v5326_v23 = vmul.f32 -1.442695, %v7245_v15  ;;  %v7251_v29 = vadd.f32 %v7210_v61, %v2341_v18  ;;  %v2344_v48 = vmul.f32 %v5499_v22, %v7205_v49  ;;  %v2790_v22 = vpop.permute.xlu1 %2789 }
 0x2f0   : > { %5665 = vrcp.f32 %v2503_v19  ;;  %v2236_v1 = vpop.f32.mrf.mxu0  ;;  %v7254_v33 = vld [vmem:[#allocation3 + $0x30] sm:$0xff]  ;;  %v2660_v19 = vld [vmem:[#allocation3 + $0x8] sm:$0xff] }
 0x2f1   : > { %5667 = vpow2.f32 %v5326_v23  ;;  %v5324_v62 = vmul.f32 -1.442695, %v7251_v29  ;;  %v7258_v3 = vadd.f32 %v7210_v61, %v2344_v48  ;;  %v2342_v2 = vmul.f32 %v7205_v49, %v2236_v1  ;;  %2695 = vst.msk [vmem:[#allocation5 + $0x20] sm:$0xff] %vm326_vm13, %v7254_v33  ;;  %v7280_v12 = vld [vmem:[#allocation3 + $0x31] sm:$0xff]  ;;  %2692 = vst.msk [vmem:[#allocation5 + $0x8] sm:$0xff] %vm326_vm13, %v2660_v19 }
 0x2f2   : > { %v7263_v5 = vld [vmem:[#allocation3 + $0x19] sm:$0xff]  ;;  %2885 = vst.msk [vmem:[#allocation5 + $0x8] sm:$0xff] %vm2883_vm1, %v2790_v22 }
 0x2f3   : > { %v7265_v4 = vld [vmem:[#allocation3 + $0x18] sm:$0xff]  ;;  %5669 = vpow2.f32 %v5324_v62  ;;  %v5327_v7 = vmul.f32 -1.442695, %v7258_v3  ;;  %v7269_v35 = vadd.f32 %v7210_v61, %v2342_v2  ;;  %2791 = vrot.lane.b32.xlu0 %v7263_v5, %s5942_s9 }
 0x2f4   : > { %2693 = vst.msk [vmem:[#allocation5 + $0x10] sm:$0xff] %vm326_vm13, %v7265_v4  ;;  %v7275_v9 = vld [vmem:[#allocation3 + $0x38] sm:$0xff] }
 0x2f5   : > { %5671 = vpow2.f32 %v5327_v7  ;;  %v5325_v36 = vmul.f32 -1.442695, %v7269_v35  ;;  %2696 = vst.msk [vmem:[#allocation5 + $0x28] sm:$0xff] %vm326_vm13, %v7275_v9  ;;  %v7297_v55 = vld [vmem:[#allocation3 + $0x39] sm:$0xff] }
 0x2f6   : > { %v7282_v45 = vld [vmem:[#allocation3 + $0x21] sm:$0xff] }
 0x2f7   : > { %v7284_v10 = vld [vmem:[#allocation3 + $0x20] sm:$0xff]  ;;  %v5660_v38 = vpop.eup %5659  ;;  %5673 = vpow2.f32 %v5325_v36  ;;  %2795 = vrot.lane.b32.xlu0 %v7280_v12, %s5942_s9  ;;  %2793 = vrot.lane.b32.xlu1 %v7282_v45, %s5942_s9 }
 0x2f8   : > { %2694 = vst.msk [vmem:[#allocation5 + $0x18] sm:$0xff] %vm326_vm13, %v7284_v10  ;;  %v2600_v54 = vmul.f32 %v5660_v38, %v7222_v16 }
 0x2f9   : > { %v5662_v13 = vpop.eup %5661 }
 0x2fa   : > { %2633 = vst.msk [vmem:[#allocation3 + $0x61] sm:$0xff] %vm326_vm13, %v2600_v54  ;;  %v2598_v57 = vmul.f32 %v5662_v13, %v7227_v59 }
 0x2fb   : > { %v5664_v34 = vpop.eup %5663  ;;  %2797 = vrot.lane.b32.xlu1 %v7297_v55, %s5942_s9 }
 0x2fc   : > { %2631 = vst.msk [vmem:[#allocation3 + $0x49] sm:$0xff] %vm326_vm13, %v2598_v57  ;;  %v2601_v16 = vmul.f32 %v5664_v34, %v7232_v46 }
 0x2fd   : > { %v5666_v6 = vpop.eup %5665 }
 0x2fe   : > { %v5668_v58 = vpop.eup %5667  ;;  %2634 = vst.msk [vmem:[#allocation3 + $0x69] sm:$0xff] %vm326_vm13, %v2601_v16  ;;  %v2599_v8 = vmul.f32 %v5666_v6, %v7237_v28 }
 0x2ff   : > { %v2508_v17 = vadd.f32 1.0, %v5668_v58 }
 0x300   : > { %v5670_v60 = vpop.eup %5669  ;;  %2632 = vst.msk [vmem:[#allocation3 + $0x51] sm:$0xff] %vm326_vm13, %v2599_v8 }
 0x301   : > { %5675 = vrcp.f32 %v2508_v17  ;;  %v2506_v59 = vadd.f32 1.0, %v5670_v60  ;;  %v7306_v20 = vld [vmem:[#allocation3 + $0x60] sm:$0xff] }
 0x302   : > { %v5672_v24 = vpop.eup %5671  ;;  %v5502_v21 = vpop.f32.mrf.mxu0  ;;  %2699 = vst.msk [vmem:[#allocation5 + $0x40] sm:$0xff] %vm326_vm13, %v7306_v20  ;;  %v2731_v43 = vld [vmem:[#allocation3 + $0x61] sm:$0xff] }
 0x303   : > { %5677 = vrcp.f32 %v2506_v59  ;;  %v2509_v46 = vadd.f32 1.0, %v5672_v24  ;;  %v2347_v37 = vmul.f32 %v5502_v21, %v7205_v49  ;;  %v7311_v25 = vld [vmem:[#allocation3 + $0x49] sm:$0xff] }
 0x304   : > { %v7313_v28 = vld [vmem:[#allocation3 + $0x48] sm:$0xff]  ;;  %v5674_v0 = vpop.eup %5673  ;;  %2799 = vrot.lane.b32.xlu0 %v7311_v25, %s5942_s9  ;;  %v2249_v26 = vpop.f32.mrf.mxu0 }
 0x305   : > { %2697 = vst.msk [vmem:[#allocation5 + $0x30] sm:$0xff] %vm326_vm13, %v7313_v28  ;;  %5679 = vrcp.f32 %v2509_v46  ;;  %v2507_v27 = vadd.f32 1.0, %v5674_v0  ;;  %v7320_v30 = vadd.f32 %v7210_v61, %v2347_v37  ;;  %v2345_v31 = vmul.f32 %v7205_v49, %v2249_v26  ;;  %v7323_v32 = vld [vmem:[#allocation3 + $0x68] sm:$0xff] }
 0x306   : > { %v5503_v39 = vpop.f32.mrf.mxu0  ;;  %2700 = vst.msk [vmem:[#allocation5 + $0x48] sm:$0xff] %vm326_vm13, %v7323_v32  ;;  %v2732_v18 = vld [vmem:[#allocation3 + $0x69] sm:$0xff] }
 0x307   : > { %5681 = vrcp.f32 %v2507_v27  ;;  %v5330_v40 = vmul.f32 -1.442695, %v7320_v30  ;;  %v7329_v41 = vadd.f32 %v7210_v61, %v2345_v31  ;;  %v2348_v42 = vmul.f32 %v5503_v39, %v7205_v49  ;;  %v7332_v44 = vld [vmem:[#allocation3 + $0x51] sm:$0xff] }
 0x308   : > { %v7334_v47 = vld [vmem:[#allocation3 + $0x50] sm:$0xff]  ;;  %2803 = vrot.lane.b32.xlu0 %v2731_v43, %s5942_s9  ;;  %2801 = vrot.lane.b32.xlu1 %v7332_v44, %s5942_s9  ;;  %v2252_v50 = vpop.f32.mrf.mxu0 }
 0x309   : > { %2698 = vst.msk [vmem:[#allocation5 + $0x38] sm:$0xff] %vm326_vm13, %v7334_v47  ;;  %5683 = vpow2.f32 %v5330_v40  ;;  %v5328_v53 = vmul.f32 -1.442695, %v7329_v41  ;;  %v7343_v56 = vadd.f32 %v7210_v61, %v2348_v42  ;;  %v2346_v63 = vmul.f32 %v7205_v49, %v2252_v50 }
 0x30b   : > { %5685 = vpow2.f32 %v5328_v53  ;;  %v5331_v11 = vmul.f32 -1.442695, %v7343_v56  ;;  %v7348_v14 = vadd.f32 %v7210_v61, %v2346_v63 }
 0x30c   : > { %2805 = vrot.lane.b32.xlu1 %v2732_v18, %s5942_s9 }
 0x30d   : > { %5687 = vpow2.f32 %v5331_v11  ;;  %v5329_v23 = vmul.f32 -1.442695, %v7348_v14 }
 0x30e   : > { %v5676_v48 = vpop.eup %5675 }
 0x30f   : > { %v2604_v1 = vmul.f32 %v5676_v48, %v7245_v15  ;;  %5689 = vpow2.f32 %v5329_v23 }
 0x310   : > { %v5678_v62 = vpop.eup %5677 }
 0x311   : > { %2637 = vst.msk [vmem:[#allocation3 + $0x91] sm:$0xff] %vm326_vm13, %v2604_v1  ;;  %v2602_v2 = vmul.f32 %v5678_v62, %v7251_v29 }
 0x312   : > { %v5680_v7 = vpop.eup %5679 }
 0x313   : > { %2635 = vst.msk [vmem:[#allocation3 + $0x79] sm:$0xff] %vm326_vm13, %v2602_v2  ;;  %v2605_v36 = vmul.f32 %v5680_v7, %v7258_v3 }
 0x314   : > { %v5682_v38 = vpop.eup %5681 }
 0x315   : > { %2638 = vst.msk [vmem:[#allocation3 + $0x99] sm:$0xff] %vm326_vm13, %v2605_v36  ;;  %v2603_v51 = vmul.f32 %v5682_v38, %v7269_v35 }
 0x316   : > { %v5684_v54 = vpop.eup %5683 }
 0x317   : > { %2636 = vst.msk [vmem:[#allocation3 + $0x81] sm:$0xff] %vm326_vm13, %v2603_v51  ;;  %v2512_v15 = vadd.f32 1.0, %v5684_v54 }
 0x318   : > { %v5686_v52 = vpop.eup %5685  ;;  %v7362_v13 = vld [vmem:[#allocation3 + $0x90] sm:$0xff] }
 0x319   : > { %5691 = vrcp.f32 %v2512_v15  ;;  %v2510_v57 = vadd.f32 1.0, %v5686_v52  ;;  %2703 = vst.msk [vmem:[#allocation5 + $0x60] sm:$0xff] %vm326_vm13, %v7362_v13  ;;  %v2735_v46 = vld [vmem:[#allocation3 + $0x91] sm:$0xff] }
 0x31a   : > { %v5688_v29 = vpop.eup %5687  ;;  %v5506_v34 = vpop.f32.mrf.mxu1  ;;  %v2733_v3 = vld [vmem:[#allocation3 + $0x79] sm:$0xff] }
 0x31b   : > { %v7366_v16 = vld [vmem:[#allocation3 + $0x78] sm:$0xff]  ;;  %5693 = vrcp.f32 %v2510_v57  ;;  %v2513_v6 = vadd.f32 1.0, %v5688_v29  ;;  %v2351_v35 = vmul.f32 %v5506_v34, %v7205_v49  ;;  %2807 = vrot.lane.b32.xlu0 %v2733_v3, %s5942_s9 }
 0x31c   : > { %2701 = vst.msk [vmem:[#allocation5 + $0x50] sm:$0xff] %vm326_vm13, %v7366_v16  ;;  %v5690_v58 = vpop.eup %5689  ;;  %v2265_v8 = vpop.f32.mrf.mxu1  ;;  %v7372_v17 = vld [vmem:[#allocation3 + $0x98] sm:$0xff] }
 0x31d   : > { %5695 = vrcp.f32 %v2513_v6  ;;  %v2511_v60 = vadd.f32 1.0, %v5690_v58  ;;  %v7375_v59 = vadd.f32 %v7210_v61, %v2351_v35  ;;  %v2349_v24 = vmul.f32 %v7205_v49, %v2265_v8  ;;  %2704 = vst.msk [vmem:[#allocation5 + $0x68] sm:$0xff] %vm326_vm13, %v7372_v17  ;;  %v2736_v50 = vld [vmem:[#allocation3 + $0x99] sm:$0xff] }
 0x31e   : > { %v5507_v21 = vpop.f32.mrf.mxu1  ;;  %v2734_v37 = vld [vmem:[#allocation3 + $0x81] sm:$0xff] }
 0x31f   : > { %v7380_v0 = vld [vmem:[#allocation3 + $0x80] sm:$0xff]  ;;  %5697 = vrcp.f32 %v2511_v60  ;;  %v5334_v26 = vmul.f32 -1.442695, %v7375_v59  ;;  %v7384_v27 = vadd.f32 %v7210_v61, %v2349_v24  ;;  %v2352_v31 = vmul.f32 %v5507_v21, %v7205_v49  ;;  %2811 = vrot.lane.b32.xlu0 %v2735_v46, %s5942_s9  ;;  %2809 = vrot.lane.b32.xlu1 %v2734_v37, %s5942_s9 }
 0x320   : > { %2702 = vst.msk [vmem:[#allocation5 + $0x58] sm:$0xff] %vm326_vm13, %v7380_v0  ;;  %v2268_v39 = vpop.f32.mrf.mxu1 }
 0x321   : > { %5699 = vpow2.f32 %v5334_v26  ;;  %v5332_v40 = vmul.f32 -1.442695, %v7384_v27  ;;  %v7393_v42 = vadd.f32 %v7210_v61, %v2352_v31  ;;  %v2350_v43 = vmul.f32 %v7205_v49, %v2268_v39 }
 0x323   : > { %5701 = vpow2.f32 %v5332_v40  ;;  %v5335_v53 = vmul.f32 -1.442695, %v7393_v42  ;;  %v7398_v63 = vadd.f32 %v7210_v61, %v2350_v43  ;;  %2813 = vrot.lane.b32.xlu1 %v2736_v50, %s5942_s9 }
 0x325   : > { %5703 = vpow2.f32 %v5335_v53  ;;  %v5333_v11 = vmul.f32 -1.442695, %v7398_v63 }
 0x326   : > { %v5692_v18 = vpop.eup %5691 }
 0x327   : > { %v2608_v19 = vmul.f32 %v5692_v18, %v7320_v30  ;;  %5705 = vpow2.f32 %v5333_v11 }
 0x328   : > { %v5694_v22 = vpop.eup %5693 }
 0x329   : > { %2641 = vst.msk [vmem:[#allocation3 + $0xc1] sm:$0xff] %vm326_vm13, %v2608_v19  ;;  %v2606_v23 = vmul.f32 %v5694_v22, %v7329_v41 }
 0x32a   : > { %v5696_v48 = vpop.eup %5695 }
 0x32b   : > { %2639 = vst.msk [vmem:[#allocation3 + $0xa9] sm:$0xff] %vm326_vm13, %v2606_v23  ;;  %v2609_v1 = vmul.f32 %v5696_v48, %v7343_v56 }
 0x32c   : > { %v5698_v62 = vpop.eup %5697 }
 0x32d   : > { %2642 = vst.msk [vmem:[#allocation3 + $0xc9] sm:$0xff] %vm326_vm13, %v2609_v1  ;;  %v2607_v2 = vmul.f32 %v5698_v62, %v7348_v14 }
 0x32e   : > { %v5700_v7 = vpop.eup %5699 }
 0x32f   : > { %2640 = vst.msk [vmem:[#allocation3 + $0xb1] sm:$0xff] %vm326_vm13, %v2607_v2  ;;  %v2516_v30 = vadd.f32 1.0, %v5700_v7 }
 0x330   : > { %v5702_v36 = vpop.eup %5701  ;;  %v7410_v38 = vld [vmem:[#allocation3 + $0xc0] sm:$0xff] }
 0x331   : > { %5707 = vrcp.f32 %v2516_v30  ;;  %v2514_v51 = vadd.f32 1.0, %v5702_v36  ;;  %2707 = vst.msk [vmem:[#allocation5 + $0x80] sm:$0xff] %vm326_vm13, %v7410_v38  ;;  %v2739_v8 = vld [vmem:[#allocation3 + $0xc1] sm:$0xff] }
 0x332   : > { %v5704_v41 = vpop.eup %5703  ;;  %v5510_v54 = vpop.f32.mrf.mxu1  ;;  %v2737_v56 = vld [vmem:[#allocation3 + $0xa9] sm:$0xff] }
 0x333   : > { %v7414_v15 = vld [vmem:[#allocation3 + $0xa8] sm:$0xff]  ;;  %5709 = vrcp.f32 %v2514_v51  ;;  %v2517_v52 = vadd.f32 1.0, %v5704_v41  ;;  %v2355_v14 = vmul.f32 %v5510_v54, %v7205_v49  ;;  %2815 = vrot.lane.b32.xlu0 %v2737_v56, %s5942_s9 }
 0x334   : > { %2705 = vst.msk [vmem:[#allocation5 + $0x70] sm:$0xff] %vm326_vm13, %v7414_v15  ;;  %v5706_v57 = vpop.eup %5705  ;;  %v2281_v29 = vpop.f32.mrf.mxu1  ;;  %v7420_v34 = vld [vmem:[#allocation3 + $0xc8] sm:$0xff] }
 0x335   : > { %5711 = vrcp.f32 %v2517_v52  ;;  %v2515_v3 = vadd.f32 1.0, %v5706_v57  ;;  %v7423_v6 = vadd.f32 %v7210_v61, %v2355_v14  ;;  %v2353_v35 = vmul.f32 %v7205_v49, %v2281_v29  ;;  %2708 = vst.msk [vmem:[#allocation5 + $0x88] sm:$0xff] %vm326_vm13, %v7420_v34  ;;  %v2740_v43 = vld [vmem:[#allocation3 + $0xc9] sm:$0xff] }
 0x336   : > { %v5511_v58 = vpop.f32.mrf.mxu1  ;;  %v2738_v60 = vld [vmem:[#allocation3 + $0xb1] sm:$0xff] }
 0x337   : > { %v7428_v24 = vld [vmem:[#allocation3 + $0xb0] sm:$0xff]  ;;  %5713 = vrcp.f32 %v2515_v3  ;;  %v5338_v21 = vmul.f32 -1.442695, %v7423_v6  ;;  %v7432_v46 = vadd.f32 %v7210_v61, %v2353_v35  ;;  %v2356_v37 = vmul.f32 %v5511_v58, %v7205_v49  ;;  %2819 = vrot.lane.b32.xlu0 %v2739_v8, %s5942_s9  ;;  %2817 = vrot.lane.b32.xlu1 %v2738_v60, %s5942_s9 }
 0x338   : > { %2706 = vst.msk [vmem:[#allocation5 + $0x78] sm:$0xff] %vm326_vm13, %v7428_v24  ;;  %v2284_v26 = vpop.f32.mrf.mxu1 }
 0x339   : > { %5715 = vpow2.f32 %v5338_v21  ;;  %v5336_v31 = vmul.f32 -1.442695, %v7432_v46  ;;  %v7441_v39 = vadd.f32 %v7210_v61, %v2356_v37  ;;  %v2354_v40 = vmul.f32 %v7205_v49, %v2284_v26 }
 0x33b   : > { %5717 = vpow2.f32 %v5336_v31  ;;  %v5339_v50 = vmul.f32 -1.442695, %v7441_v39  ;;  %v7446_v53 = vadd.f32 %v7210_v61, %v2354_v40  ;;  %2821 = vrot.lane.b32.xlu1 %v2740_v43, %s5942_s9 }
 0x33d   : > { %5719 = vpow2.f32 %v5339_v50  ;;  %v5337_v11 = vmul.f32 -1.442695, %v7446_v53 }
 0x33e   : > { %v5708_v18 = vpop.eup %5707 }
 0x33f   : > { %v2612_v19 = vmul.f32 %v5708_v18, %v7375_v59  ;;  %5721 = vpow2.f32 %v5337_v11 }
 0x340   : > { %v5710_v22 = vpop.eup %5709 }
 0x341   : > { %2645 = vst.msk [vmem:[#allocation3 + $0xf1] sm:$0xff] %vm326_vm13, %v2612_v19  ;;  %v2610_v23 = vmul.f32 %v5710_v22, %v7384_v27 }
 0x342   : > { %v5712_v48 = vpop.eup %5711 }
 0x343   : > { %2643 = vst.msk [vmem:[#allocation3 + $0xd9] sm:$0xff] %vm326_vm13, %v2610_v23  ;;  %v2613_v1 = vmul.f32 %v5712_v48, %v7393_v42 }
 0x344   : > { %v5714_v62 = vpop.eup %5713 }
 0x345   : > { %2646 = vst.msk [vmem:[#allocation3 + $0xf9] sm:$0xff] %vm326_vm13, %v2613_v1  ;;  %v2611_v2 = vmul.f32 %v5714_v62, %v7398_v63 }
 0x346   : > { %v5716_v7 = vpop.eup %5715 }
 0x347   : > { %2644 = vst.msk [vmem:[#allocation3 + $0xe1] sm:$0xff] %vm326_vm13, %v2611_v2  ;;  %v2520_v59 = vadd.f32 1.0, %v5716_v7 }
 0x348   : > { %v5718_v30 = vpop.eup %5717  ;;  %v7458_v36 = vld [vmem:[#allocation3 + $0xf0] sm:$0xff] }
 0x349   : > { %5723 = vrcp.f32 %v2520_v59  ;;  %v2518_v51 = vadd.f32 1.0, %v5718_v30  ;;  %2711 = vst.msk [vmem:[#allocation5 + $0xa0] sm:$0xff] %vm326_vm13, %v7458_v36  ;;  %v2743_v8 = vld [vmem:[#allocation3 + $0xf1] sm:$0xff] }
 0x34a   : > { %v5720_v27 = vpop.eup %5719  ;;  %v5514_v41 = vpop.f32.mrf.mxu1  ;;  %v2741_v42 = vld [vmem:[#allocation3 + $0xd9] sm:$0xff] }
 0x34b   : > { %v7462_v54 = vld [vmem:[#allocation3 + $0xd8] sm:$0xff]  ;;  %5725 = vrcp.f32 %v2518_v51  ;;  %v2521_v56 = vadd.f32 1.0, %v5720_v27  ;;  %v2359_v63 = vmul.f32 %v5514_v41, %v7205_v49  ;;  %2823 = vrot.lane.b32.xlu0 %v2741_v42, %s5942_s9 }
 0x34c   : > { %2709 = vst.msk [vmem:[#allocation5 + $0x90] sm:$0xff] %vm326_vm13, %v7462_v54  ;;  %v5722_v52 = vpop.eup %5721  ;;  %v2297_v14 = vpop.f32.mrf.mxu1  ;;  %v7472_v35 = vld [vmem:[#allocation3 + $0xf8] sm:$0xff] }
 0x34d   : > { %5727 = vrcp.f32 %v2521_v56  ;;  %v2519_v57 = vadd.f32 1.0, %v5722_v52  ;;  %v7469_v29 = vadd.f32 %v7210_v61, %v2359_v63  ;;  %v2357_v3 = vmul.f32 %v7205_v49, %v2297_v14  ;;  %2712 = vst.msk [vmem:[#allocation5 + $0xa8] sm:$0xff] %vm326_vm13, %v7472_v35  ;;  %v2744_v18 = vld [vmem:[#allocation3 + $0xf9] sm:$0xff] }
 0x34e   : > { %v5515_v58 = vpop.f32.mrf.mxu1  ;;  %v2742_v60 = vld [vmem:[#allocation3 + $0xe1] sm:$0xff] }
 0x34f   : > { %5729 = vrcp.f32 %v2519_v57  ;;  %v5342_v21 = vmul.f32 -1.442695, %v7469_v29  ;;  %v7478_v37 = vadd.f32 %v7210_v61, %v2357_v3  ;;  %v2360_v26 = vmul.f32 %v5515_v58, %v7205_v49  ;;  %2827 = vrot.lane.b32.xlu0 %v2743_v8, %s5942_s9  ;;  %2825 = vrot.lane.b32.xlu1 %v2742_v60, %s5942_s9  ;;  %v7483_v31 = vld [vmem:[#allocation3 + $0xe0] sm:$0xff] }
 0x350   : > { %v2300_v40 = vpop.f32.mrf.mxu1  ;;  %2710 = vst.msk [vmem:[#allocation5 + $0x98] sm:$0xff] %vm326_vm13, %v7483_v31 }
 0x351   : > { %5731 = vpow2.f32 %v5342_v21  ;;  %v5340_v43 = vmul.f32 -1.442695, %v7478_v37  ;;  %v7489_v50 = vadd.f32 %v7210_v61, %v2360_v26  ;;  %v2358_v11 = vmul.f32 %v7205_v49, %v2300_v40 }
 0x353   : > { %5733 = vpow2.f32 %v5340_v43  ;;  %v5343_v19 = vmul.f32 -1.442695, %v7489_v50  ;;  %v7494_v22 = vadd.f32 %v7210_v61, %v2358_v11  ;;  %2829 = vrot.lane.b32.xlu1 %v2744_v18, %s5942_s9 }
 0x355   : > { %5735 = vpow2.f32 %v5343_v19  ;;  %v5341_v23 = vmul.f32 -1.442695, %v7494_v22 }
 0x356   : > { %v5724_v48 = vpop.eup %5723 }
 0x357   : > { %v2616_v1 = vmul.f32 %v5724_v48, %v7423_v6  ;;  %5737 = vpow2.f32 %v5341_v23 }
 0x358   : > { %v5726_v62 = vpop.eup %5725 }
 0x359   : > { %2649 = vst.msk [vmem:[#allocation3 + $0x121] sm:$0xff] %vm326_vm13, %v2616_v1  ;;  %v2614_v2 = vmul.f32 %v5726_v62, %v7432_v46 }
 0x35a   : > { %v5728_v7 = vpop.eup %5727 }
 0x35b   : > { %2647 = vst.msk [vmem:[#allocation3 + $0x109] sm:$0xff] %vm326_vm13, %v2614_v2  ;;  %v2617_v59 = vmul.f32 %v5728_v7, %v7441_v39 }
 0x35c   : > { %v5730_v30 = vpop.eup %5729 }
 0x35d   : > { %2650 = vst.msk [vmem:[#allocation3 + $0x129] sm:$0xff] %vm326_vm13, %v2617_v59  ;;  %v2615_v51 = vmul.f32 %v5730_v30, %v7446_v53 }
 0x35e   : > { %v5732_v27 = vpop.eup %5731 }
 0x35f   : > { %2648 = vst.msk [vmem:[#allocation3 + $0x111] sm:$0xff] %vm326_vm13, %v2615_v51  ;;  %v2524_v6 = vadd.f32 1.0, %v5732_v27 }
 0x360   : > { %v5734_v41 = vpop.eup %5733  ;;  %v2683_v42 = vld [vmem:[#allocation3 + $0x120] sm:$0xff] }
 0x361   : > { %5739 = vrcp.f32 %v2524_v6  ;;  %v2522_v56 = vadd.f32 1.0, %v5734_v41  ;;  %2715 = vst.msk [vmem:[#allocation5 + $0xc0] sm:$0xff] %vm326_vm13, %v2683_v42  ;;  %v2747_v43 = vld [vmem:[#allocation3 + $0x121] sm:$0xff] }
 0x362   : > { %v5736_v46 = vpop.eup %5735  ;;  %v5518_v63 = vpop.f32.mrf.mxu1  ;;  %v2745_v52 = vld [vmem:[#allocation3 + $0x109] sm:$0xff] }
 0x363   : > { %v7507_v14 = vld [vmem:[#allocation3 + $0x108] sm:$0xff]  ;;  %5741 = vrcp.f32 %v2522_v56  ;;  %v2525_v39 = vadd.f32 1.0, %v5736_v46  ;;  %v2363_v57 = vmul.f32 %v5518_v63, %v7205_v49  ;;  %2831 = vrot.lane.b32.xlu0 %v2745_v52, %s5942_s9 }
 0x364   : > { %2713 = vst.msk [vmem:[#allocation5 + $0xb0] sm:$0xff] %vm326_vm13, %v7507_v14  ;;  %v5738_v53 = vpop.eup %5737  ;;  %v2313_v3 = vpop.f32.mrf.mxu1  ;;  %v2684_v26 = vld [vmem:[#allocation3 + $0x128] sm:$0xff] }
 0x365   : > { %5743 = vrcp.f32 %v2525_v39  ;;  %v2523_v58 = vadd.f32 1.0, %v5738_v53  ;;  %v7514_v8 = vadd.f32 %v7210_v61, %v2363_v57  ;;  %v2361_v60 = vmul.f32 %v7205_v49, %v2313_v3  ;;  %v2792_v21 = vpop.permute.xlu0 %2791  ;;  %2716 = vst.msk [vmem:[#allocation5 + $0xc8] sm:$0xff] %vm326_vm13, %v2684_v26  ;;  %v2748_v51 = vld [vmem:[#allocation3 + $0x129] sm:$0xff] }
 0x366   : > { %2886 = vst.msk [vmem:[#allocation5 + $0x10] sm:$0xff] %vm2883_vm1, %v2792_v21  ;;  %v5519_v40 = vpop.f32.mrf.mxu1  ;;  %v2746_v11 = vld [vmem:[#allocation3 + $0x111] sm:$0xff] }
 0x367   : > { %5745 = vrcp.f32 %v2523_v58  ;;  %v5346_v18 = vmul.f32 -1.442695, %v7514_v8  ;;  %v7521_v19 = vadd.f32 %v7210_v61, %v2361_v60  ;;  %v2364_v23 = vmul.f32 %v5519_v40, %v7205_v49  ;;  %2835 = vrot.lane.b32.xlu0 %v2747_v43, %s5942_s9  ;;  %2833 = vrot.lane.b32.xlu1 %v2746_v11, %s5942_s9  ;;  %v7526_v48 = vld [vmem:[#allocation3 + $0x110] sm:$0xff] }
 0x368   : > { %v2316_v1 = vpop.f32.mrf.mxu1  ;;  %2714 = vst.msk [vmem:[#allocation5 + $0xb8] sm:$0xff] %vm326_vm13, %v7526_v48 }
 0x369   : > { %5747 = vpow2.f32 %v5346_v18  ;;  %v5344_v62 = vmul.f32 -1.442695, %v7521_v19  ;;  %v7532_v2 = vadd.f32 %v7210_v61, %v2364_v23  ;;  %v2362_v7 = vmul.f32 %v7205_v49, %v2316_v1  ;;  %v2796_v59 = vpop.permute.xlu0 %2795  ;;  %v2794_v30 = vpop.permute.xlu1 %2793 }
 0x36a   : > { %2888 = vst.msk [vmem:[#allocation5 + $0x20] sm:$0xff] %vm2883_vm1, %v2796_v59  ;;  %2887 = vst.msk [vmem:[#allocation5 + $0x18] sm:$0xff] %vm2883_vm1, %v2794_v30 }
 0x36b   : > { %5749 = vpow2.f32 %v5344_v62  ;;  %v5347_v27 = vmul.f32 -1.442695, %v7532_v2  ;;  %v7539_v6 = vadd.f32 %v7210_v61, %v2362_v7  ;;  %2837 = vrot.lane.b32.xlu1 %v2748_v51, %s5942_s9 }
 0x36d   : > { %5751 = vpow2.f32 %v5347_v27  ;;  %v5345_v41 = vmul.f32 -1.442695, %v7539_v6  ;;  %v2798_v42 = vpop.permute.xlu1 %2797 }
 0x36e   : > { %v5740_v49 = vpop.eup %5739  ;;  %2889 = vst.msk [vmem:[#allocation5 + $0x28] sm:$0xff] %vm2883_vm1, %v2798_v42 }
 0x36f   : > { %v2620_v56 = vmul.f32 %v5740_v49, %v7469_v29  ;;  %5753 = vpow2.f32 %v5345_v41 }
 0x370   : > { %v5742_v46 = vpop.eup %5741 }
 0x371   : > { %2653 = vst.msk [vmem:[#allocation3 + $0x151] sm:$0xff] %vm326_vm13, %v2620_v56  ;;  %v2618_v63 = vmul.f32 %v5742_v46, %v7478_v37 }
 0x372   : > { %v5744_v52 = vpop.eup %5743 }
 0x373   : > { %2651 = vst.msk [vmem:[#allocation3 + $0x139] sm:$0xff] %vm326_vm13, %v2618_v63  ;;  %v2621_v61 = vmul.f32 %v5744_v52, %v7489_v50 }
 0x374   : > { %v5746_v39 = vpop.eup %5745 }
 0x375   : > { %2654 = vst.msk [vmem:[#allocation3 + $0x159] sm:$0xff] %vm326_vm13, %v2621_v61  ;;  %v2619_v57 = vmul.f32 %v5746_v39, %v7494_v22 }
 0x376   : > { %v5748_v53 = vpop.eup %5747  ;;  %v2800_v3 = vpop.permute.xlu0 %2799 }
 0x377   : > { %2652 = vst.msk [vmem:[#allocation3 + $0x141] sm:$0xff] %vm326_vm13, %v2619_v57  ;;  %v2528_v29 = vadd.f32 1.0, %v5748_v53 }
 0x378   : > { %2890 = vst.msk [vmem:[#allocation5 + $0x30] sm:$0xff] %vm2883_vm1, %v2800_v3  ;;  %v5750_v58 = vpop.eup %5749  ;;  %v2687_v60 = vld [vmem:[#allocation3 + $0x150] sm:$0xff] }
 0x379   : > { %5755 = vrcp.f32 %v2528_v29  ;;  %v2526_v37 = vadd.f32 1.0, %v5750_v58  ;;  %2719 = vst.msk [vmem:[#allocation5 + $0xe0] sm:$0xff] %vm326_vm13, %v2687_v60  ;;  %v2751_v62 = vld [vmem:[#allocation3 + $0x151] sm:$0xff]  ;;  %v7581_v29 = vld [vmem:[#allocation3 + $0x1a] sm:$0xff]  ;;  %v7588_v60 = vld [vmem:[#allocation3 + $0x22] sm:$0xff] }
 0x37a   : > { %v5752_v21 = vpop.eup %5751  ;;  %v2804_v50 = vpop.permute.xlu0 %2803  ;;  %v2749_v40 = vld [vmem:[#allocation3 + $0x139] sm:$0xff]  ;;  %v2917_v3 = vld [vmem:[#allocation3 + $0xa] sm:$0xff] }
 0x37b   : > { %v2802_v26 = vpop.permute.xlu1 %2801  ;;  %v2685_v43 = vld [vmem:[#allocation3 + $0x138] sm:$0xff]  ;;  %5757 = vrcp.f32 %v2526_v37  ;;  %v2529_v22 = vadd.f32 1.0, %v5752_v21  ;;  %2892 = vst.msk [vmem:[#allocation5 + $0x40] sm:$0xff] %vm2883_vm1, %v2804_v50  ;;  %2839 = vrot.lane.b32.xlu0 %v2749_v40, %s5942_s9  ;;  %v7594_v37 = vld [vmem:[#allocation3 + $0x4a] sm:$0xff] }
 0x37c   : > { %2891 = vst.msk [vmem:[#allocation5 + $0x38] sm:$0xff] %vm2883_vm1, %v2802_v26  ;;  %v5754_v11 = vpop.eup %5753  ;;  %v2688_v23 = vld [vmem:[#allocation3 + $0x158] sm:$0xff]  ;;  %v7603_v26 = vld [vmem:[#allocation3 + $0x62] sm:$0xff] }
 0x37d   : > { %2717 = vst.msk [vmem:[#allocation5 + $0xd0] sm:$0xff] %vm326_vm13, %v2685_v43  ;;  %5759 = vrcp.f32 %v2529_v22  ;;  %v2527_v18 = vadd.f32 1.0, %v5754_v11  ;;  %2720 = vst.msk [vmem:[#allocation5 + $0xe8] sm:$0xff] %vm326_vm13, %v2688_v23  ;;  %v2752_v30 = vld [vmem:[#allocation3 + $0x159] sm:$0xff] }
 0x37e   : > { %v2750_v7 = vld [vmem:[#allocation3 + $0x141] sm:$0xff]  ;;  %v7586_v58 = vld [vmem:[#allocation3 + $0x32] sm:$0xff] }
 0x37f   : > { %v2806_v1 = vpop.permute.xlu1 %2805  ;;  %5761 = vrcp.f32 %v2527_v18  ;;  %2843 = vrot.lane.b32.xlu0 %v2751_v62, %s5942_s9  ;;  %2841 = vrot.lane.b32.xlu1 %v2750_v7, %s5942_s9  ;;  %v2686_v59 = vld [vmem:[#allocation3 + $0x140] sm:$0xff]  ;;  %v7605_v40 = vld [vmem:[#allocation3 + $0x52] sm:$0xff]  ;;  %v7615_v18 = vld [vmem:[#allocation3 + $0x6a] sm:$0xff] }
 0x380   : > { %2893 = vst.msk [vmem:[#allocation5 + $0x48] sm:$0xff] %vm2883_vm1, %v2806_v1  ;;  %v7596_v21 = vld [vmem:[#allocation3 + $0x3a] sm:$0xff]  ;;  %v7622_v1 = vld [vmem:[#allocation3 + $0x92] sm:$0xff]  ;;  %v7624_v62 = vld [vmem:[#allocation3 + $0x82] sm:$0xff] }
 0x381   : > { %2718 = vst.msk [vmem:[#allocation5 + $0xd8] sm:$0xff] %vm326_vm13, %v2686_v59  ;;  %v7613_v11 = vld [vmem:[#allocation3 + $0x7a] sm:$0xff]  ;;  %v7630_v7 = vld [vmem:[#allocation3 + $0xaa] sm:$0xff] }
 0x382   : > { %v7632_v59 = vld [vmem:[#allocation3 + $0x9a] sm:$0xff] }
 0x383   : > { %2845 = vrot.lane.b32.xlu1 %v2752_v30, %s5942_s9  ;;  %v7638_v30 = vld [vmem:[#allocation3 + $0xc2] sm:$0xff] }
 0x386   : > { %v5756_v51 = vpop.eup %5755 }
 0x387   : > { %v2624_v27 = vmul.f32 %v5756_v51, %v7514_v8  ;;  %v7640_v51 = vld [vmem:[#allocation3 + $0xb2] sm:$0xff] }
 0x388   : > { %v5758_v41 = vpop.eup %5757 }
 0x389   : > { %2657 = vst.msk [vmem:[#allocation3 + $0x181] sm:$0xff] %vm326_vm13, %v2624_v27  ;;  %v2622_v42 = vmul.f32 %v5758_v41, %v7521_v19  ;;  %v7646_v27 = vld [vmem:[#allocation3 + $0xda] sm:$0xff]  ;;  %v7648_v41 = vld [vmem:[#allocation3 + $0xca] sm:$0xff] }
 0x38a   : > { %v5760_v49 = vpop.eup %5759 }
 0x38b   : > { %2655 = vst.msk [vmem:[#allocation3 + $0x169] sm:$0xff] %vm326_vm13, %v2622_v42  ;;  %v2625_v56 = vmul.f32 %v5760_v49, %v7532_v2  ;;  %v2916_v2 = vld [vmem:[#allocation3 + $0x2] sm:$0xff]  ;;  %v7655_v49 = vld [vmem:[#allocation3 + $0xf2] sm:$0xff] }
 0x38c   : > { %v5762_v46 = vpop.eup %5761 }
 0x38d   : > { %2658 = vst.msk [vmem:[#allocation3 + $0x189] sm:$0xff] %vm326_vm13, %v2625_v56  ;;  %v2623_v63 = vmul.f32 %v5762_v46, %v7539_v6  ;;  %v2808_v52 = vpop.permute.xlu0 %2807  ;;  %v7657_v56 = vld [vmem:[#allocation3 + $0xe2] sm:$0xff] }
 0x38e   : > { %2894 = vst.msk [vmem:[#allocation5 + $0x50] sm:$0xff] %vm2883_vm1, %v2808_v52  ;;  %v2938_v52 = vld [vmem:[#allocation3 + $0x10a] sm:$0xff] }
 0x38f   : > { %2656 = vst.msk [vmem:[#allocation3 + $0x171] sm:$0xff] %vm326_vm13, %v2623_v63 }
 0x391   : > { %v2812_v8 = vpop.permute.xlu0 %2811  ;;  %v2810_v61 = vpop.permute.xlu1 %2809 }
 0x392   : > { %2896 = vst.msk [vmem:[#allocation5 + $0x60] sm:$0xff] %vm2883_vm1, %v2812_v8  ;;  %2895 = vst.msk [vmem:[#allocation5 + $0x58] sm:$0xff] %vm2883_vm1, %v2810_v61  ;;  %v2753_v19 = vld [vmem:[#allocation3 + $0x169] sm:$0xff]  ;;  %v7665_v8 = vld [vmem:[#allocation3 + $0xfa] sm:$0xff] }
 0x393   : > { %v2689_v39 = vld [vmem:[#allocation3 + $0x168] sm:$0xff]  ;;  %2847 = vrot.lane.b32.xlu0 %v2753_v19, %s5942_s9 }
 0x394   : > { %2721 = vst.msk [vmem:[#allocation5 + $0xf0] sm:$0xff] %vm326_vm13, %v2689_v39  ;;  %v2940_v19 = vld [vmem:[#allocation3 + $0x122] sm:$0xff]  ;;  %v2939_v39 = vld [vmem:[#allocation3 + $0x112] sm:$0xff] }
 0x395   : > { %v2814_v57 = vpop.permute.xlu1 %2813 }
 0x396   : > { %2897 = vst.msk [vmem:[#allocation5 + $0x68] sm:$0xff] %vm2883_vm1, %v2814_v57  ;;  %v2754_v6 = vld [vmem:[#allocation3 + $0x171] sm:$0xff] }
 0x397   : > { %2980 = vrot.lane.b32.xlu0 %v2916_v2, %s5944_s11  ;;  %2849 = vrot.lane.b32.xlu1 %v2754_v6, %s5942_s9  ;;  %v2690_v53 = vld [vmem:[#allocation3 + $0x170] sm:$0xff]  ;;  %v2942_v2 = vld [vmem:[#allocation3 + $0x13a] sm:$0xff] }
 0x398   : > { %2722 = vst.msk [vmem:[#allocation5 + $0xf8] sm:$0xff] %vm326_vm13, %v2690_v53  ;;  %v2941_v57 = vld [vmem:[#allocation3 + $0x12a] sm:$0xff]  ;;  %v2944_v6 = vld [vmem:[#allocation3 + $0x152] sm:$0xff]  ;;  %v2943_v53 = vld [vmem:[#allocation3 + $0x142] sm:$0xff] }
 0x39b   : > { %2984 = vrot.lane.b32.xlu0 %v7581_v29, %s5944_s11  ;;  %2982 = vrot.lane.b32.xlu1 %v2917_v3, %s5944_s11  ;;  %v2946_v3 = vld [vmem:[#allocation3 + $0x16a] sm:$0xff] }
 0x39f   : > { %2988 = vrot.lane.b32.xlu0 %v7586_v58, %s5944_s11  ;;  %2986 = vrot.lane.b32.xlu1 %v7588_v60, %s5944_s11 }
 0x3a3   : > { %2992 = vrot.lane.b32.xlu0 %v7594_v37, %s5944_s11  ;;  %2990 = vrot.lane.b32.xlu1 %v7596_v21, %s5944_s11 }
 0x3a5   : > { %v2816_v50 = vpop.permute.xlu0 %2815 }
 0x3a6   : > { %2898 = vst.msk [vmem:[#allocation5 + $0x70] sm:$0xff] %vm2883_vm1, %v2816_v50  ;;  %v2945_v50 = vld [vmem:[#allocation3 + $0x15a] sm:$0xff] }
 0x3a7   : > { %2996 = vrot.lane.b32.xlu0 %v7603_v26, %s5944_s11  ;;  %2994 = vrot.lane.b32.xlu1 %v7605_v40, %s5944_s11 }
 0x3a9   : > { %v2820_v43 = vpop.permute.xlu0 %2819  ;;  %v2818_v22 = vpop.permute.xlu1 %2817 }
 0x3aa   : > { %2900 = vst.msk [vmem:[#allocation5 + $0x80] sm:$0xff] %vm2883_vm1, %v2820_v43  ;;  %2899 = vst.msk [vmem:[#allocation5 + $0x78] sm:$0xff] %vm2883_vm1, %v2818_v22  ;;  %v2947_v22 = vld [vmem:[#allocation3 + $0x172] sm:$0xff] }
 0x3ab   : > { %3000 = vrot.lane.b32.xlu0 %v7613_v11, %s5944_s11  ;;  %2998 = vrot.lane.b32.xlu1 %v7615_v18, %s5944_s11 }
 0x3ad   : > { %v2822_v23 = vpop.permute.xlu1 %2821 }
 0x3ae   : > { %2901 = vst.msk [vmem:[#allocation5 + $0x88] sm:$0xff] %vm2883_vm1, %v2822_v23 }
 0x3af   : > { %3004 = vrot.lane.b32.xlu0 %v7622_v1, %s5944_s11  ;;  %3002 = vrot.lane.b32.xlu1 %v7624_v62, %s5944_s11 }
 0x3b3   : > { %3008 = vrot.lane.b32.xlu0 %v7630_v7, %s5944_s11  ;;  %3006 = vrot.lane.b32.xlu1 %v7632_v59, %s5944_s11 }
 0x3b7   : > { %3012 = vrot.lane.b32.xlu0 %v7638_v30, %s5944_s11  ;;  %3010 = vrot.lane.b32.xlu1 %v7640_v51, %s5944_s11 }
 0x3bb   : > { %3016 = vrot.lane.b32.xlu0 %v7646_v27, %s5944_s11  ;;  %3014 = vrot.lane.b32.xlu1 %v7648_v41, %s5944_s11 }
 0x3bd   : > { %v2824_v42 = vpop.permute.xlu0 %2823 }
 0x3be   : > { %2902 = vst.msk [vmem:[#allocation5 + $0x90] sm:$0xff] %vm2883_vm1, %v2824_v42 }
 0x3bf   : > { %3020 = vrot.lane.b32.xlu0 %v7655_v49, %s5944_s11  ;;  %3018 = vrot.lane.b32.xlu1 %v7657_v56, %s5944_s11 }
 0x3c1   : > { %v2828_v46 = vpop.permute.xlu0 %2827  ;;  %v2826_v63 = vpop.permute.xlu1 %2825 }
 0x3c2   : > { %2904 = vst.msk [vmem:[#allocation5 + $0xa0] sm:$0xff] %vm2883_vm1, %v2828_v46  ;;  %2903 = vst.msk [vmem:[#allocation5 + $0x98] sm:$0xff] %vm2883_vm1, %v2826_v63 }
 0x3c3   : > { %3024 = vrot.lane.b32.xlu0 %v2938_v52, %s5944_s11  ;;  %3022 = vrot.lane.b32.xlu1 %v7665_v8, %s5944_s11  ;;  %v5895_v52 = vld [vmem:[#allocation2 + $0x31] sm:$0xff] }
 0x3c5   : > { %v2830_v61 = vpop.permute.xlu1 %2829 }
 0x3c6   : > { %2905 = vst.msk [vmem:[#allocation5 + $0xa8] sm:$0xff] %vm2883_vm1, %v2830_v61  ;;  %v5896_v61 = vld [vmem:[#allocation2 + $0x39] sm:$0xff] }
 0x3c7   : > { %3028 = vrot.lane.b32.xlu0 %v2940_v19, %s5944_s11  ;;  %3026 = vrot.lane.b32.xlu1 %v2939_v39, %s5944_s11  ;;  %v4641_v19 = vpack.c.bf16 %v5896_v61, %v5895_v52 }
 0x3cb   : > { %3032 = vrot.lane.b32.xlu0 %v2942_v2, %s5944_s11  ;;  %3030 = vrot.lane.b32.xlu1 %v2941_v57, %s5944_s11  ;;  %v5898_v57 = vld [vmem:[#allocation2 + $0x51] sm:$0xff] }
 0x3cf   : > { %3036 = vrot.lane.b32.xlu0 %v2944_v6, %s5944_s11  ;;  %3034 = vrot.lane.b32.xlu1 %v2943_v53, %s5944_s11 }
 0x3d3   : > { %3040 = vrot.lane.b32.xlu0 %v2946_v3, %s5944_s11  ;;  %3038 = vrot.lane.b32.xlu1 %v2945_v50, %s5944_s11  ;;  %v3306_v50 = vld [vmem:[#allocation3 + $0x49] sm:$0xff] }
 0x3d5   : > { %v2832_v43 = vpop.permute.xlu0 %2831 }
 0x3d6   : > { %2906 = vst.msk [vmem:[#allocation5 + $0xb0] sm:$0xff] %vm2883_vm1, %v2832_v43  ;;  %v5899_v43 = vld [vmem:[#allocation2 + $0x61] sm:$0xff] }
 0x3d7   : > { %3173 = vrot.lane.b32.xlu0 %v7265_v4, %s5946_s13  ;;  %3042 = vrot.lane.b32.xlu1 %v2947_v22, %s5944_s11  ;;  %v5900_v22 = vld [vmem:[#allocation2 + $0x69] sm:$0xff] }
 0x3d9   : > { %v2836_v23 = vpop.permute.xlu0 %2835  ;;  %v2834_v42 = vpop.permute.xlu1 %2833 }
 0x3da   : > { %2908 = vst.msk [vmem:[#allocation5 + $0xc0] sm:$0xff] %vm2883_vm1, %v2836_v23  ;;  %2907 = vst.msk [vmem:[#allocation5 + $0xb8] sm:$0xff] %vm2883_vm1, %v2834_v42  ;;  %v4643_v23 = vpack.c.bf16 %v5900_v22, %v5899_v43  ;;  %v5915_v43 = vld [vmem:[#allocation2 + $0xf9] sm:$0xff] }
 0x3db   : > { %3177 = vrot.lane.b32.xlu0 %v7254_v33, %s5946_s13  ;;  %3175 = vrot.lane.b32.xlu1 %v7284_v10, %s5946_s13 }
 0x3dd   : > { %v2838_v46 = vpop.permute.xlu1 %2837 }
 0x3de   : > { %2909 = vst.msk [vmem:[#allocation5 + $0xc8] sm:$0xff] %vm2883_vm1, %v2838_v46  ;;  %v5901_v46 = vld [vmem:[#allocation2 + $0x79] sm:$0xff] }
 0x3df   : > { %3181 = vrot.lane.b32.xlu0 %v7313_v28, %s5946_s13  ;;  %3179 = vrot.lane.b32.xlu1 %v7275_v9, %s5946_s13 }
 0x3e3   : > { %3185 = vrot.lane.b32.xlu0 %v7306_v20, %s5946_s13  ;;  %3183 = vrot.lane.b32.xlu1 %v7334_v47, %s5946_s13 }
 0x3e7   : > { %3366 = vrot.lane.b32.xlu0 %v7263_v5, %s5948_s19  ;;  %3187 = vrot.lane.b32.xlu1 %v7323_v32, %s5946_s13 }
 0x3eb   : > { %3370 = vrot.lane.b32.xlu0 %v7280_v12, %s5948_s19  ;;  %3368 = vrot.lane.b32.xlu1 %v7282_v45, %s5948_s19  ;;  %v5630_v45 = vld [vmem:[%s8528_s3 + $0x20] ss:$0 sps:$4 sm:$0xff]  }
 0x3ec   : > { %5604 = vmatprep.subr.msk.bf16.mxu1 %vm4401_vm2, %v5630_v45 }
 0x3ed   : > { %v2840_v4 = vpop.permute.xlu0 %2839 }
 0x3ee   : > { %2910 = vst.msk [vmem:[#allocation5 + $0xd0] sm:$0xff] %vm2883_vm1, %v2840_v4  ;;  %v5902_v4 = vld [vmem:[#allocation2 + $0x81] sm:$0xff] }
 0x3ef   : > { %3559 = vrot.lane.b32.xlu0 %v7581_v29, %s5949_s29  ;;  %3372 = vrot.lane.b32.xlu1 %v7297_v55, %s5948_s19  ;;  %v4403_v55 = vsel %vm4401_vm2, %v5630_v45, 0  ;;  %v5893_v29 = vld [vmem:[#allocation3 + $0x31] sm:$0xff] }
 0x3f0   : > { %5521 = vmatpush3.bf16.msra.mxu1 %v4403_v55 }
 0x3f1   : > { %v2844_v5 = vpop.permute.xlu0 %2843  ;;  %v2842_v10 = vpop.permute.xlu1 %2841 }
 0x3f2   : > { %2912 = vst.msk [vmem:[#allocation5 + $0xe0] sm:$0xff] %vm2883_vm1, %v2844_v5  ;;  %2911 = vst.msk [vmem:[#allocation5 + $0xd8] sm:$0xff] %vm2883_vm1, %v2842_v10  ;;  %v4644_v5 = vpack.c.bf16 %v5902_v4, %v5901_v46  ;;  %v5903_v10 = vld [vmem:[#allocation3 + $0x61] sm:$0xff]  ;;  %v3888_v4 = vld [vmem:[#allocation3 + $0x79] sm:$0xff] }
 0x3f3   : > { %3563 = vrot.lane.b32.xlu0 %v7586_v58, %s5949_s29  ;;  %3561 = vrot.lane.b32.xlu1 %v7588_v60, %s5949_s29  ;;  %v5633_v60 = vld [vmem:[%s8528_s3 + $0x8] sm:$0xff]  }
 0x3f5   : > { %v2846_v12 = vpop.permute.xlu1 %2845 }
 0x3f6   : > { %2913 = vst.msk [vmem:[#allocation5 + $0xe8] sm:$0xff] %vm2883_vm1, %v2846_v12  ;;  %v5904_v12 = vld [vmem:[#allocation3 + $0x51] sm:$0xff] }
 0x3f7   : > { %3753 = vrot.lane.b32.xlu0 %v7254_v33, %s5950_s30  ;;  %3565 = vrot.lane.b32.xlu1 %v7596_v21, %s5949_s29  ;;  %v5631_v33 = vld [vmem:[%s8528_s3 + $0x18] sm:$0xff]  }
 0x3f8   : > { %5522 = vmatprep.subr.bf16.mxu1 %v5631_v33 }
 0x3f9   : > { %5523 = vmatpush3.bf16.msra.mxu1 %v5631_v33  ;;  %v5905_v33 = vld [vmem:[#allocation3 + $0x69] sm:$0xff] }
 0x3fb   : > { %3757 = vrot.lane.b32.xlu0 %v7313_v28, %s5950_s30  ;;  %3755 = vrot.lane.b32.xlu1 %v7275_v9, %s5950_s30  ;;  %v5632_v28 = vld [vmem:[%s8528_s3 + $0x10] sm:$0xff]  }
 0x3fc   : > { %5524 = vmatprep.subr.bf16.mxu1 %v5632_v28  ;;  %v5894_v9 = vld [vmem:[#allocation3 + $0x39] sm:$0xff] }
 0x3fd   : > { %5525 = vmatpush3.bf16.msra.mxu1 %v5632_v28  ;;  %v5907_v28 = vld [vmem:[#allocation2 + $0x99] sm:$0xff] }
 0x3fe   : > { %5526 = vmatprep.subr.bf16.mxu1 %v5633_v60 }
 0x3ff   : > { %3946 = vrot.lane.b32.xlu0 %v5893_v29, %s5951_s12  ;;  %3759 = vrot.lane.b32.xlu1 %v7334_v47, %s5950_s30  ;;  %v4656_v47 = vld [vmem:[%s8530_s5] sm:$0x3]  ;;  %v5906_v29 = vld [vmem:[#allocation2 + $0x91] sm:$0xff] }
 0x400   : > { %5605 = vmatprep.subr.msk.bf16.mxu0 %vm2163_vm7, %v4656_v47 }
 0x401   : > { %5527 = vmatpush3.bf16.msra.mxu1 %v5633_v60 }
 0x403   : > { %3950 = vrot.lane.b32.xlu0 %v7311_v25, %s5951_s12  ;;  %3948 = vrot.lane.b32.xlu1 %v5894_v9, %s5951_s12  ;;  %v5634_v25 = vld [vmem:[%s8528_s3] sm:$0xff]   ;;  %v4645_v9 = vpack.c.bf16 %v5907_v28, %v5906_v29 }
 0x404   : > { %5528 = vmatprep.subr.bf16.mxu1 %v5634_v25 }
 0x405   : > { %v2848_v63 = vpop.permute.xlu0 %2847  ;;  %5529 = vmatpush3.bf16.msra.mxu1 %v5634_v25  ;;  %v5908_v25 = vld [vmem:[#allocation2 + $0xa9] sm:$0xff] }
 0x406   : > { %2914 = vst.msk [vmem:[#allocation5 + $0xf0] sm:$0xff] %vm2883_vm1, %v2848_v63 }
 0x407   : > { %4139 = vrot.lane.b32.xlu0 %v7586_v58, %s5952_s18  ;;  %3952 = vrot.lane.b32.xlu1 %v7332_v44, %s5951_s12  ;;  %v4706_v58 = vsel %vm2163_vm7, %v4656_v47, 0  ;;  %v5897_v44 = vld [vmem:[#allocation2 + $0x49] sm:$0xff]  ;;  %v5909_v47 = vld [vmem:[#allocation2 + $0xb1] sm:$0xff]  ;;  %vm3849_vm7 = vcmask 458112  }
 0x408   : > { %v4642_v6 = vpack.c.bf16 %v5898_v57, %v5897_v44  ;;  %5563 = vmatpush3.bf16.msra.mxu0 %v4706_v58  ;;  %v4646_v52 = vpack.c.bf16 %v5909_v47, %v5908_v25  ;;  %v5912_v44 = vld [vmem:[#allocation2 + $0xd9] sm:$0xff]  ;;  %v5913_v57 = vld [vmem:[#allocation2 + $0xe1] sm:$0xff] }
 0x409   : > { %v2981_v39 = vpop.permute.xlu0 %2980  ;;  %v2850_v2 = vpop.permute.xlu1 %2849 }
 0x40a   : > { %3077 = vst.msk [vmem:[#allocation5] sm:$0xff] %vm3076_vm3, %v2981_v39  ;;  %v5911_v39 = vld [vmem:[#allocation2 + $0xc9] sm:$0xff] }
 0x40b   : > { %2915 = vst.msk [vmem:[#allocation5 + $0xf8] sm:$0xff] %vm2883_vm1, %v2850_v2  ;;  %4143 = vrot.lane.b32.xlu0 %v7594_v37, %s5952_s18  ;;  %4141 = vrot.lane.b32.xlu1 %v7596_v21, %s5952_s18 }
 0x40c   : > { %5565 = vmatmul.mubr.msk.bf16.vlgmr.msra.gmra.mxu0 %vm280_vm0, %v4641_v19  ;;  %v5910_v19 = vld [vmem:[#allocation2 + $0xc1] sm:$0xff] }
 0x40d   : > { %v2985_v53 = vpop.permute.xlu0 %2984  ;;  %v2983_v3 = vpop.permute.xlu1 %2982  ;;  %5568 = vmatprep.mubr.msk.bf16.mxu0 %vm280_vm0, %v4642_v6  ;;  %v4647_v2 = vpack.c.bf16 %v5911_v39, %v5910_v19  ;;  %v4648_v6 = vpack.c.bf16 %v5913_v57, %v5912_v44  ;;  %v5924_v39 = vld [vmem:[#allocation2 + $0x169] sm:$0xff]  ;;  %v5926_v44 = vld [vmem:[#allocation2 + $0x181] sm:$0xff] }
 0x40e   : > { %3079 = vst.msk [vmem:[#allocation5 + $0x10] sm:$0xff] %vm3076_vm3, %v2985_v53  ;;  %3078 = vst.msk [vmem:[#allocation5 + $0x8] sm:$0xff] %vm3076_vm3, %v2983_v3  ;;  %v3886_v3 = vld [vmem:[#allocation3 + $0x61] sm:$0xff]  ;;  %v5927_v57 = vld [vmem:[#allocation2 + $0x189] sm:$0xff] }
 0x40f   : > { %3374 = vrot.lane.b32.xlu0 %v3306_v50, %s5948_s19  ;;  %4145 = vrot.lane.b32.xlu1 %v7605_v40, %s5952_s18  ;;  %v5914_v50 = vld [vmem:[#allocation2 + $0xf1] sm:$0xff] }
 0x410   : > { %v4649_v22 = vpack.c.bf16 %v5915_v43, %v5914_v50  ;;  %v3313_v43 = vld [vmem:[#allocation3 + $0x99] sm:$0xff] }
 0x411   : > { %v2989_v21 = vpop.permute.xlu0 %2988  ;;  %v2987_v42 = vpop.permute.xlu1 %2986 }
 0x412   : > { %3081 = vst.msk [vmem:[#allocation5 + $0x20] sm:$0xff] %vm3076_vm3, %v2989_v21  ;;  %3080 = vst.msk [vmem:[#allocation5 + $0x18] sm:$0xff] %vm3076_vm3, %v2987_v42  ;;  %v5916_v21 = vld [vmem:[#allocation2 + $0x109] sm:$0xff]  ;;  %v5917_v42 = vld [vmem:[#allocation2 + $0x111] sm:$0xff] }
 0x413   : > { %3378 = vrot.lane.b32.xlu0 %v5903_v10, %s5948_s19  ;;  %3376 = vrot.lane.b32.xlu1 %v5904_v12, %s5948_s19  ;;  %v4650_v46 = vpack.c.bf16 %v5917_v42, %v5916_v21 }
 0x414   : > { %5569 = vmatmul.mubr.msk.bf16.gmra.mxu0 %vm280_vm0, %v4643_v23 }
 0x415   : > { %v2993_v45 = vpop.permute.xlu0 %2992  ;;  %v2991_v55 = vpop.permute.xlu1 %2990  ;;  %5572 = vmatprep.mubr.msk.bf16.mxu0 %vm280_vm0, %v4644_v5  ;;  %v3887_v5 = vld [vmem:[#allocation3 + $0x69] sm:$0xff] }
 0x416   : > { %3083 = vst.msk [vmem:[#allocation5 + $0x30] sm:$0xff] %vm3076_vm3, %v2993_v45  ;;  %3082 = vst.msk [vmem:[#allocation5 + $0x28] sm:$0xff] %vm3076_vm3, %v2991_v55  ;;  %v3889_v45 = vld [vmem:[#allocation3 + $0x81] sm:$0xff]  ;;  %v5918_v55 = vld [vmem:[#allocation2 + $0x121] sm:$0xff] }
 0x417   : > { %3567 = vrot.lane.b32.xlu0 %v7594_v37, %s5949_s29  ;;  %3380 = vrot.lane.b32.xlu1 %v5905_v33, %s5948_s19  ;;  %v5919_v33 = vld [vmem:[#allocation2 + $0x129] sm:$0xff] }
 0x418   : > { %v4651_v29 = vpack.c.bf16 %v5919_v33, %v5918_v55 }
 0x419   : > { %v2997_v60 = vpop.permute.xlu0 %2996  ;;  %v2995_v63 = vpop.permute.xlu1 %2994 }
 0x41a   : > { %3085 = vst.msk [vmem:[#allocation5 + $0x40] sm:$0xff] %vm3076_vm3, %v2997_v60  ;;  %3084 = vst.msk [vmem:[#allocation5 + $0x38] sm:$0xff] %vm3076_vm3, %v2995_v63  ;;  %v5920_v60 = vld [vmem:[#allocation2 + $0x139] sm:$0xff]  ;;  %v5921_v63 = vld [vmem:[#allocation2 + $0x141] sm:$0xff] }
 0x41b   : > { %3571 = vrot.lane.b32.xlu0 %v7603_v26, %s5949_s29  ;;  %3569 = vrot.lane.b32.xlu1 %v7605_v40, %s5949_s29  ;;  %v4652_v25 = vpack.c.bf16 %v5921_v63, %v5920_v60  ;;  %v3316_v63 = vld [vmem:[#allocation3 + $0xc1] sm:$0xff] }
 0x41c   : > { %5573 = vmatmul.mubr.msk.bf16.gmra.mxu0 %vm280_vm0, %v4645_v9 }
 0x41d   : > { %v3001_v37 = vpop.permute.xlu0 %3000  ;;  %v2999_v61 = vpop.permute.xlu1 %2998  ;;  %5576 = vmatprep.mubr.msk.bf16.mxu0 %vm280_vm0, %v4646_v52  ;;  %v5922_v52 = vld [vmem:[#allocation2 + $0x151] sm:$0xff] }
 0x41e   : > { %3087 = vst.msk [vmem:[#allocation5 + $0x50] sm:$0xff] %vm3076_vm3, %v3001_v37  ;;  %3086 = vst.msk [vmem:[#allocation5 + $0x48] sm:$0xff] %vm3076_vm3, %v2999_v61  ;;  %v5923_v37 = vld [vmem:[#allocation2 + $0x159] sm:$0xff] }
 0x41f   : > { %3761 = vrot.lane.b32.xlu0 %v7306_v20, %s5950_s30  ;;  %3573 = vrot.lane.b32.xlu1 %v7615_v18, %s5949_s29  ;;  %v4653_v61 = vpack.c.bf16 %v5923_v37, %v5922_v52 }
 0x421   : > { %v3005_v40 = vpop.permute.xlu0 %3004  ;;  %v3003_v58 = vpop.permute.xlu1 %3002 }
 0x422   : > { %3089 = vst.msk [vmem:[#allocation5 + $0x60] sm:$0xff] %vm3076_vm3, %v3005_v40  ;;  %3088 = vst.msk [vmem:[#allocation5 + $0x58] sm:$0xff] %vm3076_vm3, %v3003_v58 }
 0x423   : > { %3765 = vrot.lane.b32.xlu0 %v7366_v16, %s5950_s30  ;;  %3763 = vrot.lane.b32.xlu1 %v7323_v32, %s5950_s30 }
 0x424   : > { %5577 = vmatmul.mubr.msk.bf16.gmra.mxu0 %vm280_vm0, %v4647_v2  ;;  %v5925_v2 = vld [vmem:[#allocation2 + $0x171] sm:$0xff] }
 0x425   : > { %v3009_v20 = vpop.permute.xlu0 %3008  ;;  %v3007_v53 = vpop.permute.xlu1 %3006  ;;  %5580 = vmatprep.mubr.msk.bf16.mxu0 %vm280_vm0, %v4648_v6  ;;  %v4654_v40 = vpack.c.bf16 %v5925_v2, %v5924_v39  ;;  %v4655_v6 = vpack.c.bf16 %v5927_v57, %v5926_v44  ;;  %v3896_v44 = vld [vmem:[#allocation3 + $0xd9] sm:$0xff] }
 0x426   : > { %3091 = vst.msk [vmem:[#allocation5 + $0x70] sm:$0xff] %vm3076_vm3, %v3009_v20  ;;  %3090 = vst.msk [vmem:[#allocation5 + $0x68] sm:$0xff] %vm3076_vm3, %v3007_v53  ;;  %v3312_v53 = vld [vmem:[#allocation3 + $0x91] sm:$0xff] }
 0x427   : > { %3954 = vrot.lane.b32.xlu0 %v3886_v3, %s5951_s12  ;;  %3767 = vrot.lane.b32.xlu1 %v7380_v0, %s5950_s30 }
 0x429   : > { %v3013_v32 = vpop.permute.xlu0 %3012  ;;  %v3011_v23 = vpop.permute.xlu1 %3010 }
 0x42a   : > { %3093 = vst.msk [vmem:[#allocation5 + $0x80] sm:$0xff] %vm3076_vm3, %v3013_v32  ;;  %3092 = vst.msk [vmem:[#allocation5 + $0x78] sm:$0xff] %vm3076_vm3, %v3011_v23 }
 0x42b   : > { %3958 = vrot.lane.b32.xlu0 %v3888_v4, %s5951_s12  ;;  %3956 = vrot.lane.b32.xlu1 %v3887_v5, %s5951_s12  ;;  %v3892_v5 = vld [vmem:[#allocation3 + $0xa9] sm:$0xff] }
 0x42c   : > { %5581 = vmatmul.mubr.msk.bf16.gmra.mxu0 %vm280_vm0, %v4649_v22 }
 0x42d   : > { %v3017_v10 = vpop.permute.xlu0 %3016  ;;  %v3015_v12 = vpop.permute.xlu1 %3014  ;;  %5584 = vmatprep.mubr.msk.bf16.mxu0 %vm280_vm0, %v4650_v46 }
 0x42e   : > { %3095 = vst.msk [vmem:[#allocation5 + $0x90] sm:$0xff] %vm3076_vm3, %v3017_v10  ;;  %3094 = vst.msk [vmem:[#allocation5 + $0x88] sm:$0xff] %vm3076_vm3, %v3015_v12  ;;  %v3893_v12 = vld [vmem:[#allocation3 + $0xb1] sm:$0xff] }
 0x42f   : > { %4147 = vrot.lane.b32.xlu0 %v7603_v26, %s5952_s18  ;;  %3960 = vrot.lane.b32.xlu1 %v3889_v45, %s5951_s12 }
 0x431   : > { %v3021_v28 = vpop.permute.xlu0 %3020  ;;  %v3019_v9 = vpop.permute.xlu1 %3018 }
 0x432   : > { %3097 = vst.msk [vmem:[#allocation5 + $0xa0] sm:$0xff] %vm3076_vm3, %v3021_v28  ;;  %3096 = vst.msk [vmem:[#allocation5 + $0x98] sm:$0xff] %vm3076_vm3, %v3019_v9 }
 0x433   : > { %4151 = vrot.lane.b32.xlu0 %v7613_v11, %s5952_s18  ;;  %4149 = vrot.lane.b32.xlu1 %v7615_v18, %s5952_s18 }
 0x434   : > { %5585 = vmatmul.mubr.msk.bf16.gmra.mxu0 %vm280_vm0, %v4651_v29 }
 0x435   : > { %v3025_v26 = vpop.permute.xlu0 %3024  ;;  %v3023_v47 = vpop.permute.xlu1 %3022  ;;  %5588 = vmatprep.mubr.msk.bf16.mxu0 %vm280_vm0, %v4652_v25 }
 0x436   : > { %3099 = vst.msk [vmem:[#allocation5 + $0xb0] sm:$0xff] %vm3076_vm3, %v3025_v26  ;;  %3098 = vst.msk [vmem:[#allocation5 + $0xa8] sm:$0xff] %vm3076_vm3, %v3023_v47  ;;  %v3317_v26 = vld [vmem:[#allocation3 + $0xc9] sm:$0xff] }
 0x437   : > { %3189 = vrot.lane.b32.xlu0 %v7366_v16, %s5946_s13  ;;  %4153 = vrot.lane.b32.xlu1 %v7624_v62, %s5952_s18 }
 0x439   : > { %v3029_v18 = vpop.permute.xlu0 %3028  ;;  %v3027_v19 = vpop.permute.xlu1 %3026 }
 0x43a   : > { %3101 = vst.msk [vmem:[#allocation5 + $0xc0] sm:$0xff] %vm3076_vm3, %v3029_v18  ;;  %3100 = vst.msk [vmem:[#allocation5 + $0xb8] sm:$0xff] %vm3076_vm3, %v3027_v19 }
 0x43b   : > { %3193 = vrot.lane.b32.xlu0 %v7362_v13, %s5946_s13  ;;  %3191 = vrot.lane.b32.xlu1 %v7380_v0, %s5946_s13 }
 0x43c   : > { %5589 = vmatmul.mubr.msk.bf16.gmra.mxu0 %vm280_vm0, %v4653_v61 }
 0x43d   : > { %v3033_v16 = vpop.permute.xlu0 %3032  ;;  %v3031_v58 = vpop.permute.xlu1 %3030  ;;  %5592 = vmatprep.mubr.msk.bf16.mxu0 %vm280_vm0, %v4654_v40 }
 0x43e   : > { %3103 = vst.msk [vmem:[#allocation5 + $0xd0] sm:$0xff] %vm3076_vm3, %v3033_v16  ;;  %3102 = vst.msk [vmem:[#allocation5 + $0xc8] sm:$0xff] %vm3076_vm3, %v3031_v58 }
 0x43f   : > { %3382 = vrot.lane.b32.xlu0 %v3888_v4, %s5948_s19  ;;  %3195 = vrot.lane.b32.xlu1 %v7372_v17, %s5946_s13 }
 0x441   : > { %v3037_v20 = vpop.permute.xlu0 %3036  ;;  %v3035_v0 = vpop.permute.xlu1 %3034 }
 0x442   : > { %3105 = vst.msk [vmem:[#allocation5 + $0xe0] sm:$0xff] %vm3076_vm3, %v3037_v20  ;;  %3104 = vst.msk [vmem:[#allocation5 + $0xd8] sm:$0xff] %vm3076_vm3, %v3035_v0  ;;  %v3897_v0 = vld [vmem:[#allocation3 + $0xe1] sm:$0xff] }
 0x443   : > { %3386 = vrot.lane.b32.xlu0 %v3312_v53, %s5948_s19  ;;  %3384 = vrot.lane.b32.xlu1 %v3889_v45, %s5948_s19 }
 0x444   : > { %5593 = vmatmul.mubr.msk.bf16.gmra.mxu0 %vm280_vm0, %v4655_v6 }
 0x445   : > { %v3041_v3 = vpop.permute.xlu0 %3040  ;;  %v3039_v50 = vpop.permute.xlu1 %3038 }
 0x446   : > { %3107 = vst.msk [vmem:[#allocation5 + $0xf0] sm:$0xff] %vm3076_vm3, %v3041_v3  ;;  %3106 = vst.msk [vmem:[#allocation5 + $0xe8] sm:$0xff] %vm3076_vm3, %v3039_v50 }
 0x447   : > { %3575 = vrot.lane.b32.xlu0 %v7613_v11, %s5949_s29  ;;  %3388 = vrot.lane.b32.xlu1 %v3313_v43, %s5948_s19 }
 0x449   : > { %v3174_v22 = vpop.permute.xlu0 %3173  ;;  %v3043_v32 = vpop.permute.xlu1 %3042 }
 0x44a   : > { %3270 = vst.msk [vmem:[#allocation5] sm:$0xff] %vm3269_vm4, %v3174_v22 }
 0x44b   : > { %3108 = vst.msk [vmem:[#allocation5 + $0xf8] sm:$0xff] %vm3076_vm3, %v3043_v32  ;;  %3579 = vrot.lane.b32.xlu0 %v7622_v1, %s5949_s29  ;;  %3577 = vrot.lane.b32.xlu1 %v7624_v62, %s5949_s29 }
 0x44d   : > { %v3178_v23 = vpop.permute.xlu0 %3177  ;;  %v3176_v21 = vpop.permute.xlu1 %3175 }
 0x44e   : > { %3272 = vst.msk [vmem:[#allocation5 + $0x10] sm:$0xff] %vm3269_vm4, %v3178_v23  ;;  %3271 = vst.msk [vmem:[#allocation5 + $0x8] sm:$0xff] %vm3269_vm4, %v3176_v21  ;;  %v3320_v21 = vld [vmem:[#allocation3 + $0xf1] sm:$0xff] }
 0x44f   : > { %3769 = vrot.lane.b32.xlu0 %v7362_v13, %s5950_s30  ;;  %3581 = vrot.lane.b32.xlu1 %v7632_v59, %s5949_s29 }
 0x451   : > { %v3182_v11 = vpop.permute.xlu0 %3181  ;;  %v3180_v42 = vpop.permute.xlu1 %3179 }
 0x452   : > { %3274 = vst.msk [vmem:[#allocation5 + $0x20] sm:$0xff] %vm3269_vm4, %v3182_v11  ;;  %3273 = vst.msk [vmem:[#allocation5 + $0x18] sm:$0xff] %vm3269_vm4, %v3180_v42  ;;  %v3321_v42 = vld [vmem:[#allocation3 + $0xf9] sm:$0xff] }
 0x453   : > { %3773 = vrot.lane.b32.xlu0 %v7414_v15, %s5950_s30  ;;  %3771 = vrot.lane.b32.xlu1 %v7372_v17, %s5950_s30 }
 0x455   : > { %v3186_v62 = vpop.permute.xlu0 %3185  ;;  %v3184_v46 = vpop.permute.xlu1 %3183 }
 0x456   : > { %3276 = vst.msk [vmem:[#allocation5 + $0x30] sm:$0xff] %vm3269_vm4, %v3186_v62  ;;  %3275 = vst.msk [vmem:[#allocation5 + $0x28] sm:$0xff] %vm3269_vm4, %v3184_v46 }
 0x457   : > { %3962 = vrot.lane.b32.xlu0 %v3312_v53, %s5951_s12  ;;  %3775 = vrot.lane.b32.xlu1 %v7428_v24, %s5950_s30 }
 0x459   : > { %v3367_v13 = vpop.permute.xlu0 %3366  ;;  %v3188_v4 = vpop.permute.xlu1 %3187 }
 0x45a   : > { %3463 = vst.msk [vmem:[#allocation5] sm:$0xff] %vm3462_vm5, %v3367_v13 }
 0x45b   : > { %3277 = vst.msk [vmem:[#allocation5 + $0x38] sm:$0xff] %vm3269_vm4, %v3188_v4  ;;  %3966 = vrot.lane.b32.xlu0 %v3892_v5, %s5951_s12  ;;  %3964 = vrot.lane.b32.xlu1 %v3313_v43, %s5951_s12 }
 0x45d   : > { %v3371_v17 = vpop.permute.xlu0 %3370  ;;  %v3369_v10 = vpop.permute.xlu1 %3368 }
 0x45e   : > { %3465 = vst.msk [vmem:[#allocation5 + $0x10] sm:$0xff] %vm3462_vm5, %v3371_v17  ;;  %3464 = vst.msk [vmem:[#allocation5 + $0x8] sm:$0xff] %vm3462_vm5, %v3369_v10 }
 0x45f   : > { %4155 = vrot.lane.b32.xlu0 %v7622_v1, %s5952_s18  ;;  %3968 = vrot.lane.b32.xlu1 %v3893_v12, %s5951_s12 }
 0x461   : > { %v3560_v45 = vpop.permute.xlu0 %3559  ;;  %v3373_v55 = vpop.permute.xlu1 %3372 }
 0x462   : > { %3656 = vst.msk [vmem:[#allocation5] sm:$0xff] %vm3655_vm6, %v3560_v45 }
 0x463   : > { %3466 = vst.msk [vmem:[#allocation5 + $0x18] sm:$0xff] %vm3462_vm5, %v3373_v55  ;;  %4159 = vrot.lane.b32.xlu0 %v7630_v7, %s5952_s18  ;;  %4157 = vrot.lane.b32.xlu1 %v7632_v59, %s5952_s18 }
 0x465   : > { %v3564_v33 = vpop.permute.xlu0 %3563  ;;  %v3562_v29 = vpop.permute.xlu1 %3561 }
 0x466   : > { %3658 = vst.msk [vmem:[#allocation5 + $0x10] sm:$0xff] %vm3655_vm6, %v3564_v33  ;;  %3657 = vst.msk [vmem:[#allocation5 + $0x8] sm:$0xff] %vm3655_vm6, %v3562_v29 }
 0x467   : > { %3197 = vrot.lane.b32.xlu0 %v7414_v15, %s5946_s13  ;;  %4161 = vrot.lane.b32.xlu1 %v7640_v51, %s5952_s18 }
 0x469   : > { %v3754_v1 = vpop.permute.xlu0 %3753  ;;  %v3566_v28 = vpop.permute.xlu1 %3565 }
 0x46a   : > { %3850 = vst.msk [vmem:[#allocation5] sm:$0xff] %vm3849_vm7, %v3754_v1  ;;  %v4091_v1 = vld [vmem:[#allocation3 + $0xf2] sm:$0xff] }
 0x46b   : > { %3659 = vst.msk [vmem:[#allocation5 + $0x18] sm:$0xff] %vm3655_vm6, %v3566_v28  ;;  %3201 = vrot.lane.b32.xlu0 %v7410_v38, %s5946_s13  ;;  %3199 = vrot.lane.b32.xlu1 %v7428_v24, %s5946_s13  ;;  %v3901_v28 = vld [vmem:[#allocation3 + $0x111] sm:$0xff] }
 0x46d   : > { %v3758_v59 = vpop.permute.xlu0 %3757  ;;  %v3756_v9 = vpop.permute.xlu1 %3755 }
 0x46e   : > { %3852 = vst.msk [vmem:[#allocation5 + $0x10] sm:$0xff] %vm3849_vm7, %v3758_v59  ;;  %3851 = vst.msk [vmem:[#allocation5 + $0x8] sm:$0xff] %vm3849_vm7, %v3756_v9  ;;  %v4093_v9 = vld [vmem:[#allocation3 + $0x10a] sm:$0xff] }
 0x46f   : > { %3390 = vrot.lane.b32.xlu0 %v3892_v5, %s5948_s19  ;;  %3203 = vrot.lane.b32.xlu1 %v7420_v34, %s5946_s13 }
 0x471   : > { %v3947_v15 = vpop.permute.xlu0 %3946  ;;  %v3760_v60 = vpop.permute.xlu1 %3759 }
 0x472   : > { %4043 = vst.msk [vmem:[#allocation5] sm:$0xff] %vm4042_vm8, %v3947_v15  ;;  %v4092_v15 = vld [vmem:[#allocation3 + $0xfa] sm:$0xff] }
 0x473   : > { %3853 = vst.msk [vmem:[#allocation5 + $0x18] sm:$0xff] %vm3849_vm7, %v3760_v60  ;;  %3394 = vrot.lane.b32.xlu0 %v3316_v63, %s5948_s19  ;;  %3392 = vrot.lane.b32.xlu1 %v3893_v12, %s5948_s19 }
 0x475   : > { %v3951_v24 = vpop.permute.xlu0 %3950  ;;  %v3949_v25 = vpop.permute.xlu1 %3948 }
 0x476   : > { %4045 = vst.msk [vmem:[#allocation5 + $0x10] sm:$0xff] %vm4042_vm8, %v3951_v24  ;;  %4044 = vst.msk [vmem:[#allocation5 + $0x8] sm:$0xff] %vm4042_vm8, %v3949_v25  ;;  %v3129_v24 = vld [vmem:[#allocation3 + $0x108] sm:$0xff]  ;;  %v4094_v25 = vld [vmem:[#allocation3 + $0x112] sm:$0xff] }
 0x477   : > { %3583 = vrot.lane.b32.xlu0 %v7630_v7, %s5949_s29  ;;  %3396 = vrot.lane.b32.xlu1 %v3317_v26, %s5948_s19 }
 0x479   : > { %v4140_v47 = vpop.permute.xlu0 %4139  ;;  %v3953_v52 = vpop.permute.xlu1 %3952 }
 0x47a   : > { %4236 = vst.msk [vmem:[#allocation5] sm:$0xff] %vm4235_vm9, %v4140_v47 }
 0x47b   : > { %4046 = vst.msk [vmem:[#allocation5 + $0x18] sm:$0xff] %vm4042_vm8, %v3953_v52  ;;  %3587 = vrot.lane.b32.xlu0 %v7638_v30, %s5949_s29  ;;  %3585 = vrot.lane.b32.xlu1 %v7640_v51, %s5949_s29  ;;  %v3131_v52 = vld [vmem:[#allocation3 + $0x120] sm:$0xff] }
 0x47d   : > { %v4144_v37 = vpop.permute.xlu0 %4143  ;;  %v4142_v61 = vpop.permute.xlu1 %4141 }
 0x47e   : > { %4238 = vst.msk [vmem:[#allocation5 + $0x10] sm:$0xff] %vm4235_vm9, %v4144_v37  ;;  %4237 = vst.msk [vmem:[#allocation5 + $0x8] sm:$0xff] %vm4235_vm9, %v4142_v61  ;;  %v3130_v37 = vld [vmem:[#allocation3 + $0x110] sm:$0xff] }
 0x47f   : > { %3777 = vrot.lane.b32.xlu0 %v7410_v38, %s5950_s30  ;;  %3589 = vrot.lane.b32.xlu1 %v7648_v41, %s5949_s29 }
 0x481   : > { %v3375_v7 = vpop.permute.xlu0 %3374  ;;  %v4146_v18 = vpop.permute.xlu1 %4145  ;;  %v4268_v39 = vld [vmem:[#allocation5] sm:$0xff] }
 0x482   : > { %3467 = vst.msk [vmem:[#allocation5 + $0x20] sm:$0xff] %vm3462_vm5, %v3375_v7 }
 0x483   : > { %4239 = vst.msk [vmem:[#allocation5 + $0x18] sm:$0xff] %vm4235_vm9, %v4146_v18  ;;  %3781 = vrot.lane.b32.xlu0 %v7462_v54, %s5950_s30  ;;  %3779 = vrot.lane.b32.xlu1 %v7420_v34, %s5950_s30  ;;  %v3132_v18 = vld [vmem:[#allocation3 + $0x128] sm:$0xff] }
 0x485   : > { %v3379_v51 = vpop.permute.xlu0 %3378  ;;  %v3377_v19 = vpop.permute.xlu1 %3376  ;;  %v4269_v2 = vld [vmem:[#allocation5 + $0x8] sm:$0xff]  ;;  %v4270_v34 = vld [vmem:[#allocation5 + $0x10] sm:$0xff] }
 0x486   : > { %3469 = vst.msk [vmem:[#allocation5 + $0x30] sm:$0xff] %vm3462_vm5, %v3379_v51  ;;  %3468 = vst.msk [vmem:[#allocation5 + $0x28] sm:$0xff] %vm3462_vm5, %v3377_v19  ;;  %v4300_v38 = vpack.c.bf16 %v4269_v2, %v4268_v39  ;;  %v3324_v39 = vld [vmem:[#allocation3 + $0x121] sm:$0xff] }
 0x487   : > { %3970 = vrot.lane.b32.xlu0 %v3316_v63, %s5951_s12  ;;  %3783 = vrot.lane.b32.xlu1 %v7483_v31, %s5950_s30 }
 0x488   : > { %5530 = vmatprep.mubr.msk.bf16.mxu1 %vm4352_vm10, %v4300_v38 }
 0x489   : > { %v3568_v40 = vpop.permute.xlu0 %3567  ;;  %v3381_v16 = vpop.permute.xlu1 %3380 }
 0x48a   : > { %v4271_v58 = vld [vmem:[#allocation5 + $0x18] sm:$0xff]  ;;  %3660 = vst.msk [vmem:[#allocation5 + $0x20] sm:$0xff] %vm3655_vm6, %v3568_v40 }
 0x48b   : > { %3470 = vst.msk [vmem:[#allocation5 + $0x38] sm:$0xff] %vm3462_vm5, %v3381_v16  ;;  %v4301_v57 = vpack.c.bf16 %v4271_v58, %v4270_v34  ;;  %3974 = vrot.lane.b32.xlu0 %v3896_v44, %s5951_s12  ;;  %3972 = vrot.lane.b32.xlu1 %v3317_v26, %s5951_s12  ;;  %v3325_v40 = vld [vmem:[#allocation3 + $0x129] sm:$0xff] }
 0x48c   : > { %v3517_v58 = vld [vmem:[#allocation3 + $0x122] sm:$0xff] }
 0x48d   : > { %5531 = vmatmul.mubr.msk.bf16.vlgmr.msra.gmra.mxu1 %vm4352_vm10, %v4301_v57  ;;  %v3572_v6 = vpop.permute.xlu0 %3571  ;;  %v3570_v20 = vpop.permute.xlu1 %3569 }
 0x48e   : > { %3662 = vst.msk [vmem:[#allocation5 + $0x30] sm:$0xff] %vm3655_vm6, %v3572_v6  ;;  %3661 = vst.msk [vmem:[#allocation5 + $0x28] sm:$0xff] %vm3655_vm6, %v3570_v20 }
 0x48f   : > { %4163 = vrot.lane.b32.xlu0 %v7638_v30, %s5952_s18  ;;  %3976 = vrot.lane.b32.xlu1 %v3897_v0, %s5951_s12 }
 0x491   : > { %v3762_v53 = vpop.permute.xlu0 %3761  ;;  %v3574_v3 = vpop.permute.xlu1 %3573 }
 0x492   : > { %3854 = vst.msk [vmem:[#allocation5 + $0x20] sm:$0xff] %vm3849_vm7, %v3762_v53 }
 0x493   : > { %3663 = vst.msk [vmem:[#allocation5 + $0x38] sm:$0xff] %vm3655_vm6, %v3574_v3  ;;  %4167 = vrot.lane.b32.xlu0 %v7646_v27, %s5952_s18  ;;  %4165 = vrot.lane.b32.xlu1 %v7648_v41, %s5952_s18 }
 0x495   : > { %v3766_v50 = vpop.permute.xlu0 %3765  ;;  %v3764_v43 = vpop.permute.xlu1 %3763 }
 0x496   : > { %3856 = vst.msk [vmem:[#allocation5 + $0x30] sm:$0xff] %vm3849_vm7, %v3766_v50  ;;  %3855 = vst.msk [vmem:[#allocation5 + $0x28] sm:$0xff] %vm3849_vm7, %v3764_v43 }
 0x497   : > { %3205 = vrot.lane.b32.xlu0 %v7462_v54, %s5946_s13  ;;  %4169 = vrot.lane.b32.xlu1 %v7657_v56, %s5952_s18 }
 0x499   : > { %v3955_v30 = vpop.permute.xlu0 %3954  ;;  %v3768_v22 = vpop.permute.xlu1 %3767 }
 0x49a   : > { %4047 = vst.msk [vmem:[#allocation5 + $0x20] sm:$0xff] %vm4042_vm8, %v3955_v30 }
 0x49b   : > { %3857 = vst.msk [vmem:[#allocation5 + $0x38] sm:$0xff] %vm3849_vm7, %v3768_v22  ;;  %3209 = vrot.lane.b32.xlu0 %v7458_v36, %s5946_s13  ;;  %3207 = vrot.lane.b32.xlu1 %v7483_v31, %s5946_s13  ;;  %v3711_v22 = vld [vmem:[#allocation3 + $0x138] sm:$0xff] }
 0x49d   : > { %v3959_v41 = vpop.permute.xlu0 %3958  ;;  %v3957_v32 = vpop.permute.xlu1 %3956 }
 0x49e   : > { %4049 = vst.msk [vmem:[#allocation5 + $0x30] sm:$0xff] %vm4042_vm8, %v3959_v41  ;;  %4048 = vst.msk [vmem:[#allocation5 + $0x28] sm:$0xff] %vm4042_vm8, %v3957_v32 }
 0x49f   : > { %3398 = vrot.lane.b32.xlu0 %v3896_v44, %s5948_s19  ;;  %3211 = vrot.lane.b32.xlu1 %v7472_v35, %s5946_s13 }
 0x4a1   : > { %v4148_v54 = vpop.permute.xlu0 %4147  ;;  %v3961_v23 = vpop.permute.xlu1 %3960 }
 0x4a2   : > { %4240 = vst.msk [vmem:[#allocation5 + $0x20] sm:$0xff] %vm4235_vm9, %v4148_v54 }
 0x4a3   : > { %4050 = vst.msk [vmem:[#allocation5 + $0x38] sm:$0xff] %vm4042_vm8, %v3961_v23  ;;  %3402 = vrot.lane.b32.xlu0 %v3320_v21, %s5948_s19  ;;  %3400 = vrot.lane.b32.xlu1 %v3897_v0, %s5948_s19  ;;  %v3518_v0 = vld [vmem:[#allocation3 + $0x12a] sm:$0xff]  ;;  %v3712_v23 = vld [vmem:[#allocation3 + $0x140] sm:$0xff] }
 0x4a5   : > { %v4152_v31 = vpop.permute.xlu0 %4151  ;;  %v4150_v11 = vpop.permute.xlu1 %4149 }
 0x4a6   : > { %4242 = vst.msk [vmem:[#allocation5 + $0x30] sm:$0xff] %vm4235_vm9, %v4152_v31  ;;  %4241 = vst.msk [vmem:[#allocation5 + $0x28] sm:$0xff] %vm4235_vm9, %v4150_v11  ;;  %v3904_v11 = vld [vmem:[#allocation3 + $0x139] sm:$0xff] }
 0x4a7   : > { %3591 = vrot.lane.b32.xlu0 %v7646_v27, %s5949_s29  ;;  %3404 = vrot.lane.b32.xlu1 %v3321_v42, %s5948_s19 }
 0x4a9   : > { %v3190_v62 = vpop.permute.xlu0 %3189  ;;  %v4154_v46 = vpop.permute.xlu1 %4153  ;;  %v4272_v5 = vld [vmem:[#allocation5 + $0x20] sm:$0xff] }
 0x4aa   : > { %3278 = vst.msk [vmem:[#allocation5 + $0x40] sm:$0xff] %vm3269_vm4, %v3190_v62 }
 0x4ab   : > { %4243 = vst.msk [vmem:[#allocation5 + $0x38] sm:$0xff] %vm4235_vm9, %v4154_v46  ;;  %3595 = vrot.lane.b32.xlu0 %v7655_v49, %s5949_s29  ;;  %3593 = vrot.lane.b32.xlu1 %v7657_v56, %s5949_s29  ;;  %v3905_v46 = vld [vmem:[#allocation3 + $0x141] sm:$0xff] }
 0x4ad   : > { %v3194_v13 = vpop.permute.xlu0 %3193  ;;  %v3192_v4 = vpop.permute.xlu1 %3191  ;;  %v4273_v17 = vld [vmem:[#allocation5 + $0x28] sm:$0xff]  ;;  %v4274_v56 = vld [vmem:[#allocation5 + $0x30] sm:$0xff] }
 0x4ae   : > { %3280 = vst.msk [vmem:[#allocation5 + $0x50] sm:$0xff] %vm3269_vm4, %v3194_v13  ;;  %3279 = vst.msk [vmem:[#allocation5 + $0x48] sm:$0xff] %vm3269_vm4, %v3192_v4  ;;  %v4302_v27 = vpack.c.bf16 %v4273_v17, %v4272_v5  ;;  %v4097_v5 = vld [vmem:[#allocation3 + $0x13a] sm:$0xff] }
 0x4af   : > { %3785 = vrot.lane.b32.xlu0 %v7458_v36, %s5950_s30  ;;  %3597 = vrot.lane.b32.xlu1 %v7665_v8, %s5949_s29 }
 0x4b0   : > { %5534 = vmatprep.mubr.msk.bf16.mxu1 %vm4352_vm10, %v4302_v27 }
 0x4b1   : > { %v3383_v49 = vpop.permute.xlu0 %3382  ;;  %v3196_v10 = vpop.permute.xlu1 %3195 }
 0x4b2   : > { %v4275_v12 = vld [vmem:[#allocation5 + $0x38] sm:$0xff]  ;;  %3471 = vst.msk [vmem:[#allocation5 + $0x40] sm:$0xff] %vm3462_vm5, %v3383_v49 }
 0x4b3   : > { %3281 = vst.msk [vmem:[#allocation5 + $0x58] sm:$0xff] %vm3269_vm4, %v3196_v10  ;;  %v4303_v45 = vpack.c.bf16 %v4275_v12, %v4274_v56  ;;  %3789 = vrot.lane.b32.xlu0 %v7507_v14, %s5950_s30  ;;  %3787 = vrot.lane.b32.xlu1 %v7472_v35, %s5950_s30  ;;  %v3900_v35 = vld [vmem:[#allocation3 + $0x109] sm:$0xff] }
 0x4b4   : > { %v4098_v49 = vld [vmem:[#allocation3 + $0x142] sm:$0xff]  ;;  %v3135_v12 = vld [vmem:[#allocation3 + $0x150] sm:$0xff] }
 0x4b5   : > { %5535 = vmatmul.mubr.msk.bf16.gmra.mxu1 %vm4352_vm10, %v4303_v45  ;;  %v3387_v36 = vpop.permute.xlu0 %3386  ;;  %v3385_v8 = vpop.permute.xlu1 %3384 }
 0x4b6   : > { %3473 = vst.msk [vmem:[#allocation5 + $0x50] sm:$0xff] %vm3462_vm5, %v3387_v36  ;;  %3472 = vst.msk [vmem:[#allocation5 + $0x48] sm:$0xff] %vm3462_vm5, %v3385_v8  ;;  %v3136_v8 = vld [vmem:[#allocation3 + $0x158] sm:$0xff] }
 0x4b7   : > { %3978 = vrot.lane.b32.xlu0 %v3320_v21, %s5951_s12  ;;  %3791 = vrot.lane.b32.xlu1 %v7526_v48, %s5950_s30 }
 0x4b9   : > { %v3576_v55 = vpop.permute.xlu0 %3575  ;;  %v3389_v33 = vpop.permute.xlu1 %3388 }
 0x4ba   : > { %3664 = vst.msk [vmem:[#allocation5 + $0x40] sm:$0xff] %vm3655_vm6, %v3576_v55 }
 0x4bb   : > { %3474 = vst.msk [vmem:[#allocation5 + $0x58] sm:$0xff] %vm3462_vm5, %v3389_v33  ;;  %3982 = vrot.lane.b32.xlu0 %v3900_v35, %s5951_s12  ;;  %3980 = vrot.lane.b32.xlu1 %v3321_v42, %s5951_s12 }
 0x4bd   : > { %v3580_v14 = vpop.permute.xlu0 %3579  ;;  %v3578_v29 = vpop.permute.xlu1 %3577 }
 0x4be   : > { %3666 = vst.msk [vmem:[#allocation5 + $0x50] sm:$0xff] %vm3655_vm6, %v3580_v14  ;;  %3665 = vst.msk [vmem:[#allocation5 + $0x48] sm:$0xff] %vm3655_vm6, %v3578_v29 }
 0x4bf   : > { %4171 = vrot.lane.b32.xlu0 %v4091_v1, %s5952_s18  ;;  %3984 = vrot.lane.b32.xlu1 %v3901_v28, %s5951_s12  ;;  %v3329_v1 = vld [vmem:[#allocation3 + $0x159] sm:$0xff] }
 0x4c1   : > { %v3770_v48 = vpop.permute.xlu0 %3769  ;;  %v3582_v59 = vpop.permute.xlu1 %3581 }
 0x4c2   : > { %3858 = vst.msk [vmem:[#allocation5 + $0x40] sm:$0xff] %vm3849_vm7, %v3770_v48 }
 0x4c3   : > { %3667 = vst.msk [vmem:[#allocation5 + $0x58] sm:$0xff] %vm3655_vm6, %v3582_v59  ;;  %4175 = vrot.lane.b32.xlu0 %v4093_v9, %s5952_s18  ;;  %4173 = vrot.lane.b32.xlu1 %v4092_v15, %s5952_s18  ;;  %v3521_v59 = vld [vmem:[#allocation3 + $0x152] sm:$0xff] }
 0x4c5   : > { %v3774_v60 = vpop.permute.xlu0 %3773  ;;  %v3772_v63 = vpop.permute.xlu1 %3771 }
 0x4c6   : > { %3860 = vst.msk [vmem:[#allocation5 + $0x50] sm:$0xff] %vm3849_vm7, %v3774_v60  ;;  %3859 = vst.msk [vmem:[#allocation5 + $0x48] sm:$0xff] %vm3849_vm7, %v3772_v63 }
 0x4c7   : > { %3213 = vrot.lane.b32.xlu0 %v3129_v24, %s5946_s13  ;;  %4177 = vrot.lane.b32.xlu1 %v4094_v25, %s5952_s18  ;;  %v3522_v24 = vld [vmem:[#allocation3 + $0x15a] sm:$0xff] }
 0x4c9   : > { %v3963_v26 = vpop.permute.xlu0 %3962  ;;  %v3776_v47 = vpop.permute.xlu1 %3775 }
 0x4ca   : > { %4051 = vst.msk [vmem:[#allocation5 + $0x40] sm:$0xff] %vm4042_vm8, %v3963_v26 }
 0x4cb   : > { %3861 = vst.msk [vmem:[#allocation5 + $0x58] sm:$0xff] %vm3849_vm7, %v3776_v47  ;;  %3217 = vrot.lane.b32.xlu0 %v3131_v52, %s5946_s13  ;;  %3215 = vrot.lane.b32.xlu1 %v3130_v37, %s5946_s13 }
 0x4cd   : > { %v3967_v61 = vpop.permute.xlu0 %3966  ;;  %v3965_v7 = vpop.permute.xlu1 %3964 }
 0x4ce   : > { %4053 = vst.msk [vmem:[#allocation5 + $0x50] sm:$0xff] %vm4042_vm8, %v3967_v61  ;;  %4052 = vst.msk [vmem:[#allocation5 + $0x48] sm:$0xff] %vm4042_vm8, %v3965_v7  ;;  %v3715_v61 = vld [vmem:[#allocation3 + $0x168] sm:$0xff] }
 0x4cf   : > { %3406 = vrot.lane.b32.xlu0 %v3900_v35, %s5948_s19  ;;  %3219 = vrot.lane.b32.xlu1 %v3132_v18, %s5946_s13  ;;  %v3328_v35 = vld [vmem:[#allocation3 + $0x151] sm:$0xff] }
 0x4d1   : > { %v4156_v51 = vpop.permute.xlu0 %4155  ;;  %v3969_v19 = vpop.permute.xlu1 %3968 }
 0x4d2   : > { %4244 = vst.msk [vmem:[#allocation5 + $0x40] sm:$0xff] %vm4235_vm9, %v4156_v51 }
 0x4d3   : > { %4054 = vst.msk [vmem:[#allocation5 + $0x58] sm:$0xff] %vm4042_vm8, %v3969_v19  ;;  %3410 = vrot.lane.b32.xlu0 %v3324_v39, %s5948_s19  ;;  %3408 = vrot.lane.b32.xlu1 %v3901_v28, %s5948_s19  ;;  %v3716_v19 = vld [vmem:[#allocation3 + $0x170] sm:$0xff] }
 0x4d5   : > { %v4160_v2 = vpop.permute.xlu0 %4159  ;;  %v4158_v38 = vpop.permute.xlu1 %4157 }
 0x4d6   : > { %4246 = vst.msk [vmem:[#allocation5 + $0x50] sm:$0xff] %vm4235_vm9, %v4160_v2  ;;  %4245 = vst.msk [vmem:[#allocation5 + $0x48] sm:$0xff] %vm4235_vm9, %v4158_v38  ;;  %v3908_v38 = vld [vmem:[#allocation3 + $0x169] sm:$0xff] }
 0x4d7   : > { %3599 = vrot.lane.b32.xlu0 %v4093_v9, %s5949_s29  ;;  %3412 = vrot.lane.b32.xlu1 %v3325_v40, %s5948_s19 }
 0x4d9   : > { %v3198_v16 = vpop.permute.xlu0 %3197  ;;  %v4162_v34 = vpop.permute.xlu1 %4161  ;;  %v4276_v6 = vld [vmem:[#allocation5 + $0x40] sm:$0xff] }
 0x4da   : > { %3282 = vst.msk [vmem:[#allocation5 + $0x60] sm:$0xff] %vm3269_vm4, %v3198_v16 }
 0x4db   : > { %4247 = vst.msk [vmem:[#allocation5 + $0x58] sm:$0xff] %vm4235_vm9, %v4162_v34  ;;  %3603 = vrot.lane.b32.xlu0 %v3517_v58, %s5949_s29  ;;  %3601 = vrot.lane.b32.xlu1 %v4094_v25, %s5949_s29  ;;  %v3909_v34 = vld [vmem:[#allocation3 + $0x171] sm:$0xff] }
 0x4dd   : > { %v3202_v44 = vpop.permute.xlu0 %3201  ;;  %v3200_v57 = vpop.permute.xlu1 %3199  ;;  %v4277_v20 = vld [vmem:[#allocation5 + $0x48] sm:$0xff]  ;;  %v4278_v43 = vld [vmem:[#allocation5 + $0x50] sm:$0xff] }
 0x4de   : > { %3284 = vst.msk [vmem:[#allocation5 + $0x70] sm:$0xff] %vm3269_vm4, %v3202_v44  ;;  %3283 = vst.msk [vmem:[#allocation5 + $0x68] sm:$0xff] %vm3269_vm4, %v3200_v57  ;;  %v4304_v53 = vpack.c.bf16 %v4277_v20, %v4276_v6  ;;  %v4101_v57 = vld [vmem:[#allocation3 + $0x16a] sm:$0xff] }
 0x4df   : > { %3793 = vrot.lane.b32.xlu0 %v3131_v52, %s5950_s30  ;;  %3605 = vrot.lane.b32.xlu1 %v3518_v0, %s5949_s29 }
 0x4e0   : > { %5538 = vmatprep.mubr.msk.bf16.mxu1 %vm4352_vm10, %v4304_v53 }
 0x4e1   : > { %v3391_v3 = vpop.permute.xlu0 %3390  ;;  %v3204_v50 = vpop.permute.xlu1 %3203 }
 0x4e2   : > { %v4279_v30 = vld [vmem:[#allocation5 + $0x58] sm:$0xff]  ;;  %3475 = vst.msk [vmem:[#allocation5 + $0x60] sm:$0xff] %vm3462_vm5, %v3391_v3 }
 0x4e3   : > { %3285 = vst.msk [vmem:[#allocation5 + $0x78] sm:$0xff] %vm3269_vm4, %v3204_v50  ;;  %v4305_v41 = vpack.c.bf16 %v4279_v30, %v4278_v43  ;;  %3797 = vrot.lane.b32.xlu0 %v3711_v22, %s5950_s30  ;;  %3795 = vrot.lane.b32.xlu1 %v3132_v18, %s5950_s30  ;;  %v3139_v50 = vld [vmem:[#allocation3 + $0x180] sm:$0xff] }
 0x4e5   : > { %5539 = vmatmul.mubr.msk.bf16.gmra.mxu1 %vm4352_vm10, %v4305_v41  ;;  %v3395_v32 = vpop.permute.xlu0 %3394  ;;  %v3393_v54 = vpop.permute.xlu1 %3392 }
 0x4e6   : > { %3477 = vst.msk [vmem:[#allocation5 + $0x70] sm:$0xff] %vm3462_vm5, %v3395_v32  ;;  %3476 = vst.msk [vmem:[#allocation5 + $0x68] sm:$0xff] %vm3462_vm5, %v3393_v54  ;;  %v3332_v54 = vld [vmem:[#allocation3 + $0x181] sm:$0xff] }
 0x4e7   : > { %3986 = vrot.lane.b32.xlu0 %v3324_v39, %s5951_s12  ;;  %3799 = vrot.lane.b32.xlu1 %v3712_v23, %s5950_s30 }
 0x4e9   : > { %v3584_v21 = vpop.permute.xlu0 %3583  ;;  %v3397_v31 = vpop.permute.xlu1 %3396 }
 0x4ea   : > { %3668 = vst.msk [vmem:[#allocation5 + $0x60] sm:$0xff] %vm3655_vm6, %v3584_v21 }
 0x4eb   : > { %3478 = vst.msk [vmem:[#allocation5 + $0x78] sm:$0xff] %vm3462_vm5, %v3397_v31  ;;  %3990 = vrot.lane.b32.xlu0 %v3904_v11, %s5951_s12  ;;  %3988 = vrot.lane.b32.xlu1 %v3325_v40, %s5951_s12  ;;  %v3333_v31 = vld [vmem:[#allocation3 + $0x189] sm:$0xff] }
 0x4ed   : > { %v3588_v42 = vpop.permute.xlu0 %3587  ;;  %v3586_v62 = vpop.permute.xlu1 %3585 }
 0x4ee   : > { %3670 = vst.msk [vmem:[#allocation5 + $0x70] sm:$0xff] %vm3655_vm6, %v3588_v42  ;;  %3669 = vst.msk [vmem:[#allocation5 + $0x68] sm:$0xff] %vm3655_vm6, %v3586_v62  ;;  %v8145_v62 = vld [vmem:[#allocation3 + $0x182] sm:$0xff] }
 0x4ef   : > { %4179 = vrot.lane.b32.xlu0 %v3517_v58, %s5952_s18  ;;  %3992 = vrot.lane.b32.xlu1 %v3905_v46, %s5951_s12 }
 0x4f1   : > { %v3778_v13 = vpop.permute.xlu0 %3777  ;;  %v3590_v4 = vpop.permute.xlu1 %3589 }
 0x4f2   : > { %3862 = vst.msk [vmem:[#allocation5 + $0x60] sm:$0xff] %vm3849_vm7, %v3778_v13 }
 0x4f3   : > { %3671 = vst.msk [vmem:[#allocation5 + $0x78] sm:$0xff] %vm3655_vm6, %v3590_v4  ;;  %4183 = vrot.lane.b32.xlu0 %v4097_v5, %s5952_s18  ;;  %4181 = vrot.lane.b32.xlu1 %v3518_v0, %s5952_s18  ;;  %v4102_v0 = vld [vmem:[#allocation3 + $0x172] sm:$0xff] }
 0x4f5   : > { %v3782_v17 = vpop.permute.xlu0 %3781  ;;  %v3780_v27 = vpop.permute.xlu1 %3779 }
 0x4f6   : > { %3864 = vst.msk [vmem:[#allocation5 + $0x70] sm:$0xff] %vm3849_vm7, %v3782_v17  ;;  %3863 = vst.msk [vmem:[#allocation5 + $0x68] sm:$0xff] %vm3849_vm7, %v3780_v27  ;;  %v8152_v17 = vld [vmem:[#allocation3 + $0x18a] sm:$0xff] }
 0x4f7   : > { %3221 = vrot.lane.b32.xlu0 %v3711_v22, %s5946_s13  ;;  %4185 = vrot.lane.b32.xlu1 %v4098_v49, %s5952_s18  ;;  %v3140_v22 = vld [vmem:[#allocation3 + $0x188] sm:$0xff] }
 0x4f9   : > { %v3971_v10 = vpop.permute.xlu0 %3970  ;;  %v3784_v56 = vpop.permute.xlu1 %3783 }
 0x4fa   : > { %4055 = vst.msk [vmem:[#allocation5 + $0x60] sm:$0xff] %vm4042_vm8, %v3971_v10  ;;  %v3719_v10 = vld [vmem:[#allocation3 + $0x198] sm:$0xff] }
 0x4fb   : > { %3865 = vst.msk [vmem:[#allocation5 + $0x78] sm:$0xff] %vm3849_vm7, %v3784_v56  ;;  %3225 = vrot.lane.b32.xlu0 %v3135_v12, %s5946_s13  ;;  %3223 = vrot.lane.b32.xlu1 %v3712_v23, %s5946_s13 }
 0x4fd   : > { %v3975_v45 = vpop.permute.xlu0 %3974  ;;  %v3973_v36 = vpop.permute.xlu1 %3972 }
 0x4fe   : > { %4057 = vst.msk [vmem:[#allocation5 + $0x70] sm:$0xff] %vm4042_vm8, %v3975_v45  ;;  %4056 = vst.msk [vmem:[#allocation5 + $0x68] sm:$0xff] %vm4042_vm8, %v3973_v36 }
 0x4ff   : > { %3414 = vrot.lane.b32.xlu0 %v3904_v11, %s5948_s19  ;;  %3227 = vrot.lane.b32.xlu1 %v3136_v8, %s5946_s13 }
 0x501   : > { %v4164_v55 = vpop.permute.xlu0 %4163  ;;  %v3977_v33 = vpop.permute.xlu1 %3976 }
 0x502   : > { %4248 = vst.msk [vmem:[#allocation5 + $0x60] sm:$0xff] %vm4235_vm9, %v4164_v55 }
 0x503   : > { %4058 = vst.msk [vmem:[#allocation5 + $0x78] sm:$0xff] %vm4042_vm8, %v3977_v33  ;;  %3418 = vrot.lane.b32.xlu0 %v3328_v35, %s5948_s19  ;;  %3416 = vrot.lane.b32.xlu1 %v3905_v46, %s5948_s19  ;;  %v3720_v33 = vld [vmem:[#allocation3 + $0x1a0] sm:$0xff] }
 0x505   : > { %v4168_v14 = vpop.permute.xlu0 %4167  ;;  %v4166_v29 = vpop.permute.xlu1 %4165 }
 0x506   : > { %4250 = vst.msk [vmem:[#allocation5 + $0x70] sm:$0xff] %vm4235_vm9, %v4168_v14  ;;  %4249 = vst.msk [vmem:[#allocation5 + $0x68] sm:$0xff] %vm4235_vm9, %v4166_v29  ;;  %v8168_v29 = vld [vmem:[%s8531_s6] ss:$0 sm:$0xff] }
 0x507   : > { %3607 = vrot.lane.b32.xlu0 %v4097_v5, %s5949_s29  ;;  %3420 = vrot.lane.b32.xlu1 %v3329_v1, %s5948_s19 }
 0x509   : > { %v3206_v28 = vpop.permute.xlu0 %3205  ;;  %v4170_v48 = vpop.permute.xlu1 %4169  ;;  %v4280_v60 = vld [vmem:[#allocation5 + $0x60] sm:$0xff] }
 0x50a   : > { %3286 = vst.msk [vmem:[#allocation5 + $0x80] sm:$0xff] %vm3269_vm4, %v3206_v28  ;;  %v3912_v28 = vld [vmem:[#allocation3 + $0x199] sm:$0xff] }
 0x50b   : > { %4251 = vst.msk [vmem:[#allocation5 + $0x78] sm:$0xff] %vm4235_vm9, %v4170_v48  ;;  %3611 = vrot.lane.b32.xlu0 %v3521_v59, %s5949_s29  ;;  %3609 = vrot.lane.b32.xlu1 %v4098_v49, %s5949_s29  ;;  %v5566_v49 = vpop.f32.mrf.mxu0 }
 0x50d   : > { %v3210_v9 = vpop.permute.xlu0 %3209  ;;  %v3208_v15 = vpop.permute.xlu1 %3207  ;;  %v4281_v63 = vld [vmem:[#allocation5 + $0x68] sm:$0xff]  ;;  %v4282_v52 = vld [vmem:[#allocation5 + $0x70] sm:$0xff] }
 0x50e   : > { %3288 = vst.msk [vmem:[#allocation5 + $0x90] sm:$0xff] %vm3269_vm4, %v3210_v9  ;;  %3287 = vst.msk [vmem:[#allocation5 + $0x88] sm:$0xff] %vm3269_vm4, %v3208_v15  ;;  %v4306_v25 = vpack.c.bf16 %v4281_v63, %v4280_v60  ;;  %v4742_v55 = vpop.f32.mrf.mxu0  ;;  %v4876_v9 = vmul.f32 %v5566_v49, %v8168_v29  ;;  %v8178_v15 = vld [vmem:[%s8529_s4] ss:$0 sm:$0xff]  ;;  %v8183_v60 = vld [vmem:[%s8531_s6 + $0x1] ss:$0 sm:$0xff] }
 0x50f   : > { %3801 = vrot.lane.b32.xlu0 %v3135_v12, %s5950_s30  ;;  %3613 = vrot.lane.b32.xlu1 %v3522_v24, %s5949_s29  ;;  %v4874_v63 = vmul.f32 %v8168_v29, %v4742_v55 }
 0x510   : > { %5542 = vmatprep.mubr.msk.bf16.mxu1 %vm4352_vm10, %v4306_v25 }
 0x511   : > { %v3399_v26 = vpop.permute.xlu0 %3398  ;;  %v3212_v47 = vpop.permute.xlu1 %3211 }
 0x512   : > { %v4283_v37 = vld [vmem:[#allocation5 + $0x78] sm:$0xff]  ;;  %3479 = vst.msk [vmem:[#allocation5 + $0x80] sm:$0xff] %vm3462_vm5, %v3399_v26  ;;  %v8191_v26 = vld [vmem:[%s8529_s4 + $0x1] ss:$0 sm:$0xff] }
 0x513   : > { %3289 = vst.msk [vmem:[#allocation5 + $0x98] sm:$0xff] %vm3269_vm4, %v3212_v47  ;;  %v4307_v7 = vpack.c.bf16 %v4283_v37, %v4282_v52  ;;  %3805 = vrot.lane.b32.xlu0 %v3715_v61, %s5950_s30  ;;  %3803 = vrot.lane.b32.xlu1 %v3136_v8, %s5950_s30  ;;  %v3913_v47 = vld [vmem:[#allocation3 + $0x1a1] sm:$0xff]  ;;  %v4913_v37 = vadd.f32 %v8183_v60, %v4876_v9 }
 0x515   : > { %5543 = vmatmul.mubr.msk.bf16.gmra.mxu1 %vm4352_vm10, %v4307_v7  ;;  %v3403_v18 = vpop.permute.xlu0 %3402  ;;  %v3401_v51 = vpop.permute.xlu1 %3400 }
 0x516   : > { %3481 = vst.msk [vmem:[#allocation5 + $0x90] sm:$0xff] %vm3462_vm5, %v3403_v18  ;;  %3480 = vst.msk [vmem:[#allocation5 + $0x88] sm:$0xff] %vm3462_vm5, %v3401_v51 }
 0x517   : > { %3994 = vrot.lane.b32.xlu0 %v3328_v35, %s5951_s12  ;;  %3807 = vrot.lane.b32.xlu1 %v3716_v19, %s5950_s30 }
 0x519   : > { %v3592_v39 = vpop.permute.xlu0 %3591  ;;  %v3405_v2 = vpop.permute.xlu1 %3404 }
 0x51a   : > { %3672 = vst.msk [vmem:[#allocation5 + $0x80] sm:$0xff] %vm3655_vm6, %v3592_v39 }
 0x51b   : > { %3482 = vst.msk [vmem:[#allocation5 + $0x98] sm:$0xff] %vm3462_vm5, %v3405_v2  ;;  %3998 = vrot.lane.b32.xlu0 %v3908_v38, %s5951_s12  ;;  %3996 = vrot.lane.b32.xlu1 %v3329_v1, %s5951_s12  ;;  %v5567_v1 = vpop.f32.mrf.mxu0 }
 0x51c   : > { %v4877_v18 = vmul.f32 %v5567_v1, %v8168_v29 }
 0x51d   : > { %v3596_v40 = vpop.permute.xlu0 %3595  ;;  %v3594_v16 = vpop.permute.xlu1 %3593 }
 0x51e   : > { %3674 = vst.msk [vmem:[#allocation5 + $0x90] sm:$0xff] %vm3655_vm6, %v3596_v40  ;;  %3673 = vst.msk [vmem:[#allocation5 + $0x88] sm:$0xff] %vm3655_vm6, %v3594_v16  ;;  %v4105_v16 = vld [vmem:[#allocation3 + $0x19a] sm:$0xff] }
 0x51f   : > { %4187 = vrot.lane.b32.xlu0 %v3521_v59, %s5952_s18  ;;  %4000 = vrot.lane.b32.xlu1 %v3909_v34, %s5951_s12 }
 0x521   : > { %v3786_v58 = vpop.permute.xlu0 %3785  ;;  %v3598_v44 = vpop.permute.xlu1 %3597 }
 0x522   : > { %3866 = vst.msk [vmem:[#allocation5 + $0x80] sm:$0xff] %vm3849_vm7, %v3786_v58 }
 0x523   : > { %3675 = vst.msk [vmem:[#allocation5 + $0x98] sm:$0xff] %vm3655_vm6, %v3598_v44  ;;  %4191 = vrot.lane.b32.xlu0 %v4101_v57, %s5952_s18  ;;  %4189 = vrot.lane.b32.xlu1 %v3522_v24, %s5952_s18  ;;  %v4745_v24 = vpop.f32.mrf.mxu0 }
 0x525   : > { %v3790_v6 = vpop.permute.xlu0 %3789  ;;  %v3788_v20 = vpop.permute.xlu1 %3787 }
 0x526   : > { %3868 = vst.msk [vmem:[#allocation5 + $0x90] sm:$0xff] %vm3849_vm7, %v3790_v6  ;;  %3867 = vst.msk [vmem:[#allocation5 + $0x88] sm:$0xff] %vm3849_vm7, %v3788_v20  ;;  %v5570_v55 = vpop.f32.mrf.mxu0 }
 0x527   : > { %3229 = vrot.lane.b32.xlu0 %v3715_v61, %s5946_s13  ;;  %4193 = vrot.lane.b32.xlu1 %v4102_v0, %s5952_s18 }
 0x529   : > { %v3979_v53 = vpop.permute.xlu0 %3978  ;;  %v3792_v3 = vpop.permute.xlu1 %3791 }
 0x52a   : > { %4059 = vst.msk [vmem:[#allocation5 + $0x80] sm:$0xff] %vm4042_vm8, %v3979_v53 }
 0x52b   : > { %3869 = vst.msk [vmem:[#allocation5 + $0x98] sm:$0xff] %vm3849_vm7, %v3792_v3  ;;  %3233 = vrot.lane.b32.xlu0 %v3139_v50, %s5946_s13  ;;  %3231 = vrot.lane.b32.xlu1 %v3716_v19, %s5946_s13  ;;  %v4875_v19 = vmul.f32 %v8168_v29, %v4745_v24 }
 0x52d   : > { %v3983_v43 = vpop.permute.xlu0 %3982  ;;  %v3981_v30 = vpop.permute.xlu1 %3980  ;;  %v4912_v53 = vadd.f32 %v8183_v60, %v4875_v19 }
 0x52e   : > { %4061 = vst.msk [vmem:[#allocation5 + $0x90] sm:$0xff] %vm4042_vm8, %v3983_v43  ;;  %4060 = vst.msk [vmem:[#allocation5 + $0x88] sm:$0xff] %vm4042_vm8, %v3981_v30 }
 0x52f   : > { %3422 = vrot.lane.b32.xlu0 %v3908_v38, %s5948_s19  ;;  %3235 = vrot.lane.b32.xlu1 %v3140_v22, %s5946_s13  ;;  %v4911_v38 = vadd.f32 %v8183_v60, %v4874_v63 }
 0x531   : > { %v4172_v41 = vpop.permute.xlu0 %4171  ;;  %v3985_v32 = vpop.permute.xlu1 %3984 }
 0x532   : > { %4252 = vst.msk [vmem:[#allocation5 + $0x80] sm:$0xff] %vm4235_vm9, %v4172_v41 }
 0x533   : > { %4062 = vst.msk [vmem:[#allocation5 + $0x98] sm:$0xff] %vm4042_vm8, %v3985_v32  ;;  %3426 = vrot.lane.b32.xlu0 %v3332_v54, %s5948_s19  ;;  %3424 = vrot.lane.b32.xlu1 %v3909_v34, %s5948_s19 }
 0x535   : > { %v4176_v23 = vpop.permute.xlu0 %4175  ;;  %v4174_v21 = vpop.permute.xlu1 %4173 }
 0x536   : > { %4254 = vst.msk [vmem:[#allocation5 + $0x90] sm:$0xff] %vm4235_vm9, %v4176_v23  ;;  %4253 = vst.msk [vmem:[#allocation5 + $0x88] sm:$0xff] %vm4235_vm9, %v4174_v21 }
 0x537   : > { %3615 = vrot.lane.b32.xlu0 %v4101_v57, %s5949_s29  ;;  %3428 = vrot.lane.b32.xlu1 %v3333_v31, %s5948_s19  ;;  %v4914_v57 = vadd.f32 %v8183_v60, %v4877_v18 }
 0x539   : > { %v3214_v11 = vpop.permute.xlu0 %3213  ;;  %v4178_v42 = vpop.permute.xlu1 %4177  ;;  %v4284_v4 = vld [vmem:[#allocation5 + $0x80] sm:$0xff] }
 0x53a   : > { %3290 = vst.msk [vmem:[#allocation5 + $0xa0] sm:$0xff] %vm3269_vm4, %v3214_v11 }
 0x53b   : > { %4255 = vst.msk [vmem:[#allocation5 + $0x98] sm:$0xff] %vm4235_vm9, %v4178_v42  ;;  %3619 = vrot.lane.b32.xlu0 %v8145_v62, %s5949_s29  ;;  %3617 = vrot.lane.b32.xlu1 %v4102_v0, %s5949_s29 }
 0x53d   : > { %v3218_v46 = vpop.permute.xlu0 %3217  ;;  %v3216_v13 = vpop.permute.xlu1 %3215  ;;  %v4285_v5 = vld [vmem:[#allocation5 + $0x88] sm:$0xff]  ;;  %v4286_v45 = vld [vmem:[#allocation5 + $0x90] sm:$0xff] }
 0x53e   : > { %3292 = vst.msk [vmem:[#allocation5 + $0xb0] sm:$0xff] %vm3269_vm4, %v3218_v46  ;;  %3291 = vst.msk [vmem:[#allocation5 + $0xa8] sm:$0xff] %vm3269_vm4, %v3216_v13  ;;  %v4308_v27 = vpack.c.bf16 %v4285_v5, %v4284_v4 }
 0x53f   : > { %3809 = vrot.lane.b32.xlu0 %v3139_v50, %s5950_s30  ;;  %3621 = vrot.lane.b32.xlu1 %v8152_v17, %s5949_s29 }
 0x540   : > { %5546 = vmatprep.mubr.msk.bf16.mxu1 %vm4352_vm10, %v4308_v27 }
 0x541   : > { %v3407_v56 = vpop.permute.xlu0 %3406  ;;  %v3220_v12 = vpop.permute.xlu1 %3219 }
 0x542   : > { %v4287_v36 = vld [vmem:[#allocation5 + $0x98] sm:$0xff]  ;;  %3483 = vst.msk [vmem:[#allocation5 + $0xa0] sm:$0xff] %vm3462_vm5, %v3407_v56 }
 0x543   : > { %3293 = vst.msk [vmem:[#allocation5 + $0xb8] sm:$0xff] %vm3269_vm4, %v3220_v12  ;;  %v4309_v8 = vpack.c.bf16 %v4287_v36, %v4286_v45  ;;  %3813 = vrot.lane.b32.xlu0 %v3719_v10, %s5950_s30  ;;  %3811 = vrot.lane.b32.xlu1 %v3140_v22, %s5950_s30  ;;  %v4106_v22 = vld [vmem:[#allocation3 + $0x1a2] sm:$0xff] }
 0x545   : > { %5547 = vmatmul.mubr.msk.bf16.gmra.mxu1 %vm4352_vm10, %v4309_v8  ;;  %v3411_v35 = vpop.permute.xlu0 %3410  ;;  %v3409_v14 = vpop.permute.xlu1 %3408 }
 0x546   : > { %3485 = vst.msk [vmem:[#allocation5 + $0xb0] sm:$0xff] %vm3462_vm5, %v3411_v35  ;;  %3484 = vst.msk [vmem:[#allocation5 + $0xa8] sm:$0xff] %vm3462_vm5, %v3409_v14 }
 0x547   : > { %4002 = vrot.lane.b32.xlu0 %v3332_v54, %s5951_s12  ;;  %3815 = vrot.lane.b32.xlu1 %v3720_v33, %s5950_s30 }
 0x549   : > { %v3600_v48 = vpop.permute.xlu0 %3599  ;;  %v3413_v59 = vpop.permute.xlu1 %3412 }
 0x54a   : > { %3676 = vst.msk [vmem:[#allocation5 + $0xa0] sm:$0xff] %vm3655_vm6, %v3600_v48 }
 0x54b   : > { %3486 = vst.msk [vmem:[#allocation5 + $0xb8] sm:$0xff] %vm3462_vm5, %v3413_v59  ;;  %4006 = vrot.lane.b32.xlu0 %v3912_v28, %s5951_s12  ;;  %4004 = vrot.lane.b32.xlu1 %v3333_v31, %s5951_s12  ;;  %v4758_v28 = vpop.f32.mrf.mxu0 }
 0x54d   : > { %v5532_v25 = vpop.f32.mrf.mxu1  ;;  %v3604_v61 = vpop.permute.xlu0 %3603 }
 0x54e   : > { %v4573_v52 = vmul.f32 %v5532_v25, %v8178_v15  ;;  %v3602_v7 = vpop.permute.xlu1 %3601  ;;  %3678 = vst.msk [vmem:[#allocation5 + $0xb0] sm:$0xff] %vm3655_vm6, %v3604_v61  ;;  %v5571_v25 = vpop.f32.mrf.mxu0 }
 0x54f   : > { %3677 = vst.msk [vmem:[#allocation5 + $0xa8] sm:$0xff] %vm3655_vm6, %v3602_v7  ;;  %v4439_v51 = vpop.f32.mrf.mxu1  ;;  %4195 = vrot.lane.b32.xlu0 %v8145_v62, %s5952_s18  ;;  %4008 = vrot.lane.b32.xlu1 %v3913_v47, %s5951_s12  ;;  %v4880_v7 = vmul.f32 %v5570_v55, %v8168_v29  ;;  %s8251_s12 = scalar_lea.vmem %s8532_s7, %s5423_s27 }
 0x550   : > { %v4610_v39 = vadd.f32 %v8191_v26, %v4573_v52  ;;  %v4571_v2 = vmul.f32 %v8178_v15, %v4439_v51 }
 0x551   : > { %v5533_v40 = vpop.f32.mrf.mxu1  ;;  %v3794_v6 = vpop.permute.xlu0 %3793 }
 0x552   : > { %v8205_v34 = vadd.f32 %v4913_v37, %v4610_v39  ;;  %v4608_v58 = vadd.f32 %v8191_v26, %v4571_v2  ;;  %v4574_v44 = vmul.f32 %v5533_v40, %v8178_v15  ;;  %v3606_v20 = vpop.permute.xlu1 %3605  ;;  %3870 = vst.msk [vmem:[#allocation5 + $0xa0] sm:$0xff] %vm3849_vm7, %v3794_v6  ;;  %v4878_v39 = vmul.f32 %v8168_v29, %v4758_v28  ;;  %v4761_v2 = vpop.f32.mrf.mxu0 }
 0x553   : > { %3679 = vst.msk [vmem:[#allocation5 + $0xb8] sm:$0xff] %vm3655_vm6, %v3606_v20  ;;  %v4442_v0 = vpop.f32.mrf.mxu1  ;;  %4197 = vrot.lane.b32.xlu1 %v8152_v17, %s5952_s18  ;;  %4199 = vrot.lane.b32.xlu0 %v4105_v16, %s5952_s18  ;;  %v4881_v16 = vmul.f32 %v5571_v25, %v8168_v29 }
 0x554   : > { %v5391_v3 = vmul.f32 -1.442695, %v8205_v34  ;;  %v8214_v50 = vadd.f32 %v4911_v38, %v4608_v58  ;;  %v4611_v43 = vadd.f32 %v8191_v26, %v4574_v44  ;;  %v4572_v30 = vmul.f32 %v8178_v15, %v4442_v0 }
 0x555   : > { %v3798_v23 = vpop.permute.xlu0 %3797 }
 0x556   : > { %5763 = vpow2.f32 %v5391_v3  ;;  %v5389_v41 = vmul.f32 -1.442695, %v8214_v50  ;;  %v8222_v32 = vadd.f32 %v4914_v57, %v4611_v43  ;;  %v4609_v54 = vadd.f32 %v8191_v26, %v4572_v30  ;;  %v3796_v21 = vpop.permute.xlu1 %3795  ;;  %3872 = vst.msk [vmem:[#allocation5 + $0xb0] sm:$0xff] %vm3849_vm7, %v3798_v23 }
 0x557   : > { %3871 = vst.msk [vmem:[#allocation5 + $0xa8] sm:$0xff] %vm3849_vm7, %v3796_v21  ;;  %4201 = vrot.lane.b32.xlu1 %v4106_v22, %s5952_s18  ;;  %v4917_v57 = vadd.f32 %v8183_v60, %v4880_v7  ;;  %v4915_v30 = vadd.f32 %v8183_v60, %v4878_v39  ;;  %v5574_v39 = vpop.f32.mrf.mxu0 }
 0x558   : > { %5765 = vpow2.f32 %v5389_v41  ;;  %v5392_v31 = vmul.f32 -1.442695, %v8222_v32  ;;  %v8228_v11 = vadd.f32 %v4912_v53, %v4609_v54  ;;  %v4879_v53 = vmul.f32 %v8168_v29, %v4761_v2 }
 0x559   : > { %v3987_v62 = vpop.permute.xlu0 %3986  ;;  %v4918_v54 = vadd.f32 %v8183_v60, %v4881_v16 }
 0x55a   : > { %5767 = vpow2.f32 %v5392_v31  ;;  %v5390_v42 = vmul.f32 -1.442695, %v8228_v11  ;;  %v3800_v46 = vpop.permute.xlu1 %3799  ;;  %4063 = vst.msk [vmem:[#allocation5 + $0xa0] sm:$0xff] %vm4042_vm8, %v3987_v62 }
 0x55b   : > { %3873 = vst.msk [vmem:[#allocation5 + $0xb8] sm:$0xff] %vm3849_vm7, %v3800_v46 }
 0x55c   : > { %5769 = vpow2.f32 %v5390_v42 }
 0x55d   : > { %v3991_v13 = vpop.permute.xlu0 %3990 }
 0x55e   : > { %v3989_v4 = vpop.permute.xlu1 %3988  ;;  %4065 = vst.msk [vmem:[#allocation5 + $0xb0] sm:$0xff] %vm4042_vm8, %v3991_v13  ;;  %v4916_v13 = vadd.f32 %v8183_v60, %v4879_v53 }
 0x55f   : > { %4064 = vst.msk [vmem:[#allocation5 + $0xa8] sm:$0xff] %vm4042_vm8, %v3989_v4 }
 0x561   : > { %v4180_v5 = vpop.permute.xlu0 %4179 }
 0x562   : > { %v3993_v17 = vpop.permute.xlu1 %3992  ;;  %4256 = vst.msk [vmem:[#allocation5 + $0xa0] sm:$0xff] %vm4235_vm9, %v4180_v5 }
 0x563   : > { %v5764_v27 = vpop.eup %5763  ;;  %4066 = vst.msk [vmem:[#allocation5 + $0xb8] sm:$0xff] %vm4042_vm8, %v3993_v17 }
 0x564   : > { %v5073_v49 = vadd.f32 1.0, %v5764_v27 }
 0x565   : > { %v5766_v10 = vpop.eup %5765  ;;  %v4184_v12 = vpop.permute.xlu0 %4183 }
 0x566   : > { %5771 = vrcp.f32 %v5073_v49  ;;  %v5071_v56 = vadd.f32 1.0, %v5766_v10  ;;  %v4182_v45 = vpop.permute.xlu1 %4181  ;;  %4258 = vst.msk [vmem:[#allocation5 + $0xb0] sm:$0xff] %vm4235_vm9, %v4184_v12 }
 0x567   : > { %v5768_v36 = vpop.eup %5767  ;;  %4257 = vst.msk [vmem:[#allocation5 + $0xa8] sm:$0xff] %vm4235_vm9, %v4182_v45 }
 0x568   : > { %5773 = vrcp.f32 %v5071_v56  ;;  %v5074_v8 = vadd.f32 1.0, %v5768_v36 }
 0x569   : > { %v5770_v33 = vpop.eup %5769  ;;  %v3222_v14 = vpop.permute.xlu0 %3221  ;;  %v4288_v9 = vld [vmem:[#allocation5 + $0xa0] sm:$0xff] }
 0x56a   : > { %5775 = vrcp.f32 %v5074_v8  ;;  %v5072_v35 = vadd.f32 1.0, %v5770_v33  ;;  %v4186_v1 = vpop.permute.xlu1 %4185  ;;  %3294 = vst.msk [vmem:[#allocation5 + $0xc0] sm:$0xff] %vm3269_vm4, %v3222_v14 }
 0x56b   : > { %4259 = vst.msk [vmem:[#allocation5 + $0xb8] sm:$0xff] %vm4235_vm9, %v4186_v1 }
 0x56c   : > { %5777 = vrcp.f32 %v5072_v35 }
 0x56d   : > { %v3226_v48 = vpop.permute.xlu0 %3225  ;;  %v4290_v37 = vld [vmem:[#allocation5 + $0xb0] sm:$0xff] }
 0x56e   : > { %v3224_v59 = vpop.permute.xlu1 %3223  ;;  %v4289_v63 = vld [vmem:[#allocation5 + $0xa8] sm:$0xff]  ;;  %3296 = vst.msk [vmem:[#allocation5 + $0xd0] sm:$0xff] %vm3269_vm4, %v3226_v48 }
 0x56f   : > { %3295 = vst.msk [vmem:[#allocation5 + $0xc8] sm:$0xff] %vm3269_vm4, %v3224_v59  ;;  %v4310_v24 = vpack.c.bf16 %v4289_v63, %v4288_v9 }
 0x571   : > { %5550 = vmatprep.mubr.msk.bf16.mxu1 %vm4352_vm10, %v4310_v24  ;;  %v3415_v47 = vpop.permute.xlu0 %3414 }
 0x572   : > { %v3228_v52 = vpop.permute.xlu1 %3227  ;;  %v4291_v61 = vld [vmem:[#allocation5 + $0xb8] sm:$0xff]  ;;  %3487 = vst.msk [vmem:[#allocation5 + $0xc0] sm:$0xff] %vm3462_vm5, %v3415_v47 }
 0x573   : > { %v5772_v18 = vpop.eup %5771  ;;  %3297 = vst.msk [vmem:[#allocation5 + $0xd8] sm:$0xff] %vm3269_vm4, %v3228_v52  ;;  %v4311_v51 = vpack.c.bf16 %v4291_v61, %v4290_v37 }
 0x574   : > { %v5169_v19 = vmul.f32 %v5772_v18, %v8205_v34 }
 0x575   : > { %v5774_v38 = vpop.eup %5773  ;;  %v5536_v40 = vpop.f32.mrf.mxu1  ;;  %5551 = vmatmul.mubr.msk.bf16.gmra.mxu1 %vm4352_vm10, %v4311_v51 }
 0x576   : > { %5201 = vst.msk [vmem:[%s8251_s12 + $0x10] sm:$0xff] %vm280_vm0, %v5169_v19  ;;  %v5167_v58 = vmul.f32 %v5774_v38, %v8214_v50  ;;  %v4577_v44 = vmul.f32 %v5536_v40, %v8178_v15  ;;  %v3419_v34 = vpop.permute.xlu0 %3418  ;;  %v3417_v6 = vpop.permute.xlu1 %3416 }
 0x577   : > { %v5776_v20 = vpop.eup %5775  ;;  %3489 = vst.msk [vmem:[#allocation5 + $0xd0] sm:$0xff] %vm3462_vm5, %v3419_v34  ;;  %3488 = vst.msk [vmem:[#allocation5 + $0xc8] sm:$0xff] %vm3462_vm5, %v3417_v6  ;;  %v4455_v0 = vpop.f32.mrf.mxu1 }
 0x578   : > { %5199 = vst.msk [vmem:[%s8251_s12] sm:$0xff] %vm280_vm0, %v5167_v58  ;;  %v5170_v3 = vmul.f32 %v5776_v20, %v8222_v32  ;;  %v4614_v50 = vadd.f32 %v8191_v26, %v4577_v44  ;;  %v4575_v43 = vmul.f32 %v8178_v15, %v4455_v0  ;;  %v4774_v58 = vpop.f32.mrf.mxu0 }
 0x579   : > { %v5778_v22 = vpop.eup %5777  ;;  %v5537_v41 = vpop.f32.mrf.mxu1 }
 0x57a   : > { %5202 = vst.msk [vmem:[%s8251_s12 + $0x18] sm:$0xff] %vm280_vm0, %v5170_v3  ;;  %v5168_v23 = vmul.f32 %v5778_v22, %v8228_v11  ;;  %v8277_v21 = vadd.f32 %v4917_v57, %v4614_v50  ;;  %v4612_v31 = vadd.f32 %v8191_v26, %v4575_v43  ;;  %v4578_v32 = vmul.f32 %v5537_v41, %v8178_v15  ;;  %v3608_v42 = vpop.permute.xlu0 %3607  ;;  %v3421_v62 = vpop.permute.xlu1 %3420 }
 0x57b   : > { %3680 = vst.msk [vmem:[#allocation5 + $0xc0] sm:$0xff] %vm3655_vm6, %v3608_v42  ;;  %v4458_v46 = vpop.f32.mrf.mxu1  ;;  %v5575_v43 = vpop.f32.mrf.mxu0  ;;  %v4882_v42 = vmul.f32 %v8168_v29, %v4774_v58 }
 0x57c   : > { %3490 = vst.msk [vmem:[#allocation5 + $0xd8] sm:$0xff] %vm3462_vm5, %v3421_v62  ;;  %v5395_v4 = vmul.f32 -1.442695, %v8277_v21  ;;  %v8287_v11 = vadd.f32 %v4915_v30, %v4612_v31  ;;  %v4615_v5 = vadd.f32 %v8191_v26, %v4578_v32  ;;  %v4576_v17 = vmul.f32 %v8178_v15, %v4458_v46 }
 0x57d   : > { %5200 = vst.msk [vmem:[%s8251_s12 + $0x8] sm:$0xff] %vm280_vm0, %v5168_v23  ;;  %v4884_v31 = vmul.f32 %v5574_v39, %v8168_v29  ;;  %v4777_v62 = vpop.f32.mrf.mxu0 }
 0x57e   : > { %5779 = vpow2.f32 %v5395_v4  ;;  %v5393_v27 = vmul.f32 -1.442695, %v8287_v11  ;;  %v8292_v49 = vadd.f32 %v4918_v54, %v4615_v5  ;;  %v4613_v10 = vadd.f32 %v8191_v26, %v4576_v17  ;;  %v3612_v56 = vpop.permute.xlu0 %3611  ;;  %v3610_v12 = vpop.permute.xlu1 %3609 }
 0x57f   : > { %3682 = vst.msk [vmem:[#allocation5 + $0xd0] sm:$0xff] %vm3655_vm6, %v3612_v56  ;;  %3681 = vst.msk [vmem:[#allocation5 + $0xc8] sm:$0xff] %vm3655_vm6, %v3610_v12  ;;  %v4921_v4 = vadd.f32 %v8183_v60, %v4884_v31  ;;  %v4885_v17 = vmul.f32 %v5575_v43, %v8168_v29  ;;  %v4919_v12 = vadd.f32 %v8183_v60, %v4882_v42 }
 0x580   : > { %5781 = vpow2.f32 %v5393_v27  ;;  %v5396_v45 = vmul.f32 -1.442695, %v8292_v49  ;;  %v8298_v36 = vadd.f32 %v4916_v13, %v4613_v10 }
 0x582   : > { %5783 = vpow2.f32 %v5396_v45  ;;  %v5394_v8 = vmul.f32 -1.442695, %v8298_v36  ;;  %v3802_v55 = vpop.permute.xlu0 %3801  ;;  %v3614_v33 = vpop.permute.xlu1 %3613 }
 0x583   : > { %3874 = vst.msk [vmem:[#allocation5 + $0xc0] sm:$0xff] %vm3849_vm7, %v3802_v55 }
 0x584   : > { %3683 = vst.msk [vmem:[#allocation5 + $0xd8] sm:$0xff] %vm3655_vm6, %v3614_v33  ;;  %5785 = vpow2.f32 %v5394_v8  ;;  %v4922_v33 = vadd.f32 %v8183_v60, %v4885_v17 }
 0x586   : > { %v3806_v35 = vpop.permute.xlu0 %3805  ;;  %v3804_v14 = vpop.permute.xlu1 %3803 }
 0x587   : > { %3876 = vst.msk [vmem:[#allocation5 + $0xd0] sm:$0xff] %vm3849_vm7, %v3806_v35  ;;  %3875 = vst.msk [vmem:[#allocation5 + $0xc8] sm:$0xff] %vm3849_vm7, %v3804_v14 }
 0x58a   : > { %v3995_v1 = vpop.permute.xlu0 %3994  ;;  %v3808_v28 = vpop.permute.xlu1 %3807 }
 0x58b   : > { %v5780_v48 = vpop.eup %5779  ;;  %4067 = vst.msk [vmem:[#allocation5 + $0xc0] sm:$0xff] %vm4042_vm8, %v3995_v1 }
 0x58c   : > { %3877 = vst.msk [vmem:[#allocation5 + $0xd8] sm:$0xff] %vm3849_vm7, %v3808_v28  ;;  %v5077_v59 = vadd.f32 1.0, %v5780_v48 }
 0x58d   : > { %v5782_v9 = vpop.eup %5781 }
 0x58e   : > { %5787 = vrcp.f32 %v5077_v59  ;;  %v5075_v63 = vadd.f32 1.0, %v5782_v9  ;;  %v3999_v24 = vpop.permute.xlu0 %3998  ;;  %v3997_v25 = vpop.permute.xlu1 %3996 }
 0x58f   : > { %v5784_v47 = vpop.eup %5783  ;;  %4069 = vst.msk [vmem:[#allocation5 + $0xd0] sm:$0xff] %vm4042_vm8, %v3999_v24  ;;  %4068 = vst.msk [vmem:[#allocation5 + $0xc8] sm:$0xff] %vm4042_vm8, %v3997_v25 }
 0x590   : > { %5789 = vrcp.f32 %v5075_v63  ;;  %v5078_v52 = vadd.f32 1.0, %v5784_v47 }
 0x591   : > { %v5786_v37 = vpop.eup %5785 }
 0x592   : > { %5791 = vrcp.f32 %v5078_v52  ;;  %v5076_v61 = vadd.f32 1.0, %v5786_v37  ;;  %v4188_v7 = vpop.permute.xlu0 %4187  ;;  %v4001_v18 = vpop.permute.xlu1 %4000 }
 0x593   : > { %4260 = vst.msk [vmem:[#allocation5 + $0xc0] sm:$0xff] %vm4235_vm9, %v4188_v7 }
 0x594   : > { %4070 = vst.msk [vmem:[#allocation5 + $0xd8] sm:$0xff] %vm4042_vm8, %v4001_v18  ;;  %5793 = vrcp.f32 %v5076_v61 }
 0x596   : > { %v4192_v51 = vpop.permute.xlu0 %4191  ;;  %v4190_v19 = vpop.permute.xlu1 %4189 }
 0x597   : > { %4262 = vst.msk [vmem:[#allocation5 + $0xd0] sm:$0xff] %vm4235_vm9, %v4192_v51  ;;  %4261 = vst.msk [vmem:[#allocation5 + $0xc8] sm:$0xff] %vm4235_vm9, %v4190_v19 }
 0x59a   : > { %v3230_v2 = vpop.permute.xlu0 %3229  ;;  %v4194_v38 = vpop.permute.xlu1 %4193  ;;  %v4292_v20 = vld [vmem:[#allocation5 + $0xc0] sm:$0xff] }
 0x59b   : > { %v5788_v40 = vpop.eup %5787  ;;  %3298 = vst.msk [vmem:[#allocation5 + $0xe0] sm:$0xff] %vm3269_vm4, %v3230_v2 }
 0x59c   : > { %4263 = vst.msk [vmem:[#allocation5 + $0xd8] sm:$0xff] %vm4235_vm9, %v4194_v38  ;;  %v5173_v16 = vmul.f32 %v5788_v40, %v8277_v21 }
 0x59d   : > { %v5790_v44 = vpop.eup %5789 }
 0x59e   : > { %5205 = vst.msk [vmem:[%s8251_s12 + $0x30] sm:$0xff] %vm280_vm0, %v5173_v16  ;;  %v5171_v57 = vmul.f32 %v5790_v44, %v8287_v11  ;;  %v3234_v34 = vpop.permute.xlu0 %3233  ;;  %v3232_v6 = vpop.permute.xlu1 %3231  ;;  %v4293_v0 = vld [vmem:[#allocation5 + $0xc8] sm:$0xff]  ;;  %v4294_v23 = vld [vmem:[#allocation5 + $0xd0] sm:$0xff] }
 0x59f   : > { %v5792_v53 = vpop.eup %5791  ;;  %3300 = vst.msk [vmem:[#allocation5 + $0xf0] sm:$0xff] %vm3269_vm4, %v3234_v34  ;;  %3299 = vst.msk [vmem:[#allocation5 + $0xe8] sm:$0xff] %vm3269_vm4, %v3232_v6  ;;  %v4312_v3 = vpack.c.bf16 %v4293_v0, %v4292_v20 }
 0x5a0   : > { %5203 = vst.msk [vmem:[%s8251_s12 + $0x20] sm:$0xff] %vm280_vm0, %v5171_v57  ;;  %v5174_v50 = vmul.f32 %v5792_v53, %v8292_v49  ;;  %v4883_v49 = vmul.f32 %v8168_v29, %v4777_v62 }
 0x5a1   : > { %v5794_v30 = vpop.eup %5793  ;;  %5554 = vmatprep.mubr.msk.bf16.mxu1 %vm4352_vm10, %v4312_v3 }
 0x5a2   : > { %5206 = vst.msk [vmem:[%s8251_s12 + $0x38] sm:$0xff] %vm280_vm0, %v5174_v50  ;;  %v5172_v22 = vmul.f32 %v5794_v30, %v8298_v36  ;;  %v3423_v41 = vpop.permute.xlu0 %3422  ;;  %v3236_v54 = vpop.permute.xlu1 %3235  ;;  %v4920_v28 = vadd.f32 %v8183_v60, %v4883_v49 }
 0x5a3   : > { %v4295_v21 = vld [vmem:[#allocation5 + $0xd8] sm:$0xff]  ;;  %3491 = vst.msk [vmem:[#allocation5 + $0xe0] sm:$0xff] %vm3462_vm5, %v3423_v41  ;;  %v5578_v41 = vpop.f32.mrf.mxu0 }
 0x5a4   : > { %3301 = vst.msk [vmem:[#allocation5 + $0xf8] sm:$0xff] %vm3269_vm4, %v3236_v54  ;;  %v4313_v32 = vpack.c.bf16 %v4295_v21, %v4294_v23 }
 0x5a5   : > { %5204 = vst.msk [vmem:[%s8251_s12 + $0x28] sm:$0xff] %vm280_vm0, %v5172_v22  ;;  %v5540_v46 = vpop.f32.mrf.mxu1  ;;  %v4790_v31 = vpop.f32.mrf.mxu0 }
 0x5a6   : > { %5555 = vmatmul.mubr.msk.bf16.gmra.mxu1 %vm4352_vm10, %v4313_v32  ;;  %v4581_v13 = vmul.f32 %v5540_v46, %v8178_v15  ;;  %v3427_v11 = vpop.permute.xlu0 %3426  ;;  %v3425_v5 = vpop.permute.xlu1 %3424 }
 0x5a7   : > { %3493 = vst.msk [vmem:[#allocation5 + $0xf0] sm:$0xff] %vm3462_vm5, %v3427_v11  ;;  %3492 = vst.msk [vmem:[#allocation5 + $0xe8] sm:$0xff] %vm3462_vm5, %v3425_v5  ;;  %v4471_v27 = vpop.f32.mrf.mxu1  ;;  %v5579_v17 = vpop.f32.mrf.mxu0 }
 0x5a8   : > { %v4618_v10 = vadd.f32 %v8191_v26, %v4581_v13  ;;  %v4579_v56 = vmul.f32 %v8178_v15, %v4471_v27 }
 0x5a9   : > { %v5541_v45 = vpop.f32.mrf.mxu1 }
 0x5aa   : > { %v8344_v36 = vadd.f32 %v4921_v4, %v4618_v10  ;;  %v4616_v8 = vadd.f32 %v8191_v26, %v4579_v56  ;;  %v4582_v55 = vmul.f32 %v5541_v45, %v8178_v15  ;;  %v3616_v35 = vpop.permute.xlu0 %3615  ;;  %v3429_v14 = vpop.permute.xlu1 %3428  ;;  %v4888_v56 = vmul.f32 %v5578_v41, %v8168_v29 }
 0x5ab   : > { %3684 = vst.msk [vmem:[#allocation5 + $0xe0] sm:$0xff] %vm3655_vm6, %v3616_v35  ;;  %v4474_v1 = vpop.f32.mrf.mxu1  ;;  %v4886_v45 = vmul.f32 %v8168_v29, %v4790_v31  ;;  %v4889_v35 = vmul.f32 %v5579_v17, %v8168_v29 }
 0x5ac   : > { %3494 = vst.msk [vmem:[#allocation5 + $0xf8] sm:$0xff] %vm3462_vm5, %v3429_v14  ;;  %v5399_v48 = vmul.f32 -1.442695, %v8344_v36  ;;  %v4951_v59 = vadd.f32 %v4919_v12, %v4616_v8  ;;  %v4619_v9 = vadd.f32 %v8191_v26, %v4582_v55  ;;  %v4580_v63 = vmul.f32 %v8178_v15, %v4474_v1 }
 0x5ae   : > { %5795 = vpow2.f32 %v5399_v48  ;;  %v5397_v24 = vmul.f32 -1.442695, %v4951_v59  ;;  %v4954_v25 = vadd.f32 %v4922_v33, %v4619_v9  ;;  %v4617_v47 = vadd.f32 %v8191_v26, %v4580_v63  ;;  %v3620_v52 = vpop.permute.xlu0 %3619  ;;  %v3618_v37 = vpop.permute.xlu1 %3617 }
 0x5af   : > { %3686 = vst.msk [vmem:[#allocation5 + $0xf0] sm:$0xff] %vm3655_vm6, %v3620_v52  ;;  %3685 = vst.msk [vmem:[#allocation5 + $0xe8] sm:$0xff] %vm3655_vm6, %v3618_v37  ;;  %v4925_v33 = vadd.f32 %v8183_v60, %v4888_v56 }
 0x5b0   : > { %5797 = vpow2.f32 %v5397_v24  ;;  %v5400_v61 = vmul.f32 -1.442695, %v4954_v25  ;;  %v4952_v7 = vadd.f32 %v4920_v28, %v4617_v47  ;;  %v4926_v47 = vadd.f32 %v8183_v60, %v4889_v35 }
 0x5b2   : > { %5799 = vpow2.f32 %v5400_v61  ;;  %v5398_v18 = vmul.f32 -1.442695, %v4952_v7  ;;  %v3810_v51 = vpop.permute.xlu0 %3809  ;;  %v3622_v19 = vpop.permute.xlu1 %3621 }
 0x5b3   : > { %3878 = vst.msk [vmem:[#allocation5 + $0xe0] sm:$0xff] %vm3849_vm7, %v3810_v51 }
 0x5b4   : > { %3687 = vst.msk [vmem:[#allocation5 + $0xf8] sm:$0xff] %vm3655_vm6, %v3622_v19  ;;  %5801 = vpow2.f32 %v5398_v18 }
 0x5b6   : > { %v3814_v39 = vpop.permute.xlu0 %3813  ;;  %v3812_v2 = vpop.permute.xlu1 %3811 }
 0x5b7   : > { %3880 = vst.msk [vmem:[#allocation5 + $0xf0] sm:$0xff] %vm3849_vm7, %v3814_v39  ;;  %3879 = vst.msk [vmem:[#allocation5 + $0xe8] sm:$0xff] %vm3849_vm7, %v3812_v2 }
 0x5ba   : > { %v4003_v38 = vpop.permute.xlu0 %4002  ;;  %v3816_v40 = vpop.permute.xlu1 %3815 }
 0x5bb   : > { %v5796_v16 = vpop.eup %5795  ;;  %4071 = vst.msk [vmem:[#allocation5 + $0xe0] sm:$0xff] %vm4042_vm8, %v4003_v38 }
 0x5bc   : > { %3881 = vst.msk [vmem:[#allocation5 + $0xf8] sm:$0xff] %vm3849_vm7, %v3816_v40  ;;  %v5081_v58 = vadd.f32 1.0, %v5796_v16 }
 0x5bd   : > { %v5798_v44 = vpop.eup %5797 }
 0x5be   : > { %5803 = vrcp.f32 %v5081_v58  ;;  %v5079_v57 = vadd.f32 1.0, %v5798_v44  ;;  %v4007_v34 = vpop.permute.xlu0 %4006  ;;  %v4005_v6 = vpop.permute.xlu1 %4004 }
 0x5bf   : > { %v5800_v20 = vpop.eup %5799  ;;  %4073 = vst.msk [vmem:[#allocation5 + $0xf0] sm:$0xff] %vm4042_vm8, %v4007_v34  ;;  %4072 = vst.msk [vmem:[#allocation5 + $0xe8] sm:$0xff] %vm4042_vm8, %v4005_v6 }
 0x5c0   : > { %5805 = vrcp.f32 %v5079_v57  ;;  %v5082_v0 = vadd.f32 1.0, %v5800_v20 }
 0x5c1   : > { %v5802_v53 = vpop.eup %5801 }
 0x5c2   : > { %5807 = vrcp.f32 %v5082_v0  ;;  %v5080_v3 = vadd.f32 1.0, %v5802_v53  ;;  %v4196_v50 = vpop.permute.xlu0 %4195  ;;  %v4009_v43 = vpop.permute.xlu1 %4008 }
 0x5c3   : > { %4264 = vst.msk [vmem:[#allocation5 + $0xe0] sm:$0xff] %vm4235_vm9, %v4196_v50 }
 0x5c4   : > { %4074 = vst.msk [vmem:[#allocation5 + $0xf8] sm:$0xff] %vm4042_vm8, %v4009_v43  ;;  %5809 = vrcp.f32 %v5080_v3 }
 0x5c6   : > { %v4198_v30 = vpop.permute.xlu1 %4197  ;;  %v4200_v22 = vpop.permute.xlu0 %4199 }
 0x5c7   : > { %4265 = vst.msk [vmem:[#allocation5 + $0xe8] sm:$0xff] %vm4235_vm9, %v4198_v30  ;;  %4266 = vst.msk [vmem:[#allocation5 + $0xf0] sm:$0xff] %vm4235_vm9, %v4200_v22 }
 0x5ca   : > { %v4202_v54 = vpop.permute.xlu1 %4201  ;;  %v4296_v62 = vld [vmem:[#allocation5 + $0xe0] sm:$0xff] }
 0x5cb   : > { %v5804_v23 = vpop.eup %5803  ;;  %4267 = vst.msk [vmem:[#allocation5 + $0xf8] sm:$0xff] %vm4235_vm9, %v4202_v54 }
 0x5cc   : > { %v5177_v21 = vmul.f32 %v5804_v23, %v8344_v36  ;;  %v4793_v36 = vpop.f32.mrf.mxu0 }
 0x5cd   : > { %v5806_v32 = vpop.eup %5805  ;;  %v4887_v1 = vmul.f32 %v8168_v29, %v4793_v36 }
 0x5ce   : > { %5209 = vst.msk [vmem:[%s8251_s12 + $0x50] sm:$0xff] %vm280_vm0, %v5177_v21  ;;  %v5175_v42 = vmul.f32 %v5806_v32, %v4951_v59  ;;  %v4297_v46 = vld [vmem:[#allocation5 + $0xe8] sm:$0xff]  ;;  %v4298_v5 = vld [vmem:[#allocation5 + $0xf0] sm:$0xff]  ;;  %v4923_v59 = vadd.f32 %v8183_v60, %v4886_v45  ;;  %v5582_v3 = vpop.f32.mrf.mxu0 }
 0x5cf   : > { %v5808_v13 = vpop.eup %5807  ;;  %v4314_v4 = vpack.c.bf16 %v4297_v46, %v4296_v62  ;;  %v4924_v37 = vadd.f32 %v8183_v60, %v4887_v1 }
 0x5d0   : > { %5207 = vst.msk [vmem:[%s8251_s12 + $0x40] sm:$0xff] %vm280_vm0, %v5175_v42  ;;  %v5178_v11 = vmul.f32 %v5808_v13, %v4954_v25  ;;  %v4806_v30 = vpop.f32.mrf.mxu0  ;;  %v4892_v42 = vmul.f32 %v5582_v3, %v8168_v29 }
 0x5d1   : > { %v5810_v27 = vpop.eup %5809  ;;  %5558 = vmatprep.mubr.msk.bf16.mxu1 %vm4352_vm10, %v4314_v4  ;;  %v4890_v62 = vmul.f32 %v8168_v29, %v4806_v30 }
 0x5d2   : > { %5210 = vst.msk [vmem:[%s8251_s12 + $0x58] sm:$0xff] %vm280_vm0, %v5178_v11  ;;  %v5176_v49 = vmul.f32 %v5810_v27, %v4952_v7  ;;  %v4299_v10 = vld [vmem:[#allocation5 + $0xf8] sm:$0xff]  ;;  %v5583_v21 = vpop.f32.mrf.mxu0  ;;  %v4929_v11 = vadd.f32 %v8183_v60, %v4892_v42 }
 0x5d3   : > { %v4315_v12 = vpack.c.bf16 %v4299_v10, %v4298_v5  ;;  %v4893_v5 = vmul.f32 %v5583_v21, %v8168_v29  ;;  %v4927_v56 = vadd.f32 %v8183_v60, %v4890_v62 }
 0x5d4   : > { %5208 = vst.msk [vmem:[%s8251_s12 + $0x48] sm:$0xff] %vm280_vm0, %v5176_v49  ;;  %v4809_v46 = vpop.f32.mrf.mxu0 }
 0x5d5   : > { %v5544_v8 = vpop.f32.mrf.mxu1  ;;  %5559 = vmatmul.mubr.msk.bf16.gmra.mxu1 %vm4352_vm10, %v4315_v12  ;;  %v4891_v27 = vmul.f32 %v8168_v29, %v4809_v46 }
 0x5d6   : > { %v4585_v55 = vmul.f32 %v5544_v8, %v8178_v15 }
 0x5d7   : > { %v4487_v14 = vpop.f32.mrf.mxu1  ;;  %v4928_v35 = vadd.f32 %v8183_v60, %v4891_v27 }
 0x5d8   : > { %v4622_v28 = vadd.f32 %v8191_v26, %v4585_v55  ;;  %v4583_v48 = vmul.f32 %v8178_v15, %v4487_v14  ;;  %v4930_v55 = vadd.f32 %v8183_v60, %v4893_v5 }
 0x5d9   : > { %v5545_v9 = vpop.f32.mrf.mxu1 }
 0x5da   : > { %v4957_v63 = vadd.f32 %v4925_v33, %v4622_v28  ;;  %v4620_v24 = vadd.f32 %v8191_v26, %v4583_v48  ;;  %v4586_v25 = vmul.f32 %v5545_v9, %v8178_v15 }
 0x5db   : > { %v4490_v52 = vpop.f32.mrf.mxu1 }
 0x5dc   : > { %v5403_v61 = vmul.f32 -1.442695, %v4957_v63  ;;  %v4955_v7 = vadd.f32 %v4923_v59, %v4620_v24  ;;  %v4623_v18 = vadd.f32 %v8191_v26, %v4586_v25  ;;  %v4584_v51 = vmul.f32 %v8178_v15, %v4490_v52 }
 0x5de   : > { %5811 = vpow2.f32 %v5403_v61  ;;  %v5401_v19 = vmul.f32 -1.442695, %v4955_v7  ;;  %v4958_v39 = vadd.f32 %v4926_v47, %v4623_v18  ;;  %v4621_v2 = vadd.f32 %v8191_v26, %v4584_v51 }
 0x5e0   : > { %5813 = vpow2.f32 %v5401_v19  ;;  %v5404_v38 = vmul.f32 -1.442695, %v4958_v39  ;;  %v4956_v40 = vadd.f32 %v4924_v37, %v4621_v2  ;;  %v5586_v2 = vpop.f32.mrf.mxu0 }
 0x5e2   : > { %5815 = vpow2.f32 %v5404_v38  ;;  %v5402_v16 = vmul.f32 -1.442695, %v4956_v40 }
 0x5e4   : > { %5817 = vpow2.f32 %v5402_v16  ;;  %v4822_v16 = vpop.f32.mrf.mxu0 }
 0x5e5   : > { %v4894_v3 = vmul.f32 %v8168_v29, %v4822_v16 }
 0x5eb   : > { %v5812_v58 = vpop.eup %5811 }
 0x5ec   : > { %v5085_v44 = vadd.f32 1.0, %v5812_v58 }
 0x5ed   : > { %v5814_v57 = vpop.eup %5813 }
 0x5ee   : > { %5819 = vrcp.f32 %v5085_v44  ;;  %v5083_v34 = vadd.f32 1.0, %v5814_v57 }
 0x5ef   : > { %v5816_v6 = vpop.eup %5815 }
 0x5f0   : > { %5821 = vrcp.f32 %v5083_v34  ;;  %v5086_v20 = vadd.f32 1.0, %v5816_v6  ;;  %v5587_v6 = vpop.f32.mrf.mxu0 }
 0x5f1   : > { %v5818_v0 = vpop.eup %5817 }
 0x5f2   : > { %5823 = vrcp.f32 %v5086_v20  ;;  %v5084_v53 = vadd.f32 1.0, %v5818_v0 }
 0x5f4   : > { %5825 = vrcp.f32 %v5084_v53  ;;  %v4896_v53 = vmul.f32 %v5586_v2, %v8168_v29  ;;  %v8464_v2 = vld [vmem:[%s8529_s4] ss:$0 sm:$0xff] }
 0x5fb   : > { %v5820_v50 = vpop.eup %5819 }
 0x5fc   : > { %v5181_v43 = vmul.f32 %v5820_v50, %v4957_v63  ;;  %v4825_v50 = vpop.f32.mrf.mxu0 }
 0x5fd   : > { %v5822_v22 = vpop.eup %5821 }
 0x5fe   : > { %5213 = vst.msk [vmem:[%s8251_s12 + $0x70] sm:$0xff] %vm280_vm0, %v5181_v43  ;;  %v5179_v41 = vmul.f32 %v5822_v22, %v4955_v7  ;;  %v4933_v22 = vadd.f32 %v8183_v60, %v4896_v53 }
 0x5ff   : > { %v5824_v54 = vpop.eup %5823 }
 0x600   : > { %5211 = vst.msk [vmem:[%s8251_s12 + $0x60] sm:$0xff] %vm280_vm0, %v5179_v41  ;;  %v5182_v23 = vmul.f32 %v5824_v54, %v4958_v39  ;;  %v4897_v41 = vmul.f32 %v5587_v6, %v8168_v29 }
 0x601   : > { %v5826_v31 = vpop.eup %5825 }
 0x602   : > { %5214 = vst.msk [vmem:[%s8251_s12 + $0x78] sm:$0xff] %vm280_vm0, %v5182_v23  ;;  %v5180_v32 = vmul.f32 %v5826_v31, %v4956_v40  ;;  %v4895_v23 = vmul.f32 %v8168_v29, %v4825_v50 }
 0x604   : > { %5212 = vst.msk [vmem:[%s8251_s12 + $0x68] sm:$0xff] %vm280_vm0, %v5180_v32  ;;  %v4931_v32 = vadd.f32 %v8183_v60, %v4894_v3  ;;  %v4932_v5 = vadd.f32 %v8183_v60, %v4895_v23 }
 0x605   : > { %v5548_v13 = vpop.f32.mrf.mxu1 }
 0x606   : > { %v4589_v4 = vmul.f32 %v5548_v13, %v8178_v15 }
 0x607   : > { %v4503_v17 = vpop.f32.mrf.mxu1 }
 0x608   : > { %v4626_v49 = vadd.f32 %v8191_v26, %v4589_v4  ;;  %v4587_v10 = vmul.f32 %v8178_v15, %v4503_v17  ;;  %v4934_v4 = vadd.f32 %v8183_v60, %v4897_v41 }
 0x609   : > { %v5549_v12 = vpop.f32.mrf.mxu1 }
 0x60a   : > { %v4961_v45 = vadd.f32 %v4929_v11, %v4626_v49  ;;  %v4624_v36 = vadd.f32 %v8191_v26, %v4587_v10  ;;  %v4590_v8 = vmul.f32 %v5549_v12, %v8178_v15 }
 0x60b   : > { %v4506_v33 = vpop.f32.mrf.mxu1 }
 0x60c   : > { %v5407_v14 = vmul.f32 -1.442695, %v4961_v45  ;;  %v4959_v1 = vadd.f32 %v4927_v56, %v4624_v36  ;;  %v4627_v28 = vadd.f32 %v8191_v26, %v4590_v8  ;;  %v4588_v48 = vmul.f32 %v8178_v15, %v4506_v33 }
 0x60e   : > { %5827 = vpow2.f32 %v5407_v14  ;;  %v5405_v59 = vmul.f32 -1.442695, %v4959_v1  ;;  %v4962_v9 = vadd.f32 %v4930_v55, %v4627_v28  ;;  %v4625_v63 = vadd.f32 %v8191_v26, %v4588_v48  ;;  %v5590_v28 = vpop.f32.mrf.mxu0 }
 0x610   : > { %5829 = vpow2.f32 %v5405_v59  ;;  %v5408_v24 = vmul.f32 -1.442695, %v4962_v9  ;;  %v4960_v25 = vadd.f32 %v4928_v35, %v4625_v63 }
 0x612   : > { %5831 = vpow2.f32 %v5408_v24  ;;  %v5406_v47 = vmul.f32 -1.442695, %v4960_v25 }
 0x614   : > { %5833 = vpow2.f32 %v5406_v47 }
 0x61b   : > { %v5828_v52 = vpop.eup %5827 }
 0x61c   : > { %v5089_v37 = vadd.f32 1.0, %v5828_v52 }
 0x61d   : > { %v5830_v61 = vpop.eup %5829 }
 0x61e   : > { %5835 = vrcp.f32 %v5089_v37  ;;  %v5087_v7 = vadd.f32 1.0, %v5830_v61 }
 0x61f   : > { %v5832_v18 = vpop.eup %5831 }
 0x620   : > { %5837 = vrcp.f32 %v5087_v7  ;;  %v5090_v51 = vadd.f32 1.0, %v5832_v18  ;;  %v8455_v7 = vld [vmem:[%s8531_s6] ss:$0 sm:$0xff] }
 0x621   : > { %v5834_v19 = vpop.eup %5833  ;;  %v4900_v18 = vmul.f32 %v8455_v7, %v5590_v28 }
 0x622   : > { %5839 = vrcp.f32 %v5090_v51  ;;  %v5088_v39 = vadd.f32 1.0, %v5834_v19 }
 0x624   : > { %5841 = vrcp.f32 %v5088_v39 }
 0x62b   : > { %v5836_v38 = vpop.eup %5835 }
 0x62c   : > { %v5185_v40 = vmul.f32 %v5836_v38, %v4961_v45 }
 0x62d   : > { %v5838_v58 = vpop.eup %5837 }
 0x62e   : > { %5217 = vst.msk [vmem:[%s8251_s12 + $0x90] sm:$0xff] %vm280_vm0, %v5185_v40  ;;  %v5183_v44 = vmul.f32 %v5838_v58, %v4959_v1  ;;  %v8470_v40 = vld [vmem:[%s8531_s6 + $0x1] ss:$0 sm:$0xff] }
 0x62f   : > { %v5840_v57 = vpop.eup %5839  ;;  %v4937_v16 = vadd.f32 %v8470_v40, %v4900_v18 }
 0x630   : > { %5215 = vst.msk [vmem:[%s8251_s12 + $0x80] sm:$0xff] %vm280_vm0, %v5183_v44  ;;  %v5186_v34 = vmul.f32 %v5840_v57, %v4962_v9  ;;  %v4838_v9 = vpop.f32.mrf.mxu0 }
 0x631   : > { %v5842_v20 = vpop.eup %5841  ;;  %v4898_v51 = vmul.f32 %v8455_v7, %v4838_v9 }
 0x632   : > { %5218 = vst.msk [vmem:[%s8251_s12 + $0x98] sm:$0xff] %vm280_vm0, %v5186_v34  ;;  %v5184_v0 = vmul.f32 %v5842_v20, %v4960_v25  ;;  %v5591_v52 = vpop.f32.mrf.mxu0  ;;  %v8478_v34 = vld [vmem:[%s8529_s4 + $0x1] ss:$0 sm:$0xff] }
 0x633   : > { %v4901_v58 = vmul.f32 %v8455_v7, %v5591_v52 }
 0x634   : > { %5216 = vst.msk [vmem:[%s8251_s12 + $0x88] sm:$0xff] %vm280_vm0, %v5184_v0  ;;  %v4841_v19 = vpop.f32.mrf.mxu0  ;;  %v4935_v0 = vadd.f32 %v8470_v40, %v4898_v51 }
 0x635   : > { %v5552_v43 = vpop.f32.mrf.mxu1  ;;  %v4899_v57 = vmul.f32 %v8455_v7, %v4841_v19 }
 0x636   : > { %v4593_v30 = vmul.f32 %v5552_v43, %v8178_v15 }
 0x637   : > { %v4519_v54 = vpop.f32.mrf.mxu1  ;;  %v4936_v41 = vadd.f32 %v8470_v40, %v4899_v57 }
 0x638   : > { %v4630_v21 = vadd.f32 %v8191_v26, %v4593_v30  ;;  %v4591_v31 = vmul.f32 %v8178_v15, %v4519_v54  ;;  %v4938_v30 = vadd.f32 %v8470_v40, %v4901_v58 }
 0x639   : > { %v5553_v42 = vpop.f32.mrf.mxu1 }
 0x63a   : > { %v4965_v62 = vadd.f32 %v4933_v22, %v4630_v21  ;;  %v4628_v46 = vadd.f32 %v8191_v26, %v4591_v31  ;;  %v4594_v13 = vmul.f32 %v5553_v42, %v8178_v15 }
 0x63b   : > { %v4522_v11 = vpop.f32.mrf.mxu1 }
 0x63c   : > { %v5411_v17 = vmul.f32 -1.442695, %v4965_v62  ;;  %v4963_v27 = vadd.f32 %v4931_v32, %v4628_v46  ;;  %v4631_v29 = vadd.f32 %v8191_v26, %v4594_v13  ;;  %v4592_v49 = vmul.f32 %v8178_v15, %v4522_v11 }
 0x63e   : > { %5843 = vpow2.f32 %v5411_v17  ;;  %v5409_v10 = vmul.f32 -1.442695, %v4963_v27  ;;  %v4966_v56 = vadd.f32 %v4934_v4, %v4631_v29  ;;  %v4629_v12 = vadd.f32 %v8191_v26, %v4592_v49 }
 0x640   : > { %5845 = vpow2.f32 %v5409_v10  ;;  %v5412_v45 = vmul.f32 -1.442695, %v4966_v56  ;;  %v4964_v36 = vadd.f32 %v4932_v5, %v4629_v12  ;;  %v5594_v12 = vpop.f32.mrf.mxu0 }
 0x642   : > { %5847 = vpow2.f32 %v5412_v45  ;;  %v5410_v8 = vmul.f32 -1.442695, %v4964_v36 }
 0x644   : > { %5849 = vpow2.f32 %v5410_v8 }
 0x64b   : > { %v5844_v55 = vpop.eup %5843 }
 0x64c   : > { %v5093_v33 = vadd.f32 1.0, %v5844_v55 }
 0x64d   : > { %v5846_v60 = vpop.eup %5845 }
 0x64e   : > { %5851 = vrcp.f32 %v5093_v33  ;;  %v5091_v35 = vadd.f32 1.0, %v5846_v60  ;;  %v4854_v33 = vpop.f32.mrf.mxu0 }
 0x64f   : > { %v5848_v14 = vpop.eup %5847 }
 0x650   : > { %5853 = vrcp.f32 %v5091_v35  ;;  %v5094_v15 = vadd.f32 1.0, %v5848_v14 }
 0x651   : > { %v5850_v1 = vpop.eup %5849 }
 0x652   : > { %5855 = vrcp.f32 %v5094_v15  ;;  %v5092_v26 = vadd.f32 1.0, %v5850_v1  ;;  %v4904_v1 = vmul.f32 %v8455_v7, %v5594_v12 }
 0x654   : > { %5857 = vrcp.f32 %v5092_v26  ;;  %v5595_v26 = vpop.f32.mrf.mxu0 }
 0x65b   : > { %v5852_v48 = vpop.eup %5851 }
 0x65c   : > { %v5189_v59 = vmul.f32 %v5852_v48, %v4965_v62  ;;  %v4941_v48 = vadd.f32 %v8470_v40, %v4904_v1 }
 0x65d   : > { %v5854_v63 = vpop.eup %5853 }
 0x65e   : > { %5221 = vst.msk [vmem:[%s8251_s12 + $0xb0] sm:$0xff] %vm280_vm0, %v5189_v59  ;;  %v5187_v24 = vmul.f32 %v5854_v63, %v4963_v27  ;;  %v4902_v59 = vmul.f32 %v8455_v7, %v4854_v33  ;;  %v4857_v63 = vpop.f32.mrf.mxu0 }
 0x65f   : > { %v5856_v25 = vpop.eup %5855 }
 0x660   : > { %5219 = vst.msk [vmem:[%s8251_s12 + $0xa0] sm:$0xff] %vm280_vm0, %v5187_v24  ;;  %v5190_v47 = vmul.f32 %v5856_v25, %v4966_v56  ;;  %v4905_v24 = vmul.f32 %v8455_v7, %v5595_v26  ;;  %v4939_v18 = vadd.f32 %v8470_v40, %v4902_v59 }
 0x661   : > { %v5858_v37 = vpop.eup %5857 }
 0x662   : > { %5222 = vst.msk [vmem:[%s8251_s12 + $0xb8] sm:$0xff] %vm280_vm0, %v5190_v47  ;;  %v5188_v61 = vmul.f32 %v5858_v37, %v4964_v36  ;;  %v4903_v37 = vmul.f32 %v8455_v7, %v4857_v63 }
 0x664   : > { %5220 = vst.msk [vmem:[%s8251_s12 + $0xa8] sm:$0xff] %vm280_vm0, %v5188_v61 }
 0x666   : > { %v5556_v39 = vpop.f32.mrf.mxu1 }
 0x667   : > { %v4597_v38 = vmul.f32 %v8464_v2, %v5556_v39 }
 0x668   : > { %v4535_v44 = vpop.f32.mrf.mxu1 }
 0x669   : > { %v4634_v6 = vadd.f32 %v8478_v34, %v4597_v38  ;;  %v4595_v20 = vmul.f32 %v8464_v2, %v4535_v44  ;;  %v4942_v38 = vadd.f32 %v8470_v40, %v4905_v24 }
 0x66a   : > { %v5557_v53 = vpop.f32.mrf.mxu1 }
 0x66b   : > { %v4969_v3 = vadd.f32 %v4937_v16, %v4634_v6  ;;  %v4632_v50 = vadd.f32 %v8478_v34, %v4595_v20  ;;  %v4598_v43 = vmul.f32 %v8464_v2, %v5557_v53  ;;  %v4940_v20 = vadd.f32 %v8470_v40, %v4903_v37 }
 0x66c   : > { %v4538_v22 = vpop.f32.mrf.mxu1 }
 0x66d   : > { %v5415_v54 = vmul.f32 -1.442695, %v4969_v3  ;;  %v4967_v23 = vadd.f32 %v4935_v0, %v4632_v50  ;;  %v4635_v21 = vadd.f32 %v8478_v34, %v4598_v43  ;;  %v4596_v31 = vmul.f32 %v8464_v2, %v4538_v22 }
 0x66f   : > { %5859 = vpow2.f32 %v5415_v54  ;;  %v5413_v32 = vmul.f32 -1.442695, %v4967_v23  ;;  %v4970_v42 = vadd.f32 %v4938_v30, %v4635_v21  ;;  %v4633_v62 = vadd.f32 %v8478_v34, %v4596_v31 }
 0x671   : > { %5861 = vpow2.f32 %v5413_v32  ;;  %v5416_v46 = vmul.f32 -1.442695, %v4970_v42  ;;  %v4968_v13 = vadd.f32 %v4936_v41, %v4633_v62 }
 0x673   : > { %5863 = vpow2.f32 %v5416_v46  ;;  %v5414_v4 = vmul.f32 -1.442695, %v4968_v13 }
 0x675   : > { %5865 = vpow2.f32 %v5414_v4 }
 0x67c   : > { %v5860_v11 = vpop.eup %5859 }
 0x67d   : > { %v5097_v5 = vadd.f32 1.0, %v5860_v11 }
 0x67e   : > { %v5862_v17 = vpop.eup %5861 }
 0x67f   : > { %5867 = vrcp.f32 %v5097_v5  ;;  %v5095_v27 = vadd.f32 1.0, %v5862_v17 }
 0x680   : > { %v5864_v29 = vpop.eup %5863 }
 0x681   : > { %5869 = vrcp.f32 %v5095_v27  ;;  %v5098_v49 = vadd.f32 1.0, %v5864_v29 }
 0x682   : > { %v5866_v10 = vpop.eup %5865 }
 0x683   : > { %5871 = vrcp.f32 %v5098_v49  ;;  %v5096_v56 = vadd.f32 1.0, %v5866_v10 }
 0x685   : > { %5873 = vrcp.f32 %v5096_v56 }
 0x68c   : > { %v5868_v45 = vpop.eup %5867 }
 0x68d   : > { %v5193_v36 = vmul.f32 %v5868_v45, %v4969_v3 }
 0x68e   : > { %v5870_v8 = vpop.eup %5869 }
 0x68f   : > { %5225 = vst.msk [vmem:[%s8251_s12 + $0xd0] sm:$0xff] %vm280_vm0, %v5193_v36  ;;  %v5191_v55 = vmul.f32 %v5870_v8, %v4967_v23 }
 0x690   : > { %v5872_v60 = vpop.eup %5871 }
 0x691   : > { %5223 = vst.msk [vmem:[%s8251_s12 + $0xc0] sm:$0xff] %vm280_vm0, %v5191_v55  ;;  %v5194_v35 = vmul.f32 %v5872_v60, %v4970_v42 }
 0x692   : > { %v5874_v14 = vpop.eup %5873 }
 0x693   : > { %5226 = vst.msk [vmem:[%s8251_s12 + $0xd8] sm:$0xff] %vm280_vm0, %v5194_v35  ;;  %v5192_v15 = vmul.f32 %v5874_v14, %v4968_v13 }
 0x695   : > { %5224 = vst.msk [vmem:[%s8251_s12 + $0xc8] sm:$0xff] %vm280_vm0, %v5192_v15  ;;  %v5560_v28 = vpop.f32.mrf.mxu1 }
 0x696   : > { %v4601_v9 = vmul.f32 %v8464_v2, %v5560_v28 }
 0x697   : > { %v4551_v25 = vpop.f32.mrf.mxu1 }
 0x698   : > { %v4638_v47 = vadd.f32 %v8478_v34, %v4601_v9  ;;  %v4599_v52 = vmul.f32 %v8464_v2, %v4551_v25 }
 0x699   : > { %v5561_v61 = vpop.f32.mrf.mxu1 }
 0x69a   : > { %v4973_v51 = vadd.f32 %v4941_v48, %v4638_v47  ;;  %v4636_v19 = vadd.f32 %v8478_v34, %v4599_v52  ;;  %v4602_v39 = vmul.f32 %v8464_v2, %v5561_v61 }
 0x69b   : > { %v4554_v16 = vpop.f32.mrf.mxu1 }
 0x69c   : > { %v5419_v58 = vmul.f32 -1.442695, %v4973_v51  ;;  %v4971_v44 = vadd.f32 %v4939_v18, %v4636_v19  ;;  %v4639_v57 = vadd.f32 %v8478_v34, %v4602_v39  ;;  %v4600_v6 = vmul.f32 %v8464_v2, %v4554_v16 }
 0x69e   : > { %5875 = vpow2.f32 %v5419_v58  ;;  %v5417_v7 = vmul.f32 -1.442695, %v4971_v44  ;;  %v4974_v0 = vadd.f32 %v4942_v38, %v4639_v57  ;;  %v4637_v53 = vadd.f32 %v8478_v34, %v4600_v6 }
 0x6a0   : > { %5877 = vpow2.f32 %v5417_v7  ;;  %v5420_v3 = vmul.f32 -1.442695, %v4974_v0  ;;  %v4972_v50 = vadd.f32 %v4940_v20, %v4637_v53 }
 0x6a2   : > { %5879 = vpow2.f32 %v5420_v3  ;;  %v5418_v43 = vmul.f32 -1.442695, %v4972_v50 }
 0x6a4   : > { %5881 = vpow2.f32 %v5418_v43 }
 0x6ab   : > { %v5876_v30 = vpop.eup %5875 }
 0x6ac   : > { %v5101_v22 = vadd.f32 1.0, %v5876_v30 }
 0x6ad   : > { %v5878_v41 = vpop.eup %5877 }
 0x6ae   : > { %5883 = vrcp.f32 %v5101_v22  ;;  %v5099_v2 = vadd.f32 1.0, %v5878_v41 }
 0x6af   : > { %v5880_v54 = vpop.eup %5879 }
 0x6b0   : > { %5885 = vrcp.f32 %v5099_v2  ;;  %v5102_v40 = vadd.f32 1.0, %v5880_v54 }
 0x6b1   : > { %v5882_v23 = vpop.eup %5881 }
 0x6b2   : > { %5887 = vrcp.f32 %v5102_v40  ;;  %v5100_v34 = vadd.f32 1.0, %v5882_v23 }
 0x6b4   : > { %5889 = vrcp.f32 %v5100_v34 }
 0x6bb   : > { %v5884_v21 = vpop.eup %5883 }
 0x6bc   : > { %v5197_v31 = vmul.f32 %v5884_v21, %v4973_v51 }
 0x6bd   : > { %v5886_v32 = vpop.eup %5885 }
 0x6be   : > { %5229 = vst.msk [vmem:[%s8251_s12 + $0xf0] sm:$0xff] %vm280_vm0, %v5197_v31  ;;  %v5195_v42 = vmul.f32 %v5886_v32, %v4971_v44 }
 0x6bf   : > { %v5888_v62 = vpop.eup %5887 }
 0x6c0   : > { %5227 = vst.msk [vmem:[%s8251_s12 + $0xe0] sm:$0xff] %vm280_vm0, %v5195_v42  ;;  %v5198_v46 = vmul.f32 %v5888_v62, %v4974_v0 }
 0x6c1   : > { %v5890_v13 = vpop.eup %5889 }
 0x6c2   : > { %5230 = vst.msk [vmem:[%s8251_s12 + $0xf8] sm:$0xff] %vm280_vm0, %v5198_v46  ;;  %v5196_v4 = vmul.f32 %v5890_v13, %v4972_v50 }
 0x6c4   : > { %5228 = vst.msk [vmem:[%s8251_s12 + $0xe8] sm:$0xff] %vm280_vm0, %v5196_v4 }
 0x6c5 PF: > { %s17_s24 = sadd.s32 1, %s5938_s24  }
 0x6c6   : > { %p14_p4 = scmp.ge.s32.totalorder %s17_s24, 4  }
 0x6c8   :  { %16 = sbr.rel (!%p14_p4) target bundleno = 1 (0x1), region = 84 }

</bundles_post_ra>
